<compile_context>
chip_gen: v7x
topology: tpu7x:2x2x1
jax: 0.10.0
libtpu: 0.0.40
codegen_flags: <defaults>
</compile_context>

<pallas_src>
import functools

import jax
import jax.numpy as jnp
from jax.experimental import pallas as pl
from jax.experimental.pallas import tpu as pltpu


# ----------------------------------------------------------------------------
# Kernel: conv tile (9 folded (kd,kh) matmuls per plane, taps formed on-chip
# from the resident padded block) + per-plane BN partial stats.
# ----------------------------------------------------------------------------
def _conv_stats_kernel(x_ref, w_ref, conv_ref, sum_ref, m2_ref,
                       *, k, cout, w, hw, d_block):
    # x_ref:    (1, D_pad, K*Cin, (H+2p)*W)  bf16  resident per-batch padded volume
    # w_ref:    (K, K, Cout, K*Cin)          bf16  weights, last axis = (kw, ci)
    # conv_ref: (Cout, d_block*H*W)          bf16  lane-dense conv tile
    # sum_ref:  (d_block, Cout, 1)           f32   per-plane sum
    # m2_ref:   (d_block, Cout, 1)           f32   per-plane mean-centered M2
    slab = pl.program_id(1)
    for dz in range(d_block):                      # static unroll over the slab
        dd = slab * d_block + dz                   # output depth within this batch
        acc = jnp.zeros((cout, hw), jnp.float32)
        for kd in range(k):
            for kh in range(k):
                # (K*Cin, H*W) tap slice: dynamic index on the (non-tiled) depth
                # axis + static lane slice; kw/Cin are pre-folded into the rows.
                xs = x_ref[0, dd + kd, :, kh * w: kh * w + hw]
                acc = acc + jnp.dot(w_ref[kd, kh], xs,
                                    preferred_element_type=jnp.float32)
        # bf16 store of the conv intermediate (stats below use the f32 acc).
        conv_ref[:, dz * hw:(dz + 1) * hw] = acc.astype(conv_ref.dtype)
        # per-plane, mean-centered partial statistics (numerically safe).
        s = jnp.sum(acc, axis=-1, keepdims=True)               # (Cout, 1)
        mu = s * (1.0 / hw)
        dev = acc - mu
        sum_ref[dz] = s
        m2_ref[dz] = jnp.sum(dev * dev, axis=-1, keepdims=True)


def _pick_d_block(n, d, hw, target_cols, max_unroll=8):
    """Largest depth-slab that divides D, keeps the output tile a multiple of
    128 lanes, stays under `target_cols`, and keeps >=2 grid steps if possible."""
    cands = [dv for dv in range(1, min(d, max_unroll) + 1)
             if d % dv == 0 and (dv * hw) % 128 == 0]
    if not cands:
        # TODO(synk): masked / ragged output tiles for awkward H*W.
        raise NotImplementedError(
            f"no depth block <= {max_unroll} dividing D={d} with "
            f"d_block*H*W % 128 == 0 (H*W={hw})")
    fitting = [dv for dv in cands if dv * hw <= target_cols] or [min(cands)]
    best = max(fitting)
    if n * (d // best) < 2:                        # keep megacore busy on v7x
        multi = [dv for dv in fitting if d // dv >= 2]
        if multi:
            best = max(multi)
    return best


def norm_block_forward(x_ncdhw, weight, bias, gamma, beta,
                       *, kernel=3, stride=1, padding=1, eps=1e-5,
                       target_tile_cols=8192):
    """Pallas forward for norm_block. x_ncdhw: (N, Cin, D, H, W) -> (N, Cout, D, H, W)."""
    assert stride == 1 and kernel % 2 == 1 and 2 * padding == kernel - 1, \
        "only the module defaults (k=3, s=1, p=1 style 'same' conv) are implemented"
    n, cin, d, h, w = x_ncdhw.shape
    cout, cin_w, kd_, kh_, kw_ = weight.shape
    assert cin_w == cin and kd_ == kh_ == kw_ == kernel
    k = kernel
    hw = h * w
    m = n * d * h * w
    d_pad = d + 2 * padding
    h_pad = h + 2 * padding

    # Conv bias is exactly cancelled by training-mode BatchNorm mean subtraction.
    del bias

    d_block = _pick_d_block(n, d, hw, target_tile_cols)
    n_slabs = d // d_block
    tile_cols = d_block * hw

    # ---- JAX glue: one padded volume, kw unrolled into the row axis ----------
    # S[nb, p, kw*Cin + ci, hp*W + wx] = x_pad[nb, ci, p, hp, kw + wx]
    xp = jnp.pad(x_ncdhw, ((0, 0), (0, 0),
                           (padding, padding), (padding, padding),
                           (padding, padding)))                    # (N,Cin,Dp,Hp,Wp)
    xp = jnp.transpose(xp, (0, 2, 1, 3, 4))                        # (N,Dp,Cin,Hp,Wp)
    s_arr = jnp.stack([xp[..., kw:kw + w] for kw in range(k)], axis=2)
    s_arr = s_arr.reshape(n, d_pad, k * cin, h_pad * w).astype(jnp.bfloat16)

    # weights: (Cout,Cin,kD,kH,kW) -> (kD, kH, Cout, kW*Cin), matching S's rows.
    w_t = jnp.transpose(weight, (2, 3, 0, 4, 1)).reshape(k, k, cout, k * cin)
    w_t = w_t.astype(jnp.bfloat16)

    cparams = pltpu.CompilerParams(
        dimension_semantics=("parallel", "parallel"),
        vmem_limit_bytes=48 * 1024 * 1024)   # headroom even on v7x's 64 MiB VMEM

    kern = functools.partial(_conv_stats_kernel,
                             k=k, cout=cout, w=w, hw=hw, d_block=d_block)

    conv_bf16, psum, pm2 = pl.pallas_call(
        kern,
        out_shape=(
            jax.ShapeDtypeStruct((cout, m), jnp.bfloat16),          # conv, (Cout, M)
            jax.ShapeDtypeStruct((n * d, cout, 1), jnp.float32),    # per-plane sum
            jax.ShapeDtypeStruct((n * d, cout, 1), jnp.float32),    # per-plane M2
        ),
        grid=(n, n_slabs),
        in_specs=[
            # whole padded batch-slab: resident across the inner (slab) axis
            pl.BlockSpec((1, d_pad, k * cin, h_pad * w), lambda i, s: (i, 0, 0, 0)),
            pl.BlockSpec((k, k, cout, k * cin), lambda i, s: (0, 0, 0, 0)),
        ],
        out_specs=(
            pl.BlockSpec((cout, tile_cols),
                         lambda i, s: (0, i * n_slabs + s)),
            pl.BlockSpec((d_block, cout, 1),
                         lambda i, s: (i * n_slabs + s, 0, 0)),
            pl.BlockSpec((d_block, cout, 1),
                         lambda i, s: (i * n_slabs + s, 0, 0)),
        ),
        compiler_params=cparams,
    )(s_arr, w_t)

    # ---- epilogue (plain JAX, fuses with the final reshape/transpose) --------
    sums = psum[:, :, 0]                                   # (N*D, Cout)
    m2s = pm2[:, :, 0]                                     # (N*D, Cout)
    mean = jnp.sum(sums, axis=0) / m                       # (Cout,)
    means_p = sums * (1.0 / hw)                            # per-plane means
    # Chan/Welford merge: within-plane M2 + between-plane correction.
    m2_tot = jnp.sum(m2s, axis=0) + hw * jnp.sum((means_p - mean[None, :]) ** 2, axis=0)
    var = m2_tot / m                                       # biased variance (BN training)
    inv_std = jax.lax.rsqrt(var + eps)
    scale = gamma.astype(jnp.float32) * inv_std            # (Cout,)
    shift = beta.astype(jnp.float32) - mean * scale        # (Cout,)

    y = conv_bf16.astype(jnp.float32) * scale[:, None] + shift[:, None]
    y = jnp.maximum(y, 0.0)
    y = y.reshape(cout, n, d, h, w)
    return jnp.transpose(y, (1, 0, 2, 3, 4)).astype(x_ncdhw.dtype)


def _reference_forward(x, weight, bias, gamma, beta, eps=1e-5):
    """Pure-JAX reference (mirrors PyTorch training-mode forward)."""
    y = jax.lax.conv_general_dilated(
        x.astype(jnp.float32), weight.astype(jnp.float32),
        window_strides=(1, 1, 1),
        padding=((1, 1), (1, 1), (1, 1)),
        dimension_numbers=("NCDHW", "OIDHW", "NCDHW"))
    y = y + bias.reshape(1, -1, 1, 1, 1)
    mean = jnp.mean(y, axis=(0, 2, 3, 4), keepdims=True)
    var = jnp.mean((y - mean) ** 2, axis=(0, 2, 3, 4), keepdims=True)
    yh = (y - mean) * jax.lax.rsqrt(var + eps)
    yh = yh * gamma.reshape(1, -1, 1, 1, 1) + beta.reshape(1, -1, 1, 1, 1)
    return jnp.maximum(yh, 0.0)


if __name__ == "__main__":
    # small shapes consistent with the module: norm_block(in_planes=4, out_planes=8)
    N, Cin, Cout, D, H, W = 2, 4, 8, 16, 16, 16
    K = 3

    key = jax.random.PRNGKey(0)
    kx, kw_, kb = jax.random.split(key, 3)
    x = jax.random.normal(kx, (N, Cin, D, H, W), dtype=jnp.float32)
    weight = jax.random.normal(kw_, (Cout, Cin, K, K, K), dtype=jnp.float32) * 0.1
    bias = jax.random.normal(kb, (Cout,), dtype=jnp.float32) * 0.1
    gamma = jnp.ones((Cout,), jnp.float32)    # BatchNorm3d default weight
    beta = jnp.zeros((Cout,), jnp.float32)    # BatchNorm3d default bias

    out = norm_block_forward(x, weight, bias, gamma, beta)
    out = jax.block_until_ready(out)

    ref = _reference_forward(x, weight, bias, gamma, beta)
    assert out.shape == (N, Cout, D, H, W)
    # bf16 matmul inputs + bf16 conv intermediate (f32 accumulation/stats).
    assert jnp.allclose(out, ref, rtol=3e-2, atol=3e-2), "mismatch vs reference"

    print("KERNEL_OK")
</pallas_src>

<mosaic_0001>
module attributes {stable_mosaic.version = 11 : i64} {
  func.func @_conv_stats_kernel(%arg0: i32, %arg1: i32, %arg2: memref<1x18x12x288xbf16, #tpu.memory_space<vmem>>, %arg3: memref<3x3x8x12xbf16, #tpu.memory_space<vmem>>, %arg4: memref<8x2048xbf16, #tpu.memory_space<vmem>>, %arg5: memref<8x8x1xf32, #tpu.memory_space<vmem>>, %arg6: memref<8x8x1xf32, #tpu.memory_space<vmem>>) attributes {dimension_semantics = [#tpu.dimension_semantics<parallel>, #tpu.dimension_semantics<parallel>], iteration_bounds = array<i64: 2, 2>, scalar_prefetch = 0 : i64, scratch_operands = 0 : i64, tpu.core_type = #tpu.core_type<tc>, window_params = [{transform_indices = @transform_0, window_bounds = array<i64: 1, 18, 12, 288>}, {pipeline_mode = #tpu.pipeline_mode<synchronous>, transform_indices = @transform_1, window_bounds = array<i64: 3, 3, 8, 12>}, {transform_indices = @transform_2, window_bounds = array<i64: 8, 2048>}, {transform_indices = @transform_3, window_bounds = array<i64: 8, 8, 1>}, {transform_indices = @transform_4, window_bounds = array<i64: 8, 8, 1>}]} {
    %c8_i32 = arith.constant 8 : i32
    %0 = arith.muli %arg1, %c8_i32 : i32
    %c0_i32 = arith.constant 0 : i32
    %1 = arith.addi %0, %c0_i32 : i32
    %cst = arith.constant 0.000000e+00 : f32
    %2 = vector.broadcast %cst : f32 to vector<8x256xf32>
    %c0_i32_0 = arith.constant 0 : i32
    %3 = arith.addi %1, %c0_i32_0 : i32
    %c0 = arith.constant 0 : index
    %4 = arith.index_cast %3 : i32 to index
    %c0_1 = arith.constant 0 : index
    %c0_2 = arith.constant 0 : index
    %5 = vector.load %arg2[%c0, %4, %c0_1, %c0_2] : memref<1x18x12x288xbf16, #tpu.memory_space<vmem>>, vector<1x1x12x256xbf16>
    %6 = vector.shape_cast %5 : vector<1x1x12x256xbf16> to vector<12x256xbf16>
    %c0_3 = arith.constant 0 : index
    %c0_4 = arith.constant 0 : index
    %c0_5 = arith.constant 0 : index
    %c0_6 = arith.constant 0 : index
    %7 = vector.load %arg3[%c0_3, %c0_4, %c0_5, %c0_6] : memref<3x3x8x12xbf16, #tpu.memory_space<vmem>>, vector<1x1x8x12xbf16>
    %8 = vector.shape_cast %7 : vector<1x1x8x12xbf16> to vector<8x12xbf16>
    %cst_7 = arith.constant dense<0.000000e+00> : vector<8x256xf32>
    %9 = tpu.matmul %8, %6, %cst_7 {dimension_numbers = #tpu.dot_dimension_numbers<[1], [0], [0], [1], [0, 0, 1, 1], [], []>} : vector<8x12xbf16>, vector<12x256xbf16>, vector<8x256xf32> -> vector<8x256xf32>
    %10 = arith.addf %2, %9 : vector<8x256xf32>
    %c0_i32_8 = arith.constant 0 : i32
    %11 = arith.addi %1, %c0_i32_8 : i32
    %c0_9 = arith.constant 0 : index
    %12 = arith.index_cast %11 : i32 to index
    %c0_10 = arith.constant 0 : index
    %c16 = arith.constant 16 : index
    %13 = vector.load %arg2[%c0_9, %12, %c0_10, %c16] : memref<1x18x12x288xbf16, #tpu.memory_space<vmem>>, vector<1x1x12x256xbf16>
    %14 = vector.shape_cast %13 : vector<1x1x12x256xbf16> to vector<12x256xbf16>
    %c0_11 = arith.constant 0 : index
    %c1 = arith.constant 1 : index
    %c0_12 = arith.constant 0 : index
    %c0_13 = arith.constant 0 : index
    %15 = vector.load %arg3[%c0_11, %c1, %c0_12, %c0_13] : memref<3x3x8x12xbf16, #tpu.memory_space<vmem>>, vector<1x1x8x12xbf16>
    %16 = vector.shape_cast %15 : vector<1x1x8x12xbf16> to vector<8x12xbf16>
    %cst_14 = arith.constant dense<0.000000e+00> : vector<8x256xf32>
    %17 = tpu.matmul %16, %14, %cst_14 {dimension_numbers = #tpu.dot_dimension_numbers<[1], [0], [0], [1], [0, 0, 1, 1], [], []>} : vector<8x12xbf16>, vector<12x256xbf16>, vector<8x256xf32> -> vector<8x256xf32>
    %18 = arith.addf %10, %17 : vector<8x256xf32>
    %c0_i32_15 = arith.constant 0 : i32
    %19 = arith.addi %1, %c0_i32_15 : i32
    %c0_16 = arith.constant 0 : index
    %20 = arith.index_cast %19 : i32 to index
    %c0_17 = arith.constant 0 : index
    %c32 = arith.constant 32 : index
    %21 = vector.load %arg2[%c0_16, %20, %c0_17, %c32] : memref<1x18x12x288xbf16, #tpu.memory_space<vmem>>, vector<1x1x12x256xbf16>
    %22 = vector.shape_cast %21 : vector<1x1x12x256xbf16> to vector<12x256xbf16>
    %c0_18 = arith.constant 0 : index
    %c2 = arith.constant 2 : index
    %c0_19 = arith.constant 0 : index
    %c0_20 = arith.constant 0 : index
    %23 = vector.load %arg3[%c0_18, %c2, %c0_19, %c0_20] : memref<3x3x8x12xbf16, #tpu.memory_space<vmem>>, vector<1x1x8x12xbf16>
    %24 = vector.shape_cast %23 : vector<1x1x8x12xbf16> to vector<8x12xbf16>
    %cst_21 = arith.constant dense<0.000000e+00> : vector<8x256xf32>
    %25 = tpu.matmul %24, %22, %cst_21 {dimension_numbers = #tpu.dot_dimension_numbers<[1], [0], [0], [1], [0, 0, 1, 1], [], []>} : vector<8x12xbf16>, vector<12x256xbf16>, vector<8x256xf32> -> vector<8x256xf32>
    %26 = arith.addf %18, %25 : vector<8x256xf32>
    %c1_i32 = arith.constant 1 : i32
    %27 = arith.addi %1, %c1_i32 : i32
    %c0_22 = arith.constant 0 : index
    %28 = arith.index_cast %27 : i32 to index
    %c0_23 = arith.constant 0 : index
    %c0_24 = arith.constant 0 : index
    %29 = vector.load %arg2[%c0_22, %28, %c0_23, %c0_24] : memref<1x18x12x288xbf16, #tpu.memory_space<vmem>>, vector<1x1x12x256xbf16>
    %30 = vector.shape_cast %29 : vector<1x1x12x256xbf16> to vector<12x256xbf16>
    %c1_25 = arith.constant 1 : index
    %c0_26 = arith.constant 0 : index
    %c0_27 = arith.constant 0 : index
    %c0_28 = arith.constant 0 : index
    %31 = vector.load %arg3[%c1_25, %c0_26, %c0_27, %c0_28] : memref<3x3x8x12xbf16, #tpu.memory_space<vmem>>, vector<1x1x8x12xbf16>
    %32 = vector.shape_cast %31 : vector<1x1x8x12xbf16> to vector<8x12xbf16>
    %cst_29 = arith.constant dense<0.000000e+00> : vector<8x256xf32>
    %33 = tpu.matmul %32, %30, %cst_29 {dimension_numbers = #tpu.dot_dimension_numbers<[1], [0], [0], [1], [0, 0, 1, 1], [], []>} : vector<8x12xbf16>, vector<12x256xbf16>, vector<8x256xf32> -> vector<8x256xf32>
    %34 = arith.addf %26, %33 : vector<8x256xf32>
    %c1_i32_30 = arith.constant 1 : i32
    %35 = arith.addi %1, %c1_i32_30 : i32
    %c0_31 = arith.constant 0 : index
    %36 = arith.index_cast %35 : i32 to index
    %c0_32 = arith.constant 0 : index
    %c16_33 = arith.constant 16 : index
    %37 = vector.load %arg2[%c0_31, %36, %c0_32, %c16_33] : memref<1x18x12x288xbf16, #tpu.memory_space<vmem>>, vector<1x1x12x256xbf16>
    %38 = vector.shape_cast %37 : vector<1x1x12x256xbf16> to vector<12x256xbf16>
    %c1_34 = arith.constant 1 : index
    %c1_35 = arith.constant 1 : index
    %c0_36 = arith.constant 0 : index
    %c0_37 = arith.constant 0 : index
    %39 = vector.load %arg3[%c1_34, %c1_35, %c0_36, %c0_37] : memref<3x3x8x12xbf16, #tpu.memory_space<vmem>>, vector<1x1x8x12xbf16>
    %40 = vector.shape_cast %39 : vector<1x1x8x12xbf16> to vector<8x12xbf16>
    %cst_38 = arith.constant dense<0.000000e+00> : vector<8x256xf32>
    %41 = tpu.matmul %40, %38, %cst_38 {dimension_numbers = #tpu.dot_dimension_numbers<[1], [0], [0], [1], [0, 0, 1, 1], [], []>} : vector<8x12xbf16>, vector<12x256xbf16>, vector<8x256xf32> -> vector<8x256xf32>
    %42 = arith.addf %34, %41 : vector<8x256xf32>
    %c1_i32_39 = arith.constant 1 : i32
    %43 = arith.addi %1, %c1_i32_39 : i32
    %c0_40 = arith.constant 0 : index
    %44 = arith.index_cast %43 : i32 to index
    %c0_41 = arith.constant 0 : index
    %c32_42 = arith.constant 32 : index
    %45 = vector.load %arg2[%c0_40, %44, %c0_41, %c32_42] : memref<1x18x12x288xbf16, #tpu.memory_space<vmem>>, vector<1x1x12x256xbf16>
    %46 = vector.shape_cast %45 : vector<1x1x12x256xbf16> to vector<12x256xbf16>
    %c1_43 = arith.constant 1 : index
    %c2_44 = arith.constant 2 : index
    %c0_45 = arith.constant 0 : index
    %c0_46 = arith.constant 0 : index
    %47 = vector.load %arg3[%c1_43, %c2_44, %c0_45, %c0_46] : memref<3x3x8x12xbf16, #tpu.memory_space<vmem>>, vector<1x1x8x12xbf16>
    %48 = vector.shape_cast %47 : vector<1x1x8x12xbf16> to vector<8x12xbf16>
    %cst_47 = arith.constant dense<0.000000e+00> : vector<8x256xf32>
    %49 = tpu.matmul %48, %46, %cst_47 {dimension_numbers = #tpu.dot_dimension_numbers<[1], [0], [0], [1], [0, 0, 1, 1], [], []>} : vector<8x12xbf16>, vector<12x256xbf16>, vector<8x256xf32> -> vector<8x256xf32>
    %50 = arith.addf %42, %49 : vector<8x256xf32>
    %c2_i32 = arith.constant 2 : i32
    %51 = arith.addi %1, %c2_i32 : i32
    %c0_48 = arith.constant 0 : index
    %52 = arith.index_cast %51 : i32 to index
    %c0_49 = arith.constant 0 : index
    %c0_50 = arith.constant 0 : index
    %53 = vector.load %arg2[%c0_48, %52, %c0_49, %c0_50] : memref<1x18x12x288xbf16, #tpu.memory_space<vmem>>, vector<1x1x12x256xbf16>
    %54 = vector.shape_cast %53 : vector<1x1x12x256xbf16> to vector<12x256xbf16>
    %c2_51 = arith.constant 2 : index
    %c0_52 = arith.constant 0 : index
    %c0_53 = arith.constant 0 : index
    %c0_54 = arith.constant 0 : index
    %55 = vector.load %arg3[%c2_51, %c0_52, %c0_53, %c0_54] : memref<3x3x8x12xbf16, #tpu.memory_space<vmem>>, vector<1x1x8x12xbf16>
    %56 = vector.shape_cast %55 : vector<1x1x8x12xbf16> to vector<8x12xbf16>
    %cst_55 = arith.constant dense<0.000000e+00> : vector<8x256xf32>
    %57 = tpu.matmul %56, %54, %cst_55 {dimension_numbers = #tpu.dot_dimension_numbers<[1], [0], [0], [1], [0, 0, 1, 1], [], []>} : vector<8x12xbf16>, vector<12x256xbf16>, vector<8x256xf32> -> vector<8x256xf32>
    %58 = arith.addf %50, %57 : vector<8x256xf32>
    %c2_i32_56 = arith.constant 2 : i32
    %59 = arith.addi %1, %c2_i32_56 : i32
    %c0_57 = arith.constant 0 : index
    %60 = arith.index_cast %59 : i32 to index
    %c0_58 = arith.constant 0 : index
    %c16_59 = arith.constant 16 : index
    %61 = vector.load %arg2[%c0_57, %60, %c0_58, %c16_59] : memref<1x18x12x288xbf16, #tpu.memory_space<vmem>>, vector<1x1x12x256xbf16>
    %62 = vector.shape_cast %61 : vector<1x1x12x256xbf16> to vector<12x256xbf16>
    %c2_60 = arith.constant 2 : index
    %c1_61 = arith.constant 1 : index
    %c0_62 = arith.constant 0 : index
    %c0_63 = arith.constant 0 : index
    %63 = vector.load %arg3[%c2_60, %c1_61, %c0_62, %c0_63] : memref<3x3x8x12xbf16, #tpu.memory_space<vmem>>, vector<1x1x8x12xbf16>
    %64 = vector.shape_cast %63 : vector<1x1x8x12xbf16> to vector<8x12xbf16>
    %cst_64 = arith.constant dense<0.000000e+00> : vector<8x256xf32>
    %65 = tpu.matmul %64, %62, %cst_64 {dimension_numbers = #tpu.dot_dimension_numbers<[1], [0], [0], [1], [0, 0, 1, 1], [], []>} : vector<8x12xbf16>, vector<12x256xbf16>, vector<8x256xf32> -> vector<8x256xf32>
    %66 = arith.addf %58, %65 : vector<8x256xf32>
    %c2_i32_65 = arith.constant 2 : i32
    %67 = arith.addi %1, %c2_i32_65 : i32
    %c0_66 = arith.constant 0 : index
    %68 = arith.index_cast %67 : i32 to index
    %c0_67 = arith.constant 0 : index
    %c32_68 = arith.constant 32 : index
    %69 = vector.load %arg2[%c0_66, %68, %c0_67, %c32_68] : memref<1x18x12x288xbf16, #tpu.memory_space<vmem>>, vector<1x1x12x256xbf16>
    %70 = vector.shape_cast %69 : vector<1x1x12x256xbf16> to vector<12x256xbf16>
    %c2_69 = arith.constant 2 : index
    %c2_70 = arith.constant 2 : index
    %c0_71 = arith.constant 0 : index
    %c0_72 = arith.constant 0 : index
    %71 = vector.load %arg3[%c2_69, %c2_70, %c0_71, %c0_72] : memref<3x3x8x12xbf16, #tpu.memory_space<vmem>>, vector<1x1x8x12xbf16>
    %72 = vector.shape_cast %71 : vector<1x1x8x12xbf16> to vector<8x12xbf16>
    %cst_73 = arith.constant dense<0.000000e+00> : vector<8x256xf32>
    %73 = tpu.matmul %72, %70, %cst_73 {dimension_numbers = #tpu.dot_dimension_numbers<[1], [0], [0], [1], [0, 0, 1, 1], [], []>} : vector<8x12xbf16>, vector<12x256xbf16>, vector<8x256xf32> -> vector<8x256xf32>
    %74 = arith.addf %66, %73 : vector<8x256xf32>
    %75 = arith.truncf %74 : vector<8x256xf32> to vector<8x256xbf16>
    %c0_74 = arith.constant 0 : index
    %c0_75 = arith.constant 0 : index
    %76 = vector.load %arg4[%c0_74, %c0_75] : memref<8x2048xbf16, #tpu.memory_space<vmem>>, vector<8x256xbf16>
    tpu.vector_store %arg4[%c0_74, %c0_75], %75 {strides = array<i32>} : memref<8x2048xbf16, #tpu.memory_space<vmem>>, vector<8x256xbf16>,
    %cst_76 = arith.constant dense<0.000000e+00> : vector<8xf32>
    %77 = vector.multi_reduction <add>, %74, %cst_76 [1] : vector<8x256xf32> to vector<8xf32>
    %78 = vector.shape_cast %77 : vector<8xf32> to vector<8x1xf32>
    %cst_77 = arith.constant 3.906250e-03 : f32
    %79 = vector.broadcast %cst_77 : f32 to vector<8x1xf32>
    %80 = arith.mulf %78, %79 : vector<8x1xf32>
    %81 = vector.broadcast %80 : vector<8x1xf32> to vector<8x256xf32>
    %82 = arith.subf %74, %81 : vector<8x256xf32>
    %c0_78 = arith.constant 0 : index
    %c0_79 = arith.constant 0 : index
    %c0_80 = arith.constant 0 : index
    %83 = vector.load %arg5[%c0_78, %c0_79, %c0_80] : memref<8x8x1xf32, #tpu.memory_space<vmem>>, vector<1x8x1xf32>
    %84 = vector.shape_cast %83 : vector<1x8x1xf32> to vector<8x1xf32>
    %85 = vector.shape_cast %78 : vector<8x1xf32> to vector<1x8x1xf32>
    tpu.vector_store %arg5[%c0_78, %c0_79, %c0_80], %85 {strides = array<i32>} : memref<8x8x1xf32, #tpu.memory_space<vmem>>, vector<1x8x1xf32>,
    %86 = arith.mulf %82, %82 : vector<8x256xf32>
    %cst_81 = arith.constant dense<0.000000e+00> : vector<8xf32>
    %87 = vector.multi_reduction <add>, %86, %cst_81 [1] : vector<8x256xf32> to vector<8xf32>
    %88 = vector.shape_cast %87 : vector<8xf32> to vector<8x1xf32>
    %c0_82 = arith.constant 0 : index
    %c0_83 = arith.constant 0 : index
    %c0_84 = arith.constant 0 : index
    %89 = vector.load %arg6[%c0_82, %c0_83, %c0_84] : memref<8x8x1xf32, #tpu.memory_space<vmem>>, vector<1x8x1xf32>
    %90 = vector.shape_cast %89 : vector<1x8x1xf32> to vector<8x1xf32>
    %91 = vector.shape_cast %88 : vector<8x1xf32> to vector<1x8x1xf32>
    tpu.vector_store %arg6[%c0_82, %c0_83, %c0_84], %91 {strides = array<i32>} : memref<8x8x1xf32, #tpu.memory_space<vmem>>, vector<1x8x1xf32>,
    %c8_i32_85 = arith.constant 8 : i32
    %92 = arith.muli %arg1, %c8_i32_85 : i32
    %c1_i32_86 = arith.constant 1 : i32
    %93 = arith.addi %92, %c1_i32_86 : i32
    %cst_87 = arith.constant 0.000000e+00 : f32
    %94 = vector.broadcast %cst_87 : f32 to vector<8x256xf32>
    %c0_i32_88 = arith.constant 0 : i32
    %95 = arith.addi %93, %c0_i32_88 : i32
    %c0_89 = arith.constant 0 : index
    %96 = arith.index_cast %95 : i32 to index
    %c0_90 = arith.constant 0 : index
    %c0_91 = arith.constant 0 : index
    %97 = vector.load %arg2[%c0_89, %96, %c0_90, %c0_91] : memref<1x18x12x288xbf16, #tpu.memory_space<vmem>>, vector<1x1x12x256xbf16>
    %98 = vector.shape_cast %97 : vector<1x1x12x256xbf16> to vector<12x256xbf16>
    %c0_92 = arith.constant 0 : index
    %c0_93 = arith.constant 0 : index
    %c0_94 = arith.constant 0 : index
    %c0_95 = arith.constant 0 : index
    %99 = vector.load %arg3[%c0_92, %c0_93, %c0_94, %c0_95] : memref<3x3x8x12xbf16, #tpu.memory_space<vmem>>, vector<1x1x8x12xbf16>
    %100 = vector.shape_cast %99 : vector<1x1x8x12xbf16> to vector<8x12xbf16>
    %cst_96 = arith.constant dense<0.000000e+00> : vector<8x256xf32>
    %101 = tpu.matmul %100, %98, %cst_96 {dimension_numbers = #tpu.dot_dimension_numbers<[1], [0], [0], [1], [0, 0, 1, 1], [], []>} : vector<8x12xbf16>, vector<12x256xbf16>, vector<8x256xf32> -> vector<8x256xf32>
    %102 = arith.addf %94, %101 : vector<8x256xf32>
    %c0_i32_97 = arith.constant 0 : i32
    %103 = arith.addi %93, %c0_i32_97 : i32
    %c0_98 = arith.constant 0 : index
    %104 = arith.index_cast %103 : i32 to index
    %c0_99 = arith.constant 0 : index
    %c16_100 = arith.constant 16 : index
    %105 = vector.load %arg2[%c0_98, %104, %c0_99, %c16_100] : memref<1x18x12x288xbf16, #tpu.memory_space<vmem>>, vector<1x1x12x256xbf16>
    %106 = vector.shape_cast %105 : vector<1x1x12x256xbf16> to vector<12x256xbf16>
    %c0_101 = arith.constant 0 : index
    %c1_102 = arith.constant 1 : index
    %c0_103 = arith.constant 0 : index
    %c0_104 = arith.constant 0 : index
    %107 = vector.load %arg3[%c0_101, %c1_102, %c0_103, %c0_104] : memref<3x3x8x12xbf16, #tpu.memory_space<vmem>>, vector<1x1x8x12xbf16>
    %108 = vector.shape_cast %107 : vector<1x1x8x12xbf16> to vector<8x12xbf16>
    %cst_105 = arith.constant dense<0.000000e+00> : vector<8x256xf32>
    %109 = tpu.matmul %108, %106, %cst_105 {dimension_numbers = #tpu.dot_dimension_numbers<[1], [0], [0], [1], [0, 0, 1, 1], [], []>} : vector<8x12xbf16>, vector<12x256xbf16>, vector<8x256xf32> -> vector<8x256xf32>
    %110 = arith.addf %102, %109 : vector<8x256xf32>
    %c0_i32_106 = arith.constant 0 : i32
    %111 = arith.addi %93, %c0_i32_106 : i32
    %c0_107 = arith.constant 0 : index
    %112 = arith.index_cast %111 : i32 to index
    %c0_108 = arith.constant 0 : index
    %c32_109 = arith.constant 32 : index
    %113 = vector.load %arg2[%c0_107, %112, %c0_108, %c32_109] : memref<1x18x12x288xbf16, #tpu.memory_space<vmem>>, vector<1x1x12x256xbf16>
    %114 = vector.shape_cast %113 : vector<1x1x12x256xbf16> to vector<12x256xbf16>
    %c0_110 = arith.constant 0 : index
    %c2_111 = arith.constant 2 : index
    %c0_112 = arith.constant 0 : index
    %c0_113 = arith.constant 0 : index
    %115 = vector.load %arg3[%c0_110, %c2_111, %c0_112, %c0_113] : memref<3x3x8x12xbf16, #tpu.memory_space<vmem>>, vector<1x1x8x12xbf16>
    %116 = vector.shape_cast %115 : vector<1x1x8x12xbf16> to vector<8x12xbf16>
    %cst_114 = arith.constant dense<0.000000e+00> : vector<8x256xf32>
    %117 = tpu.matmul %116, %114, %cst_114 {dimension_numbers = #tpu.dot_dimension_numbers<[1], [0], [0], [1], [0, 0, 1, 1], [], []>} : vector<8x12xbf16>, vector<12x256xbf16>, vector<8x256xf32> -> vector<8x256xf32>
    %118 = arith.addf %110, %117 : vector<8x256xf32>
    %c1_i32_115 = arith.constant 1 : i32
    %119 = arith.addi %93, %c1_i32_115 : i32
    %c0_116 = arith.constant 0 : index
    %120 = arith.index_cast %119 : i32 to index
    %c0_117 = arith.constant 0 : index
    %c0_118 = arith.constant 0 : index
    %121 = vector.load %arg2[%c0_116, %120, %c0_117, %c0_118] : memref<1x18x12x288xbf16, #tpu.memory_space<vmem>>, vector<1x1x12x256xbf16>
    %122 = vector.shape_cast %121 : vector<1x1x12x256xbf16> to vector<12x256xbf16>
    %c1_119 = arith.constant 1 : index
    %c0_120 = arith.constant 0 : index
    %c0_121 = arith.constant 0 : index
    %c0_122 = arith.constant 0 : index
    %123 = vector.load %arg3[%c1_119, %c0_120, %c0_121, %c0_122] : memref<3x3x8x12xbf16, #tpu.memory_space<vmem>>, vector<1x1x8x12xbf16>
    %124 = vector.shape_cast %123 : vector<1x1x8x12xbf16> to vector<8x12xbf16>
    %cst_123 = arith.constant dense<0.000000e+00> : vector<8x256xf32>
    %125 = tpu.matmul %124, %122, %cst_123 {dimension_numbers = #tpu.dot_dimension_numbers<[1], [0], [0], [1], [0, 0, 1, 1], [], []>} : vector<8x12xbf16>, vector<12x256xbf16>, vector<8x256xf32> -> vector<8x256xf32>
    %126 = arith.addf %118, %125 : vector<8x256xf32>
    %c1_i32_124 = arith.constant 1 : i32
    %127 = arith.addi %93, %c1_i32_124 : i32
    %c0_125 = arith.constant 0 : index
    %128 = arith.index_cast %127 : i32 to index
    %c0_126 = arith.constant 0 : index
    %c16_127 = arith.constant 16 : index
    %129 = vector.load %arg2[%c0_125, %128, %c0_126, %c16_127] : memref<1x18x12x288xbf16, #tpu.memory_space<vmem>>, vector<1x1x12x256xbf16>
    %130 = vector.shape_cast %129 : vector<1x1x12x256xbf16> to vector<12x256xbf16>
    %c1_128 = arith.constant 1 : index
    %c1_129 = arith.constant 1 : index
    %c0_130 = arith.constant 0 : index
    %c0_131 = arith.constant 0 : index
    %131 = vector.load %arg3[%c1_128, %c1_129, %c0_130, %c0_131] : memref<3x3x8x12xbf16, #tpu.memory_space<vmem>>, vector<1x1x8x12xbf16>
    %132 = vector.shape_cast %131 : vector<1x1x8x12xbf16> to vector<8x12xbf16>
    %cst_132 = arith.constant dense<0.000000e+00> : vector<8x256xf32>
    %133 = tpu.matmul %132, %130, %cst_132 {dimension_numbers = #tpu.dot_dimension_numbers<[1], [0], [0], [1], [0, 0, 1, 1], [], []>} : vector<8x12xbf16>, vector<12x256xbf16>, vector<8x256xf32> -> vector<8x256xf32>
    %134 = arith.addf %126, %133 : vector<8x256xf32>
    %c1_i32_133 = arith.constant 1 : i32
    %135 = arith.addi %93, %c1_i32_133 : i32
    %c0_134 = arith.constant 0 : index
    %136 = arith.index_cast %135 : i32 to index
    %c0_135 = arith.constant 0 : index
    %c32_136 = arith.constant 32 : index
    %137 = vector.load %arg2[%c0_134, %136, %c0_135, %c32_136] : memref<1x18x12x288xbf16, #tpu.memory_space<vmem>>, vector<1x1x12x256xbf16>
    %138 = vector.shape_cast %137 : vector<1x1x12x256xbf16> to vector<12x256xbf16>
    %c1_137 = arith.constant 1 : index
    %c2_138 = arith.constant 2 : index
    %c0_139 = arith.constant 0 : index
    %c0_140 = arith.constant 0 : index
    %139 = vector.load %arg3[%c1_137, %c2_138, %c0_139, %c0_140] : memref<3x3x8x12xbf16, #tpu.memory_space<vmem>>, vector<1x1x8x12xbf16>
    %140 = vector.shape_cast %139 : vector<1x1x8x12xbf16> to vector<8x12xbf16>
    %cst_141 = arith.constant dense<0.000000e+00> : vector<8x256xf32>
    %141 = tpu.matmul %140, %138, %cst_141 {dimension_numbers = #tpu.dot_dimension_numbers<[1], [0], [0], [1], [0, 0, 1, 1], [], []>} : vector<8x12xbf16>, vector<12x256xbf16>, vector<8x256xf32> -> vector<8x256xf32>
    %142 = arith.addf %134, %141 : vector<8x256xf32>
    %c2_i32_142 = arith.constant 2 : i32
    %143 = arith.addi %93, %c2_i32_142 : i32
    %c0_143 = arith.constant 0 : index
    %144 = arith.index_cast %143 : i32 to index
    %c0_144 = arith.constant 0 : index
    %c0_145 = arith.constant 0 : index
    %145 = vector.load %arg2[%c0_143, %144, %c0_144, %c0_145] : memref<1x18x12x288xbf16, #tpu.memory_space<vmem>>, vector<1x1x12x256xbf16>
    %146 = vector.shape_cast %145 : vector<1x1x12x256xbf16> to vector<12x256xbf16>
    %c2_146 = arith.constant 2 : index
    %c0_147 = arith.constant 0 : index
    %c0_148 = arith.constant 0 : index
    %c0_149 = arith.constant 0 : index
    %147 = vector.load %arg3[%c2_146, %c0_147, %c0_148, %c0_149] : memref<3x3x8x12xbf16, #tpu.memory_space<vmem>>, vector<1x1x8x12xbf16>
    %148 = vector.shape_cast %147 : vector<1x1x8x12xbf16> to vector<8x12xbf16>
    %cst_150 = arith.constant dense<0.000000e+00> : vector<8x256xf32>
    %149 = tpu.matmul %148, %146, %cst_150 {dimension_numbers = #tpu.dot_dimension_numbers<[1], [0], [0], [1], [0, 0, 1, 1], [], []>} : vector<8x12xbf16>, vector<12x256xbf16>, vector<8x256xf32> -> vector<8x256xf32>
    %150 = arith.addf %142, %149 : vector<8x256xf32>
    %c2_i32_151 = arith.constant 2 : i32
    %151 = arith.addi %93, %c2_i32_151 : i32
    %c0_152 = arith.constant 0 : index
    %152 = arith.index_cast %151 : i32 to index
    %c0_153 = arith.constant 0 : index
    %c16_154 = arith.constant 16 : index
    %153 = vector.load %arg2[%c0_152, %152, %c0_153, %c16_154] : memref<1x18x12x288xbf16, #tpu.memory_space<vmem>>, vector<1x1x12x256xbf16>
    %154 = vector.shape_cast %153 : vector<1x1x12x256xbf16> to vector<12x256xbf16>
    %c2_155 = arith.constant 2 : index
    %c1_156 = arith.constant 1 : index
    %c0_157 = arith.constant 0 : index
    %c0_158 = arith.constant 0 : index
    %155 = vector.load %arg3[%c2_155, %c1_156, %c0_157, %c0_158] : memref<3x3x8x12xbf16, #tpu.memory_space<vmem>>, vector<1x1x8x12xbf16>
    %156 = vector.shape_cast %155 : vector<1x1x8x12xbf16> to vector<8x12xbf16>
    %cst_159 = arith.constant dense<0.000000e+00> : vector<8x256xf32>
    %157 = tpu.matmul %156, %154, %cst_159 {dimension_numbers = #tpu.dot_dimension_numbers<[1], [0], [0], [1], [0, 0, 1, 1], [], []>} : vector<8x12xbf16>, vector<12x256xbf16>, vector<8x256xf32> -> vector<8x256xf32>
    %158 = arith.addf %150, %157 : vector<8x256xf32>
    %c2_i32_160 = arith.constant 2 : i32
    %159 = arith.addi %93, %c2_i32_160 : i32
    %c0_161 = arith.constant 0 : index
    %160 = arith.index_cast %159 : i32 to index
    %c0_162 = arith.constant 0 : index
    %c32_163 = arith.constant 32 : index
    %161 = vector.load %arg2[%c0_161, %160, %c0_162, %c32_163] : memref<1x18x12x288xbf16, #tpu.memory_space<vmem>>, vector<1x1x12x256xbf16>
    %162 = vector.shape_cast %161 : vector<1x1x12x256xbf16> to vector<12x256xbf16>
    %c2_164 = arith.constant 2 : index
    %c2_165 = arith.constant 2 : index
    %c0_166 = arith.constant 0 : index
    %c0_167 = arith.constant 0 : index
    %163 = vector.load %arg3[%c2_164, %c2_165, %c0_166, %c0_167] : memref<3x3x8x12xbf16, #tpu.memory_space<vmem>>, vector<1x1x8x12xbf16>
    %164 = vector.shape_cast %163 : vector<1x1x8x12xbf16> to vector<8x12xbf16>
    %cst_168 = arith.constant dense<0.000000e+00> : vector<8x256xf32>
    %165 = tpu.matmul %164, %162, %cst_168 {dimension_numbers = #tpu.dot_dimension_numbers<[1], [0], [0], [1], [0, 0, 1, 1], [], []>} : vector<8x12xbf16>, vector<12x256xbf16>, vector<8x256xf32> -> vector<8x256xf32>
    %166 = arith.addf %158, %165 : vector<8x256xf32>
    %167 = arith.truncf %166 : vector<8x256xf32> to vector<8x256xbf16>
    %c0_169 = arith.constant 0 : index
    %c256 = arith.constant 256 : index
    %168 = vector.load %arg4[%c0_169, %c256] : memref<8x2048xbf16, #tpu.memory_space<vmem>>, vector<8x256xbf16>
    tpu.vector_store %arg4[%c0_169, %c256], %167 {strides = array<i32>} : memref<8x2048xbf16, #tpu.memory_space<vmem>>, vector<8x256xbf16>,
    %cst_170 = arith.constant dense<0.000000e+00> : vector<8xf32>
    %169 = vector.multi_reduction <add>, %166, %cst_170 [1] : vector<8x256xf32> to vector<8xf32>
    %170 = vector.shape_cast %169 : vector<8xf32> to vector<8x1xf32>
    %cst_171 = arith.constant 3.906250e-03 : f32
    %171 = vector.broadcast %cst_171 : f32 to vector<8x1xf32>
    %172 = arith.mulf %170, %171 : vector<8x1xf32>
    %173 = vector.broadcast %172 : vector<8x1xf32> to vector<8x256xf32>
    %174 = arith.subf %166, %173 : vector<8x256xf32>
    %c1_172 = arith.constant 1 : index
    %c0_173 = arith.constant 0 : index
    %c0_174 = arith.constant 0 : index
    %175 = vector.load %arg5[%c1_172, %c0_173, %c0_174] : memref<8x8x1xf32, #tpu.memory_space<vmem>>, vector<1x8x1xf32>
    %176 = vector.shape_cast %175 : vector<1x8x1xf32> to vector<8x1xf32>
    %177 = vector.shape_cast %170 : vector<8x1xf32> to vector<1x8x1xf32>
    tpu.vector_store %arg5[%c1_172, %c0_173, %c0_174], %177 {strides = array<i32>} : memref<8x8x1xf32, #tpu.memory_space<vmem>>, vector<1x8x1xf32>,
    %178 = arith.mulf %174, %174 : vector<8x256xf32>
    %cst_175 = arith.constant dense<0.000000e+00> : vector<8xf32>
    %179 = vector.multi_reduction <add>, %178, %cst_175 [1] : vector<8x256xf32> to vector<8xf32>
    %180 = vector.shape_cast %179 : vector<8xf32> to vector<8x1xf32>
    %c1_176 = arith.constant 1 : index
    %c0_177 = arith.constant 0 : index
    %c0_178 = arith.constant 0 : index
    %181 = vector.load %arg6[%c1_176, %c0_177, %c0_178] : memref<8x8x1xf32, #tpu.memory_space<vmem>>, vector<1x8x1xf32>
    %182 = vector.shape_cast %181 : vector<1x8x1xf32> to vector<8x1xf32>
    %183 = vector.shape_cast %180 : vector<8x1xf32> to vector<1x8x1xf32>
    tpu.vector_store %arg6[%c1_176, %c0_177, %c0_178], %183 {strides = array<i32>} : memref<8x8x1xf32, #tpu.memory_space<vmem>>, vector<1x8x1xf32>,
    %c8_i32_179 = arith.constant 8 : i32
    %184 = arith.muli %arg1, %c8_i32_179 : i32
    %c2_i32_180 = arith.constant 2 : i32
    %185 = arith.addi %184, %c2_i32_180 : i32
    %cst_181 = arith.constant 0.000000e+00 : f32
    %186 = vector.broadcast %cst_181 : f32 to vector<8x256xf32>
    %c0_i32_182 = arith.constant 0 : i32
    %187 = arith.addi %185, %c0_i32_182 : i32
    %c0_183 = arith.constant 0 : index
    %188 = arith.index_cast %187 : i32 to index
    %c0_184 = arith.constant 0 : index
    %c0_185 = arith.constant 0 : index
    %189 = vector.load %arg2[%c0_183, %188, %c0_184, %c0_185] : memref<1x18x12x288xbf16, #tpu.memory_space<vmem>>, vector<1x1x12x256xbf16>
    %190 = vector.shape_cast %189 : vector<1x1x12x256xbf16> to vector<12x256xbf16>
    %c0_186 = arith.constant 0 : index
    %c0_187 = arith.constant 0 : index
    %c0_188 = arith.constant 0 : index
    %c0_189 = arith.constant 0 : index
    %191 = vector.load %arg3[%c0_186, %c0_187, %c0_188, %c0_189] : memref<3x3x8x12xbf16, #tpu.memory_space<vmem>>, vector<1x1x8x12xbf16>
    %192 = vector.shape_cast %191 : vector<1x1x8x12xbf16> to vector<8x12xbf16>
    %cst_190 = arith.constant dense<0.000000e+00> : vector<8x256xf32>
    %193 = tpu.matmul %192, %190, %cst_190 {dimension_numbers = #tpu.dot_dimension_numbers<[1], [0], [0], [1], [0, 0, 1, 1], [], []>} : vector<8x12xbf16>, vector<12x256xbf16>, vector<8x256xf32> -> vector<8x256xf32>
    %194 = arith.addf %186, %193 : vector<8x256xf32>
    %c0_i32_191 = arith.constant 0 : i32
    %195 = arith.addi %185, %c0_i32_191 : i32
    %c0_192 = arith.constant 0 : index
    %196 = arith.index_cast %195 : i32 to index
    %c0_193 = arith.constant 0 : index
    %c16_194 = arith.constant 16 : index
    %197 = vector.load %arg2[%c0_192, %196, %c0_193, %c16_194] : memref<1x18x12x288xbf16, #tpu.memory_space<vmem>>, vector<1x1x12x256xbf16>
    %198 = vector.shape_cast %197 : vector<1x1x12x256xbf16> to vector<12x256xbf16>
    %c0_195 = arith.constant 0 : index
    %c1_196 = arith.constant 1 : index
    %c0_197 = arith.constant 0 : index
    %c0_198 = arith.constant 0 : index
    %199 = vector.load %arg3[%c0_195, %c1_196, %c0_197, %c0_198] : memref<3x3x8x12xbf16, #tpu.memory_space<vmem>>, vector<1x1x8x12xbf16>
    %200 = vector.shape_cast %199 : vector<1x1x8x12xbf16> to vector<8x12xbf16>
    %cst_199 = arith.constant dense<0.000000e+00> : vector<8x256xf32>
    %201 = tpu.matmul %200, %198, %cst_199 {dimension_numbers = #tpu.dot_dimension_numbers<[1], [0], [0], [1], [0, 0, 1, 1], [], []>} : vector<8x12xbf16>, vector<12x256xbf16>, vector<8x256xf32> -> vector<8x256xf32>
    %202 = arith.addf %194, %201 : vector<8x256xf32>
    %c0_i32_200 = arith.constant 0 : i32
    %203 = arith.addi %185, %c0_i32_200 : i32
    %c0_201 = arith.constant 0 : index
    %204 = arith.index_cast %203 : i32 to index
    %c0_202 = arith.constant 0 : index
    %c32_203 = arith.constant 32 : index
    %205 = vector.load %arg2[%c0_201, %204, %c0_202, %c32_203] : memref<1x18x12x288xbf16, #tpu.memory_space<vmem>>, vector<1x1x12x256xbf16>
    %206 = vector.shape_cast %205 : vector<1x1x12x256xbf16> to vector<12x256xbf16>
    %c0_204 = arith.constant 0 : index
    %c2_205 = arith.constant 2 : index
    %c0_206 = arith.constant 0 : index
    %c0_207 = arith.constant 0 : index
    %207 = vector.load %arg3[%c0_204, %c2_205, %c0_206, %c0_207] : memref<3x3x8x12xbf16, #tpu.memory_space<vmem>>, vector<1x1x8x12xbf16>
    %208 = vector.shape_cast %207 : vector<1x1x8x12xbf16> to vector<8x12xbf16>
    %cst_208 = arith.constant dense<0.000000e+00> : vector<8x256xf32>
    %209 = tpu.matmul %208, %206, %cst_208 {dimension_numbers = #tpu.dot_dimension_numbers<[1], [0], [0], [1], [0, 0, 1, 1], [], []>} : vector<8x12xbf16>, vector<12x256xbf16>, vector<8x256xf32> -> vector<8x256xf32>
    %210 = arith.addf %202, %209 : vector<8x256xf32>
    %c1_i32_209 = arith.constant 1 : i32
    %211 = arith.addi %185, %c1_i32_209 : i32
    %c0_210 = arith.constant 0 : index
    %212 = arith.index_cast %211 : i32 to index
    %c0_211 = arith.constant 0 : index
    %c0_212 = arith.constant 0 : index
    %213 = vector.load %arg2[%c0_210, %212, %c0_211, %c0_212] : memref<1x18x12x288xbf16, #tpu.memory_space<vmem>>, vector<1x1x12x256xbf16>
    %214 = vector.shape_cast %213 : vector<1x1x12x256xbf16> to vector<12x256xbf16>
    %c1_213 = arith.constant 1 : index
    %c0_214 = arith.constant 0 : index
    %c0_215 = arith.constant 0 : index
    %c0_216 = arith.constant 0 : index
    %215 = vector.load %arg3[%c1_213, %c0_214, %c0_215, %c0_216] : memref<3x3x8x12xbf16, #tpu.memory_space<vmem>>, vector<1x1x8x12xbf16>
    %216 = vector.shape_cast %215 : vector<1x1x8x12xbf16> to vector<8x12xbf16>
    %cst_217 = arith.constant dense<0.000000e+00> : vector<8x256xf32>
    %217 = tpu.matmul %216, %214, %cst_217 {dimension_numbers = #tpu.dot_dimension_numbers<[1], [0], [0], [1], [0, 0, 1, 1], [], []>} : vector<8x12xbf16>, vector<12x256xbf16>, vector<8x256xf32> -> vector<8x256xf32>
    %218 = arith.addf %210, %217 : vector<8x256xf32>
    %c1_i32_218 = arith.constant 1 : i32
    %219 = arith.addi %185, %c1_i32_218 : i32
    %c0_219 = arith.constant 0 : index
    %220 = arith.index_cast %219 : i32 to index
    %c0_220 = arith.constant 0 : index
    %c16_221 = arith.constant 16 : index
    %221 = vector.load %arg2[%c0_219, %220, %c0_220, %c16_221] : memref<1x18x12x288xbf16, #tpu.memory_space<vmem>>, vector<1x1x12x256xbf16>
    %222 = vector.shape_cast %221 : vector<1x1x12x256xbf16> to vector<12x256xbf16>
    %c1_222 = arith.constant 1 : index
    %c1_223 = arith.constant 1 : index
    %c0_224 = arith.constant 0 : index
    %c0_225 = arith.constant 0 : index
    %223 = vector.load %arg3[%c1_222, %c1_223, %c0_224, %c0_225] : memref<3x3x8x12xbf16, #tpu.memory_space<vmem>>, vector<1x1x8x12xbf16>
    %224 = vector.shape_cast %223 : vector<1x1x8x12xbf16> to vector<8x12xbf16>
    %cst_226 = arith.constant dense<0.000000e+00> : vector<8x256xf32>
    %225 = tpu.matmul %224, %222, %cst_226 {dimension_numbers = #tpu.dot_dimension_numbers<[1], [0], [0], [1], [0, 0, 1, 1], [], []>} : vector<8x12xbf16>, vector<12x256xbf16>, vector<8x256xf32> -> vector<8x256xf32>
    %226 = arith.addf %218, %225 : vector<8x256xf32>
    %c1_i32_227 = arith.constant 1 : i32
    %227 = arith.addi %185, %c1_i32_227 : i32
    %c0_228 = arith.constant 0 : index
    %228 = arith.index_cast %227 : i32 to index
    %c0_229 = arith.constant 0 : index
    %c32_230 = arith.constant 32 : index
    %229 = vector.load %arg2[%c0_228, %228, %c0_229, %c32_230] : memref<1x18x12x288xbf16, #tpu.memory_space<vmem>>, vector<1x1x12x256xbf16>
    %230 = vector.shape_cast %229 : vector<1x1x12x256xbf16> to vector<12x256xbf16>
    %c1_231 = arith.constant 1 : index
    %c2_232 = arith.constant 2 : index
    %c0_233 = arith.constant 0 : index
    %c0_234 = arith.constant 0 : index
    %231 = vector.load %arg3[%c1_231, %c2_232, %c0_233, %c0_234] : memref<3x3x8x12xbf16, #tpu.memory_space<vmem>>, vector<1x1x8x12xbf16>
    %232 = vector.shape_cast %231 : vector<1x1x8x12xbf16> to vector<8x12xbf16>
    %cst_235 = arith.constant dense<0.000000e+00> : vector<8x256xf32>
    %233 = tpu.matmul %232, %230, %cst_235 {dimension_numbers = #tpu.dot_dimension_numbers<[1], [0], [0], [1], [0, 0, 1, 1], [], []>} : vector<8x12xbf16>, vector<12x256xbf16>, vector<8x256xf32> -> vector<8x256xf32>
    %234 = arith.addf %226, %233 : vector<8x256xf32>
    %c2_i32_236 = arith.constant 2 : i32
    %235 = arith.addi %185, %c2_i32_236 : i32
    %c0_237 = arith.constant 0 : index
    %236 = arith.index_cast %235 : i32 to index
    %c0_238 = arith.constant 0 : index
    %c0_239 = arith.constant 0 : index
    %237 = vector.load %arg2[%c0_237, %236, %c0_238, %c0_239] : memref<1x18x12x288xbf16, #tpu.memory_space<vmem>>, vector<1x1x12x256xbf16>
    %238 = vector.shape_cast %237 : vector<1x1x12x256xbf16> to vector<12x256xbf16>
    %c2_240 = arith.constant 2 : index
    %c0_241 = arith.constant 0 : index
    %c0_242 = arith.constant 0 : index
    %c0_243 = arith.constant 0 : index
    %239 = vector.load %arg3[%c2_240, %c0_241, %c0_242, %c0_243] : memref<3x3x8x12xbf16, #tpu.memory_space<vmem>>, vector<1x1x8x12xbf16>
    %240 = vector.shape_cast %239 : vector<1x1x8x12xbf16> to vector<8x12xbf16>
    %cst_244 = arith.constant dense<0.000000e+00> : vector<8x256xf32>
    %241 = tpu.matmul %240, %238, %cst_244 {dimension_numbers = #tpu.dot_dimension_numbers<[1], [0], [0], [1], [0, 0, 1, 1], [], []>} : vector<8x12xbf16>, vector<12x256xbf16>, vector<8x256xf32> -> vector<8x256xf32>
    %242 = arith.addf %234, %241 : vector<8x256xf32>
    %c2_i32_245 = arith.constant 2 : i32
    %243 = arith.addi %185, %c2_i32_245 : i32
    %c0_246 = arith.constant 0 : index
    %244 = arith.index_cast %243 : i32 to index
    %c0_247 = arith.constant 0 : index
    %c16_248 = arith.constant 16 : index
    %245 = vector.load %arg2[%c0_246, %244, %c0_247, %c16_248] : memref<1x18x12x288xbf16, #tpu.memory_space<vmem>>, vector<1x1x12x256xbf16>
    %246 = vector.shape_cast %245 : vector<1x1x12x256xbf16> to vector<12x256xbf16>
    %c2_249 = arith.constant 2 : index
    %c1_250 = arith.constant 1 : index
    %c0_251 = arith.constant 0 : index
    %c0_252 = arith.constant 0 : index
    %247 = vector.load %arg3[%c2_249, %c1_250, %c0_251, %c0_252] : memref<3x3x8x12xbf16, #tpu.memory_space<vmem>>, vector<1x1x8x12xbf16>
    %248 = vector.shape_cast %247 : vector<1x1x8x12xbf16> to vector<8x12xbf16>
    %cst_253 = arith.constant dense<0.000000e+00> : vector<8x256xf32>
    %249 = tpu.matmul %248, %246, %cst_253 {dimension_numbers = #tpu.dot_dimension_numbers<[1], [0], [0], [1], [0, 0, 1, 1], [], []>} : vector<8x12xbf16>, vector<12x256xbf16>, vector<8x256xf32> -> vector<8x256xf32>
    %250 = arith.addf %242, %249 : vector<8x256xf32>
    %c2_i32_254 = arith.constant 2 : i32
    %251 = arith.addi %185, %c2_i32_254 : i32
    %c0_255 = arith.constant 0 : index
    %252 = arith.index_cast %251 : i32 to index
    %c0_256 = arith.constant 0 : index
    %c32_257 = arith.constant 32 : index
    %253 = vector.load %arg2[%c0_255, %252, %c0_256, %c32_257] : memref<1x18x12x288xbf16, #tpu.memory_space<vmem>>, vector<1x1x12x256xbf16>
    %254 = vector.shape_cast %253 : vector<1x1x12x256xbf16> to vector<12x256xbf16>
    %c2_258 = arith.constant 2 : index
    %c2_259 = arith.constant 2 : index
    %c0_260 = arith.constant 0 : index
    %c0_261 = arith.constant 0 : index
    %255 = vector.load %arg3[%c2_258, %c2_259, %c0_260, %c0_261] : memref<3x3x8x12xbf16, #tpu.memory_space<vmem>>, vector<1x1x8x12xbf16>
    %256 = vector.shape_cast %255 : vector<1x1x8x12xbf16> to vector<8x12xbf16>
    %cst_262 = arith.constant dense<0.000000e+00> : vector<8x256xf32>
    %257 = tpu.matmul %256, %254, %cst_262 {dimension_numbers = #tpu.dot_dimension_numbers<[1], [0], [0], [1], [0, 0, 1, 1], [], []>} : vector<8x12xbf16>, vector<12x256xbf16>, vector<8x256xf32> -> vector<8x256xf32>
    %258 = arith.addf %250, %257 : vector<8x256xf32>
    %259 = arith.truncf %258 : vector<8x256xf32> to vector<8x256xbf16>
    %c0_263 = arith.constant 0 : index
    %c512 = arith.constant 512 : index
    %260 = vector.load %arg4[%c0_263, %c512] : memref<8x2048xbf16, #tpu.memory_space<vmem>>, vector<8x256xbf16>
    tpu.vector_store %arg4[%c0_263, %c512], %259 {strides = array<i32>} : memref<8x2048xbf16, #tpu.memory_space<vmem>>, vector<8x256xbf16>,
    %cst_264 = arith.constant dense<0.000000e+00> : vector<8xf32>
    %261 = vector.multi_reduction <add>, %258, %cst_264 [1] : vector<8x256xf32> to vector<8xf32>
    %262 = vector.shape_cast %261 : vector<8xf32> to vector<8x1xf32>
    %cst_265 = arith.constant 3.906250e-03 : f32
    %263 = vector.broadcast %cst_265 : f32 to vector<8x1xf32>
    %264 = arith.mulf %262, %263 : vector<8x1xf32>
    %265 = vector.broadcast %264 : vector<8x1xf32> to vector<8x256xf32>
    %266 = arith.subf %258, %265 : vector<8x256xf32>
    %c2_266 = arith.constant 2 : index
    %c0_267 = arith.constant 0 : index
    %c0_268 = arith.constant 0 : index
    %267 = vector.load %arg5[%c2_266, %c0_267, %c0_268] : memref<8x8x1xf32, #tpu.memory_space<vmem>>, vector<1x8x1xf32>
    %268 = vector.shape_cast %267 : vector<1x8x1xf32> to vector<8x1xf32>
    %269 = vector.shape_cast %262 : vector<8x1xf32> to vector<1x8x1xf32>
    tpu.vector_store %arg5[%c2_266, %c0_267, %c0_268], %269 {strides = array<i32>} : memref<8x8x1xf32, #tpu.memory_space<vmem>>, vector<1x8x1xf32>,
    %270 = arith.mulf %266, %266 : vector<8x256xf32>
    %cst_269 = arith.constant dense<0.000000e+00> : vector<8xf32>
    %271 = vector.multi_reduction <add>, %270, %cst_269 [1] : vector<8x256xf32> to vector<8xf32>
    %272 = vector.shape_cast %271 : vector<8xf32> to vector<8x1xf32>
    %c2_270 = arith.constant 2 : index
    %c0_271 = arith.constant 0 : index
    %c0_272 = arith.constant 0 : index
    %273 = vector.load %arg6[%c2_270, %c0_271, %c0_272] : memref<8x8x1xf32, #tpu.memory_space<vmem>>, vector<1x8x1xf32>
    %274 = vector.shape_cast %273 : vector<1x8x1xf32> to vector<8x1xf32>
    %275 = vector.shape_cast %272 : vector<8x1xf32> to vector<1x8x1xf32>
    tpu.vector_store %arg6[%c2_270, %c0_271, %c0_272], %275 {strides = array<i32>} : memref<8x8x1xf32, #tpu.memory_space<vmem>>, vector<1x8x1xf32>,
    %c8_i32_273 = arith.constant 8 : i32
    %276 = arith.muli %arg1, %c8_i32_273 : i32
    %c3_i32 = arith.constant 3 : i32
    %277 = arith.addi %276, %c3_i32 : i32
    %cst_274 = arith.constant 0.000000e+00 : f32
    %278 = vector.broadcast %cst_274 : f32 to vector<8x256xf32>
    %c0_i32_275 = arith.constant 0 : i32
    %279 = arith.addi %277, %c0_i32_275 : i32
    %c0_276 = arith.constant 0 : index
    %280 = arith.index_cast %279 : i32 to index
    %c0_277 = arith.constant 0 : index
    %c0_278 = arith.constant 0 : index
    %281 = vector.load %arg2[%c0_276, %280, %c0_277, %c0_278] : memref<1x18x12x288xbf16, #tpu.memory_space<vmem>>, vector<1x1x12x256xbf16>
    %282 = vector.shape_cast %281 : vector<1x1x12x256xbf16> to vector<12x256xbf16>
    %c0_279 = arith.constant 0 : index
    %c0_280 = arith.constant 0 : index
    %c0_281 = arith.constant 0 : index
    %c0_282 = arith.constant 0 : index
    %283 = vector.load %arg3[%c0_279, %c0_280, %c0_281, %c0_282] : memref<3x3x8x12xbf16, #tpu.memory_space<vmem>>, vector<1x1x8x12xbf16>
    %284 = vector.shape_cast %283 : vector<1x1x8x12xbf16> to vector<8x12xbf16>
    %cst_283 = arith.constant dense<0.000000e+00> : vector<8x256xf32>
    %285 = tpu.matmul %284, %282, %cst_283 {dimension_numbers = #tpu.dot_dimension_numbers<[1], [0], [0], [1], [0, 0, 1, 1], [], []>} : vector<8x12xbf16>, vector<12x256xbf16>, vector<8x256xf32> -> vector<8x256xf32>
    %286 = arith.addf %278, %285 : vector<8x256xf32>
    %c0_i32_284 = arith.constant 0 : i32
    %287 = arith.addi %277, %c0_i32_284 : i32
    %c0_285 = arith.constant 0 : index
    %288 = arith.index_cast %287 : i32 to index
    %c0_286 = arith.constant 0 : index
    %c16_287 = arith.constant 16 : index
    %289 = vector.load %arg2[%c0_285, %288, %c0_286, %c16_287] : memref<1x18x12x288xbf16, #tpu.memory_space<vmem>>, vector<1x1x12x256xbf16>
    %290 = vector.shape_cast %289 : vector<1x1x12x256xbf16> to vector<12x256xbf16>
    %c0_288 = arith.constant 0 : index
    %c1_289 = arith.constant 1 : index
    %c0_290 = arith.constant 0 : index
    %c0_291 = arith.constant 0 : index
    %291 = vector.load %arg3[%c0_288, %c1_289, %c0_290, %c0_291] : memref<3x3x8x12xbf16, #tpu.memory_space<vmem>>, vector<1x1x8x12xbf16>
    %292 = vector.shape_cast %291 : vector<1x1x8x12xbf16> to vector<8x12xbf16>
    %cst_292 = arith.constant dense<0.000000e+00> : vector<8x256xf32>
    %293 = tpu.matmul %292, %290, %cst_292 {dimension_numbers = #tpu.dot_dimension_numbers<[1], [0], [0], [1], [0, 0, 1, 1], [], []>} : vector<8x12xbf16>, vector<12x256xbf16>, vector<8x256xf32> -> vector<8x256xf32>
    %294 = arith.addf %286, %293 : vector<8x256xf32>
    %c0_i32_293 = arith.constant 0 : i32
    %295 = arith.addi %277, %c0_i32_293 : i32
    %c0_294 = arith.constant 0 : index
    %296 = arith.index_cast %295 : i32 to index
    %c0_295 = arith.constant 0 : index
    %c32_296 = arith.constant 32 : index
    %297 = vector.load %arg2[%c0_294, %296, %c0_295, %c32_296] : memref<1x18x12x288xbf16, #tpu.memory_space<vmem>>, vector<1x1x12x256xbf16>
    %298 = vector.shape_cast %297 : vector<1x1x12x256xbf16> to vector<12x256xbf16>
    %c0_297 = arith.constant 0 : index
    %c2_298 = arith.constant 2 : index
    %c0_299 = arith.constant 0 : index
    %c0_300 = arith.constant 0 : index
    %299 = vector.load %arg3[%c0_297, %c2_298, %c0_299, %c0_300] : memref<3x3x8x12xbf16, #tpu.memory_space<vmem>>, vector<1x1x8x12xbf16>
    %300 = vector.shape_cast %299 : vector<1x1x8x12xbf16> to vector<8x12xbf16>
    %cst_301 = arith.constant dense<0.000000e+00> : vector<8x256xf32>
    %301 = tpu.matmul %300, %298, %cst_301 {dimension_numbers = #tpu.dot_dimension_numbers<[1], [0], [0], [1], [0, 0, 1, 1], [], []>} : vector<8x12xbf16>, vector<12x256xbf16>, vector<8x256xf32> -> vector<8x256xf32>
    %302 = arith.addf %294, %301 : vector<8x256xf32>
    %c1_i32_302 = arith.constant 1 : i32
    %303 = arith.addi %277, %c1_i32_302 : i32
    %c0_303 = arith.constant 0 : index
    %304 = arith.index_cast %303 : i32 to index
    %c0_304 = arith.constant 0 : index
    %c0_305 = arith.constant 0 : index
    %305 = vector.load %arg2[%c0_303, %304, %c0_304, %c0_305] : memref<1x18x12x288xbf16, #tpu.memory_space<vmem>>, vector<1x1x12x256xbf16>
    %306 = vector.shape_cast %305 : vector<1x1x12x256xbf16> to vector<12x256xbf16>
    %c1_306 = arith.constant 1 : index
    %c0_307 = arith.constant 0 : index
    %c0_308 = arith.constant 0 : index
    %c0_309 = arith.constant 0 : index
    %307 = vector.load %arg3[%c1_306, %c0_307, %c0_308, %c0_309] : memref<3x3x8x12xbf16, #tpu.memory_space<vmem>>, vector<1x1x8x12xbf16>
    %308 = vector.shape_cast %307 : vector<1x1x8x12xbf16> to vector<8x12xbf16>
    %cst_310 = arith.constant dense<0.000000e+00> : vector<8x256xf32>
    %309 = tpu.matmul %308, %306, %cst_310 {dimension_numbers = #tpu.dot_dimension_numbers<[1], [0], [0], [1], [0, 0, 1, 1], [], []>} : vector<8x12xbf16>, vector<12x256xbf16>, vector<8x256xf32> -> vector<8x256xf32>
    %310 = arith.addf %302, %309 : vector<8x256xf32>
    %c1_i32_311 = arith.constant 1 : i32
    %311 = arith.addi %277, %c1_i32_311 : i32
    %c0_312 = arith.constant 0 : index
    %312 = arith.index_cast %311 : i32 to index
    %c0_313 = arith.constant 0 : index
    %c16_314 = arith.constant 16 : index
    %313 = vector.load %arg2[%c0_312, %312, %c0_313, %c16_314] : memref<1x18x12x288xbf16, #tpu.memory_space<vmem>>, vector<1x1x12x256xbf16>
    %314 = vector.shape_cast %313 : vector<1x1x12x256xbf16> to vector<12x256xbf16>
    %c1_315 = arith.constant 1 : index
    %c1_316 = arith.constant 1 : index
    %c0_317 = arith.constant 0 : index
    %c0_318 = arith.constant 0 : index
    %315 = vector.load %arg3[%c1_315, %c1_316, %c0_317, %c0_318] : memref<3x3x8x12xbf16, #tpu.memory_space<vmem>>, vector<1x1x8x12xbf16>
    %316 = vector.shape_cast %315 : vector<1x1x8x12xbf16> to vector<8x12xbf16>
    %cst_319 = arith.constant dense<0.000000e+00> : vector<8x256xf32>
    %317 = tpu.matmul %316, %314, %cst_319 {dimension_numbers = #tpu.dot_dimension_numbers<[1], [0], [0], [1], [0, 0, 1, 1], [], []>} : vector<8x12xbf16>, vector<12x256xbf16>, vector<8x256xf32> -> vector<8x256xf32>
    %318 = arith.addf %310, %317 : vector<8x256xf32>
    %c1_i32_320 = arith.constant 1 : i32
    %319 = arith.addi %277, %c1_i32_320 : i32
    %c0_321 = arith.constant 0 : index
    %320 = arith.index_cast %319 : i32 to index
    %c0_322 = arith.constant 0 : index
    %c32_323 = arith.constant 32 : index
    %321 = vector.load %arg2[%c0_321, %320, %c0_322, %c32_323] : memref<1x18x12x288xbf16, #tpu.memory_space<vmem>>, vector<1x1x12x256xbf16>
    %322 = vector.shape_cast %321 : vector<1x1x12x256xbf16> to vector<12x256xbf16>
    %c1_324 = arith.constant 1 : index
    %c2_325 = arith.constant 2 : index
    %c0_326 = arith.constant 0 : index
    %c0_327 = arith.constant 0 : index
    %323 = vector.load %arg3[%c1_324, %c2_325, %c0_326, %c0_327] : memref<3x3x8x12xbf16, #tpu.memory_space<vmem>>, vector<1x1x8x12xbf16>
    %324 = vector.shape_cast %323 : vector<1x1x8x12xbf16> to vector<8x12xbf16>
    %cst_328 = arith.constant dense<0.000000e+00> : vector<8x256xf32>
    %325 = tpu.matmul %324, %322, %cst_328 {dimension_numbers = #tpu.dot_dimension_numbers<[1], [0], [0], [1], [0, 0, 1, 1], [], []>} : vector<8x12xbf16>, vector<12x256xbf16>, vector<8x256xf32> -> vector<8x256xf32>
    %326 = arith.addf %318, %325 : vector<8x256xf32>
    %c2_i32_329 = arith.constant 2 : i32
    %327 = arith.addi %277, %c2_i32_329 : i32
    %c0_330 = arith.constant 0 : index
    %328 = arith.index_cast %327 : i32 to index
    %c0_331 = arith.constant 0 : index
    %c0_332 = arith.constant 0 : index
    %329 = vector.load %arg2[%c0_330, %328, %c0_331, %c0_332] : memref<1x18x12x288xbf16, #tpu.memory_space<vmem>>, vector<1x1x12x256xbf16>
    %330 = vector.shape_cast %329 : vector<1x1x12x256xbf16> to vector<12x256xbf16>
    %c2_333 = arith.constant 2 : index
    %c0_334 = arith.constant 0 : index
    %c0_335 = arith.constant 0 : index
    %c0_336 = arith.constant 0 : index
    %331 = vector.load %arg3[%c2_333, %c0_334, %c0_335, %c0_336] : memref<3x3x8x12xbf16, #tpu.memory_space<vmem>>, vector<1x1x8x12xbf16>
    %332 = vector.shape_cast %331 : vector<1x1x8x12xbf16> to vector<8x12xbf16>
    %cst_337 = arith.constant dense<0.000000e+00> : vector<8x256xf32>
    %333 = tpu.matmul %332, %330, %cst_337 {dimension_numbers = #tpu.dot_dimension_numbers<[1], [0], [0], [1], [0, 0, 1, 1], [], []>} : vector<8x12xbf16>, vector<12x256xbf16>, vector<8x256xf32> -> vector<8x256xf32>
    %334 = arith.addf %326, %333 : vector<8x256xf32>
    %c2_i32_338 = arith.constant 2 : i32
    %335 = arith.addi %277, %c2_i32_338 : i32
    %c0_339 = arith.constant 0 : index
    %336 = arith.index_cast %335 : i32 to index
    %c0_340 = arith.constant 0 : index
    %c16_341 = arith.constant 16 : index
    %337 = vector.load %arg2[%c0_339, %336, %c0_340, %c16_341] : memref<1x18x12x288xbf16, #tpu.memory_space<vmem>>, vector<1x1x12x256xbf16>
    %338 = vector.shape_cast %337 : vector<1x1x12x256xbf16> to vector<12x256xbf16>
    %c2_342 = arith.constant 2 : index
    %c1_343 = arith.constant 1 : index
    %c0_344 = arith.constant 0 : index
    %c0_345 = arith.constant 0 : index
    %339 = vector.load %arg3[%c2_342, %c1_343, %c0_344, %c0_345] : memref<3x3x8x12xbf16, #tpu.memory_space<vmem>>, vector<1x1x8x12xbf16>
    %340 = vector.shape_cast %339 : vector<1x1x8x12xbf16> to vector<8x12xbf16>
    %cst_346 = arith.constant dense<0.000000e+00> : vector<8x256xf32>
    %341 = tpu.matmul %340, %338, %cst_346 {dimension_numbers = #tpu.dot_dimension_numbers<[1], [0], [0], [1], [0, 0, 1, 1], [], []>} : vector<8x12xbf16>, vector<12x256xbf16>, vector<8x256xf32> -> vector<8x256xf32>
    %342 = arith.addf %334, %341 : vector<8x256xf32>
    %c2_i32_347 = arith.constant 2 : i32
    %343 = arith.addi %277, %c2_i32_347 : i32
    %c0_348 = arith.constant 0 : index
    %344 = arith.index_cast %343 : i32 to index
    %c0_349 = arith.constant 0 : index
    %c32_350 = arith.constant 32 : index
    %345 = vector.load %arg2[%c0_348, %344, %c0_349, %c32_350] : memref<1x18x12x288xbf16, #tpu.memory_space<vmem>>, vector<1x1x12x256xbf16>
    %346 = vector.shape_cast %345 : vector<1x1x12x256xbf16> to vector<12x256xbf16>
    %c2_351 = arith.constant 2 : index
    %c2_352 = arith.constant 2 : index
    %c0_353 = arith.constant 0 : index
    %c0_354 = arith.constant 0 : index
    %347 = vector.load %arg3[%c2_351, %c2_352, %c0_353, %c0_354] : memref<3x3x8x12xbf16, #tpu.memory_space<vmem>>, vector<1x1x8x12xbf16>
    %348 = vector.shape_cast %347 : vector<1x1x8x12xbf16> to vector<8x12xbf16>
    %cst_355 = arith.constant dense<0.000000e+00> : vector<8x256xf32>
    %349 = tpu.matmul %348, %346, %cst_355 {dimension_numbers = #tpu.dot_dimension_numbers<[1], [0], [0], [1], [0, 0, 1, 1], [], []>} : vector<8x12xbf16>, vector<12x256xbf16>, vector<8x256xf32> -> vector<8x256xf32>
    %350 = arith.addf %342, %349 : vector<8x256xf32>
    %351 = arith.truncf %350 : vector<8x256xf32> to vector<8x256xbf16>
    %c0_356 = arith.constant 0 : index
    %c768 = arith.constant 768 : index
    %352 = vector.load %arg4[%c0_356, %c768] : memref<8x2048xbf16, #tpu.memory_space<vmem>>, vector<8x256xbf16>
    tpu.vector_store %arg4[%c0_356, %c768], %351 {strides = array<i32>} : memref<8x2048xbf16, #tpu.memory_space<vmem>>, vector<8x256xbf16>,
    %cst_357 = arith.constant dense<0.000000e+00> : vector<8xf32>
    %353 = vector.multi_reduction <add>, %350, %cst_357 [1] : vector<8x256xf32> to vector<8xf32>
    %354 = vector.shape_cast %353 : vector<8xf32> to vector<8x1xf32>
    %cst_358 = arith.constant 3.906250e-03 : f32
    %355 = vector.broadcast %cst_358 : f32 to vector<8x1xf32>
    %356 = arith.mulf %354, %355 : vector<8x1xf32>
    %357 = vector.broadcast %356 : vector<8x1xf32> to vector<8x256xf32>
    %358 = arith.subf %350, %357 : vector<8x256xf32>
    %c3 = arith.constant 3 : index
    %c0_359 = arith.constant 0 : index
    %c0_360 = arith.constant 0 : index
    %359 = vector.load %arg5[%c3, %c0_359, %c0_360] : memref<8x8x1xf32, #tpu.memory_space<vmem>>, vector<1x8x1xf32>
    %360 = vector.shape_cast %359 : vector<1x8x1xf32> to vector<8x1xf32>
    %361 = vector.shape_cast %354 : vector<8x1xf32> to vector<1x8x1xf32>
    tpu.vector_store %arg5[%c3, %c0_359, %c0_360], %361 {strides = array<i32>} : memref<8x8x1xf32, #tpu.memory_space<vmem>>, vector<1x8x1xf32>,
    %362 = arith.mulf %358, %358 : vector<8x256xf32>
    %cst_361 = arith.constant dense<0.000000e+00> : vector<8xf32>
    %363 = vector.multi_reduction <add>, %362, %cst_361 [1] : vector<8x256xf32> to vector<8xf32>
    %364 = vector.shape_cast %363 : vector<8xf32> to vector<8x1xf32>
    %c3_362 = arith.constant 3 : index
    %c0_363 = arith.constant 0 : index
    %c0_364 = arith.constant 0 : index
    %365 = vector.load %arg6[%c3_362, %c0_363, %c0_364] : memref<8x8x1xf32, #tpu.memory_space<vmem>>, vector<1x8x1xf32>
    %366 = vector.shape_cast %365 : vector<1x8x1xf32> to vector<8x1xf32>
    %367 = vector.shape_cast %364 : vector<8x1xf32> to vector<1x8x1xf32>
    tpu.vector_store %arg6[%c3_362, %c0_363, %c0_364], %367 {strides = array<i32>} : memref<8x8x1xf32, #tpu.memory_space<vmem>>, vector<1x8x1xf32>,
    %c8_i32_365 = arith.constant 8 : i32
    %368 = arith.muli %arg1, %c8_i32_365 : i32
    %c4_i32 = arith.constant 4 : i32
    %369 = arith.addi %368, %c4_i32 : i32
    %cst_366 = arith.constant 0.000000e+00 : f32
    %370 = vector.broadcast %cst_366 : f32 to vector<8x256xf32>
    %c0_i32_367 = arith.constant 0 : i32
    %371 = arith.addi %369, %c0_i32_367 : i32
    %c0_368 = arith.constant 0 : index
    %372 = arith.index_cast %371 : i32 to index
    %c0_369 = arith.constant 0 : index
    %c0_370 = arith.constant 0 : index
    %373 = vector.load %arg2[%c0_368, %372, %c0_369, %c0_370] : memref<1x18x12x288xbf16, #tpu.memory_space<vmem>>, vector<1x1x12x256xbf16>
    %374 = vector.shape_cast %373 : vector<1x1x12x256xbf16> to vector<12x256xbf16>
    %c0_371 = arith.constant 0 : index
    %c0_372 = arith.constant 0 : index
    %c0_373 = arith.constant 0 : index
    %c0_374 = arith.constant 0 : index
    %375 = vector.load %arg3[%c0_371, %c0_372, %c0_373, %c0_374] : memref<3x3x8x12xbf16, #tpu.memory_space<vmem>>, vector<1x1x8x12xbf16>
    %376 = vector.shape_cast %375 : vector<1x1x8x12xbf16> to vector<8x12xbf16>
    %cst_375 = arith.constant dense<0.000000e+00> : vector<8x256xf32>
    %377 = tpu.matmul %376, %374, %cst_375 {dimension_numbers = #tpu.dot_dimension_numbers<[1], [0], [0], [1], [0, 0, 1, 1], [], []>} : vector<8x12xbf16>, vector<12x256xbf16>, vector<8x256xf32> -> vector<8x256xf32>
    %378 = arith.addf %370, %377 : vector<8x256xf32>
    %c0_i32_376 = arith.constant 0 : i32
    %379 = arith.addi %369, %c0_i32_376 : i32
    %c0_377 = arith.constant 0 : index
    %380 = arith.index_cast %379 : i32 to index
    %c0_378 = arith.constant 0 : index
    %c16_379 = arith.constant 16 : index
    %381 = vector.load %arg2[%c0_377, %380, %c0_378, %c16_379] : memref<1x18x12x288xbf16, #tpu.memory_space<vmem>>, vector<1x1x12x256xbf16>
    %382 = vector.shape_cast %381 : vector<1x1x12x256xbf16> to vector<12x256xbf16>
    %c0_380 = arith.constant 0 : index
    %c1_381 = arith.constant 1 : index
    %c0_382 = arith.constant 0 : index
    %c0_383 = arith.constant 0 : index
    %383 = vector.load %arg3[%c0_380, %c1_381, %c0_382, %c0_383] : memref<3x3x8x12xbf16, #tpu.memory_space<vmem>>, vector<1x1x8x12xbf16>
    %384 = vector.shape_cast %383 : vector<1x1x8x12xbf16> to vector<8x12xbf16>
    %cst_384 = arith.constant dense<0.000000e+00> : vector<8x256xf32>
    %385 = tpu.matmul %384, %382, %cst_384 {dimension_numbers = #tpu.dot_dimension_numbers<[1], [0], [0], [1], [0, 0, 1, 1], [], []>} : vector<8x12xbf16>, vector<12x256xbf16>, vector<8x256xf32> -> vector<8x256xf32>
    %386 = arith.addf %378, %385 : vector<8x256xf32>
    %c0_i32_385 = arith.constant 0 : i32
    %387 = arith.addi %369, %c0_i32_385 : i32
    %c0_386 = arith.constant 0 : index
    %388 = arith.index_cast %387 : i32 to index
    %c0_387 = arith.constant 0 : index
    %c32_388 = arith.constant 32 : index
    %389 = vector.load %arg2[%c0_386, %388, %c0_387, %c32_388] : memref<1x18x12x288xbf16, #tpu.memory_space<vmem>>, vector<1x1x12x256xbf16>
    %390 = vector.shape_cast %389 : vector<1x1x12x256xbf16> to vector<12x256xbf16>
    %c0_389 = arith.constant 0 : index
    %c2_390 = arith.constant 2 : index
    %c0_391 = arith.constant 0 : index
    %c0_392 = arith.constant 0 : index
    %391 = vector.load %arg3[%c0_389, %c2_390, %c0_391, %c0_392] : memref<3x3x8x12xbf16, #tpu.memory_space<vmem>>, vector<1x1x8x12xbf16>
    %392 = vector.shape_cast %391 : vector<1x1x8x12xbf16> to vector<8x12xbf16>
    %cst_393 = arith.constant dense<0.000000e+00> : vector<8x256xf32>
    %393 = tpu.matmul %392, %390, %cst_393 {dimension_numbers = #tpu.dot_dimension_numbers<[1], [0], [0], [1], [0, 0, 1, 1], [], []>} : vector<8x12xbf16>, vector<12x256xbf16>, vector<8x256xf32> -> vector<8x256xf32>
    %394 = arith.addf %386, %393 : vector<8x256xf32>
    %c1_i32_394 = arith.constant 1 : i32
    %395 = arith.addi %369, %c1_i32_394 : i32
    %c0_395 = arith.constant 0 : index
    %396 = arith.index_cast %395 : i32 to index
    %c0_396 = arith.constant 0 : index
    %c0_397 = arith.constant 0 : index
    %397 = vector.load %arg2[%c0_395, %396, %c0_396, %c0_397] : memref<1x18x12x288xbf16, #tpu.memory_space<vmem>>, vector<1x1x12x256xbf16>
    %398 = vector.shape_cast %397 : vector<1x1x12x256xbf16> to vector<12x256xbf16>
    %c1_398 = arith.constant 1 : index
    %c0_399 = arith.constant 0 : index
    %c0_400 = arith.constant 0 : index
    %c0_401 = arith.constant 0 : index
    %399 = vector.load %arg3[%c1_398, %c0_399, %c0_400, %c0_401] : memref<3x3x8x12xbf16, #tpu.memory_space<vmem>>, vector<1x1x8x12xbf16>
    %400 = vector.shape_cast %399 : vector<1x1x8x12xbf16> to vector<8x12xbf16>
    %cst_402 = arith.constant dense<0.000000e+00> : vector<8x256xf32>
    %401 = tpu.matmul %400, %398, %cst_402 {dimension_numbers = #tpu.dot_dimension_numbers<[1], [0], [0], [1], [0, 0, 1, 1], [], []>} : vector<8x12xbf16>, vector<12x256xbf16>, vector<8x256xf32> -> vector<8x256xf32>
    %402 = arith.addf %394, %401 : vector<8x256xf32>
    %c1_i32_403 = arith.constant 1 : i32
    %403 = arith.addi %369, %c1_i32_403 : i32
    %c0_404 = arith.constant 0 : index
    %404 = arith.index_cast %403 : i32 to index
    %c0_405 = arith.constant 0 : index
    %c16_406 = arith.constant 16 : index
    %405 = vector.load %arg2[%c0_404, %404, %c0_405, %c16_406] : memref<1x18x12x288xbf16, #tpu.memory_space<vmem>>, vector<1x1x12x256xbf16>
    %406 = vector.shape_cast %405 : vector<1x1x12x256xbf16> to vector<12x256xbf16>
    %c1_407 = arith.constant 1 : index
    %c1_408 = arith.constant 1 : index
    %c0_409 = arith.constant 0 : index
    %c0_410 = arith.constant 0 : index
    %407 = vector.load %arg3[%c1_407, %c1_408, %c0_409, %c0_410] : memref<3x3x8x12xbf16, #tpu.memory_space<vmem>>, vector<1x1x8x12xbf16>
    %408 = vector.shape_cast %407 : vector<1x1x8x12xbf16> to vector<8x12xbf16>
    %cst_411 = arith.constant dense<0.000000e+00> : vector<8x256xf32>
    %409 = tpu.matmul %408, %406, %cst_411 {dimension_numbers = #tpu.dot_dimension_numbers<[1], [0], [0], [1], [0, 0, 1, 1], [], []>} : vector<8x12xbf16>, vector<12x256xbf16>, vector<8x256xf32> -> vector<8x256xf32>
    %410 = arith.addf %402, %409 : vector<8x256xf32>
    %c1_i32_412 = arith.constant 1 : i32
    %411 = arith.addi %369, %c1_i32_412 : i32
    %c0_413 = arith.constant 0 : index
    %412 = arith.index_cast %411 : i32 to index
    %c0_414 = arith.constant 0 : index
    %c32_415 = arith.constant 32 : index
    %413 = vector.load %arg2[%c0_413, %412, %c0_414, %c32_415] : memref<1x18x12x288xbf16, #tpu.memory_space<vmem>>, vector<1x1x12x256xbf16>
    %414 = vector.shape_cast %413 : vector<1x1x12x256xbf16> to vector<12x256xbf16>
    %c1_416 = arith.constant 1 : index
    %c2_417 = arith.constant 2 : index
    %c0_418 = arith.constant 0 : index
    %c0_419 = arith.constant 0 : index
    %415 = vector.load %arg3[%c1_416, %c2_417, %c0_418, %c0_419] : memref<3x3x8x12xbf16, #tpu.memory_space<vmem>>, vector<1x1x8x12xbf16>
    %416 = vector.shape_cast %415 : vector<1x1x8x12xbf16> to vector<8x12xbf16>
    %cst_420 = arith.constant dense<0.000000e+00> : vector<8x256xf32>
    %417 = tpu.matmul %416, %414, %cst_420 {dimension_numbers = #tpu.dot_dimension_numbers<[1], [0], [0], [1], [0, 0, 1, 1], [], []>} : vector<8x12xbf16>, vector<12x256xbf16>, vector<8x256xf32> -> vector<8x256xf32>
    %418 = arith.addf %410, %417 : vector<8x256xf32>
    %c2_i32_421 = arith.constant 2 : i32
    %419 = arith.addi %369, %c2_i32_421 : i32
    %c0_422 = arith.constant 0 : index
    %420 = arith.index_cast %419 : i32 to index
    %c0_423 = arith.constant 0 : index
    %c0_424 = arith.constant 0 : index
    %421 = vector.load %arg2[%c0_422, %420, %c0_423, %c0_424] : memref<1x18x12x288xbf16, #tpu.memory_space<vmem>>, vector<1x1x12x256xbf16>
    %422 = vector.shape_cast %421 : vector<1x1x12x256xbf16> to vector<12x256xbf16>
    %c2_425 = arith.constant 2 : index
    %c0_426 = arith.constant 0 : index
    %c0_427 = arith.constant 0 : index
    %c0_428 = arith.constant 0 : index
    %423 = vector.load %arg3[%c2_425, %c0_426, %c0_427, %c0_428] : memref<3x3x8x12xbf16, #tpu.memory_space<vmem>>, vector<1x1x8x12xbf16>
    %424 = vector.shape_cast %423 : vector<1x1x8x12xbf16> to vector<8x12xbf16>
    %cst_429 = arith.constant dense<0.000000e+00> : vector<8x256xf32>
    %425 = tpu.matmul %424, %422, %cst_429 {dimension_numbers = #tpu.dot_dimension_numbers<[1], [0], [0], [1], [0, 0, 1, 1], [], []>} : vector<8x12xbf16>, vector<12x256xbf16>, vector<8x256xf32> -> vector<8x256xf32>
    %426 = arith.addf %418, %425 : vector<8x256xf32>
    %c2_i32_430 = arith.constant 2 : i32
    %427 = arith.addi %369, %c2_i32_430 : i32
    %c0_431 = arith.constant 0 : index
    %428 = arith.index_cast %427 : i32 to index
    %c0_432 = arith.constant 0 : index
    %c16_433 = arith.constant 16 : index
    %429 = vector.load %arg2[%c0_431, %428, %c0_432, %c16_433] : memref<1x18x12x288xbf16, #tpu.memory_space<vmem>>, vector<1x1x12x256xbf16>
    %430 = vector.shape_cast %429 : vector<1x1x12x256xbf16> to vector<12x256xbf16>
    %c2_434 = arith.constant 2 : index
    %c1_435 = arith.constant 1 : index
    %c0_436 = arith.constant 0 : index
    %c0_437 = arith.constant 0 : index
    %431 = vector.load %arg3[%c2_434, %c1_435, %c0_436, %c0_437] : memref<3x3x8x12xbf16, #tpu.memory_space<vmem>>, vector<1x1x8x12xbf16>
    %432 = vector.shape_cast %431 : vector<1x1x8x12xbf16> to vector<8x12xbf16>
    %cst_438 = arith.constant dense<0.000000e+00> : vector<8x256xf32>
    %433 = tpu.matmul %432, %430, %cst_438 {dimension_numbers = #tpu.dot_dimension_numbers<[1], [0], [0], [1], [0, 0, 1, 1], [], []>} : vector<8x12xbf16>, vector<12x256xbf16>, vector<8x256xf32> -> vector<8x256xf32>
    %434 = arith.addf %426, %433 : vector<8x256xf32>
    %c2_i32_439 = arith.constant 2 : i32
    %435 = arith.addi %369, %c2_i32_439 : i32
    %c0_440 = arith.constant 0 : index
    %436 = arith.index_cast %435 : i32 to index
    %c0_441 = arith.constant 0 : index
    %c32_442 = arith.constant 32 : index
    %437 = vector.load %arg2[%c0_440, %436, %c0_441, %c32_442] : memref<1x18x12x288xbf16, #tpu.memory_space<vmem>>, vector<1x1x12x256xbf16>
    %438 = vector.shape_cast %437 : vector<1x1x12x256xbf16> to vector<12x256xbf16>
    %c2_443 = arith.constant 2 : index
    %c2_444 = arith.constant 2 : index
    %c0_445 = arith.constant 0 : index
    %c0_446 = arith.constant 0 : index
    %439 = vector.load %arg3[%c2_443, %c2_444, %c0_445, %c0_446] : memref<3x3x8x12xbf16, #tpu.memory_space<vmem>>, vector<1x1x8x12xbf16>
    %440 = vector.shape_cast %439 : vector<1x1x8x12xbf16> to vector<8x12xbf16>
    %cst_447 = arith.constant dense<0.000000e+00> : vector<8x256xf32>
    %441 = tpu.matmul %440, %438, %cst_447 {dimension_numbers = #tpu.dot_dimension_numbers<[1], [0], [0], [1], [0, 0, 1, 1], [], []>} : vector<8x12xbf16>, vector<12x256xbf16>, vector<8x256xf32> -> vector<8x256xf32>
    %442 = arith.addf %434, %441 : vector<8x256xf32>
    %443 = arith.truncf %442 : vector<8x256xf32> to vector<8x256xbf16>
    %c0_448 = arith.constant 0 : index
    %c1024 = arith.constant 1024 : index
    %444 = vector.load %arg4[%c0_448, %c1024] : memref<8x2048xbf16, #tpu.memory_space<vmem>>, vector<8x256xbf16>
    tpu.vector_store %arg4[%c0_448, %c1024], %443 {strides = array<i32>} : memref<8x2048xbf16, #tpu.memory_space<vmem>>, vector<8x256xbf16>,
    %cst_449 = arith.constant dense<0.000000e+00> : vector<8xf32>
    %445 = vector.multi_reduction <add>, %442, %cst_449 [1] : vector<8x256xf32> to vector<8xf32>
    %446 = vector.shape_cast %445 : vector<8xf32> to vector<8x1xf32>
    %cst_450 = arith.constant 3.906250e-03 : f32
    %447 = vector.broadcast %cst_450 : f32 to vector<8x1xf32>
    %448 = arith.mulf %446, %447 : vector<8x1xf32>
    %449 = vector.broadcast %448 : vector<8x1xf32> to vector<8x256xf32>
    %450 = arith.subf %442, %449 : vector<8x256xf32>
    %c4 = arith.constant 4 : index
    %c0_451 = arith.constant 0 : index
    %c0_452 = arith.constant 0 : index
    %451 = vector.load %arg5[%c4, %c0_451, %c0_452] : memref<8x8x1xf32, #tpu.memory_space<vmem>>, vector<1x8x1xf32>
    %452 = vector.shape_cast %451 : vector<1x8x1xf32> to vector<8x1xf32>
    %453 = vector.shape_cast %446 : vector<8x1xf32> to vector<1x8x1xf32>
    tpu.vector_store %arg5[%c4, %c0_451, %c0_452], %453 {strides = array<i32>} : memref<8x8x1xf32, #tpu.memory_space<vmem>>, vector<1x8x1xf32>,
    %454 = arith.mulf %450, %450 : vector<8x256xf32>
    %cst_453 = arith.constant dense<0.000000e+00> : vector<8xf32>
    %455 = vector.multi_reduction <add>, %454, %cst_453 [1] : vector<8x256xf32> to vector<8xf32>
    %456 = vector.shape_cast %455 : vector<8xf32> to vector<8x1xf32>
    %c4_454 = arith.constant 4 : index
    %c0_455 = arith.constant 0 : index
    %c0_456 = arith.constant 0 : index
    %457 = vector.load %arg6[%c4_454, %c0_455, %c0_456] : memref<8x8x1xf32, #tpu.memory_space<vmem>>, vector<1x8x1xf32>
    %458 = vector.shape_cast %457 : vector<1x8x1xf32> to vector<8x1xf32>
    %459 = vector.shape_cast %456 : vector<8x1xf32> to vector<1x8x1xf32>
    tpu.vector_store %arg6[%c4_454, %c0_455, %c0_456], %459 {strides = array<i32>} : memref<8x8x1xf32, #tpu.memory_space<vmem>>, vector<1x8x1xf32>,
    %c8_i32_457 = arith.constant 8 : i32
    %460 = arith.muli %arg1, %c8_i32_457 : i32
    %c5_i32 = arith.constant 5 : i32
    %461 = arith.addi %460, %c5_i32 : i32
    %cst_458 = arith.constant 0.000000e+00 : f32
    %462 = vector.broadcast %cst_458 : f32 to vector<8x256xf32>
    %c0_i32_459 = arith.constant 0 : i32
    %463 = arith.addi %461, %c0_i32_459 : i32
    %c0_460 = arith.constant 0 : index
    %464 = arith.index_cast %463 : i32 to index
    %c0_461 = arith.constant 0 : index
    %c0_462 = arith.constant 0 : index
    %465 = vector.load %arg2[%c0_460, %464, %c0_461, %c0_462] : memref<1x18x12x288xbf16, #tpu.memory_space<vmem>>, vector<1x1x12x256xbf16>
    %466 = vector.shape_cast %465 : vector<1x1x12x256xbf16> to vector<12x256xbf16>
    %c0_463 = arith.constant 0 : index
    %c0_464 = arith.constant 0 : index
    %c0_465 = arith.constant 0 : index
    %c0_466 = arith.constant 0 : index
    %467 = vector.load %arg3[%c0_463, %c0_464, %c0_465, %c0_466] : memref<3x3x8x12xbf16, #tpu.memory_space<vmem>>, vector<1x1x8x12xbf16>
    %468 = vector.shape_cast %467 : vector<1x1x8x12xbf16> to vector<8x12xbf16>
    %cst_467 = arith.constant dense<0.000000e+00> : vector<8x256xf32>
    %469 = tpu.matmul %468, %466, %cst_467 {dimension_numbers = #tpu.dot_dimension_numbers<[1], [0], [0], [1], [0, 0, 1, 1], [], []>} : vector<8x12xbf16>, vector<12x256xbf16>, vector<8x256xf32> -> vector<8x256xf32>
    %470 = arith.addf %462, %469 : vector<8x256xf32>
    %c0_i32_468 = arith.constant 0 : i32
    %471 = arith.addi %461, %c0_i32_468 : i32
    %c0_469 = arith.constant 0 : index
    %472 = arith.index_cast %471 : i32 to index
    %c0_470 = arith.constant 0 : index
    %c16_471 = arith.constant 16 : index
    %473 = vector.load %arg2[%c0_469, %472, %c0_470, %c16_471] : memref<1x18x12x288xbf16, #tpu.memory_space<vmem>>, vector<1x1x12x256xbf16>
    %474 = vector.shape_cast %473 : vector<1x1x12x256xbf16> to vector<12x256xbf16>
    %c0_472 = arith.constant 0 : index
    %c1_473 = arith.constant 1 : index
    %c0_474 = arith.constant 0 : index
    %c0_475 = arith.constant 0 : index
    %475 = vector.load %arg3[%c0_472, %c1_473, %c0_474, %c0_475] : memref<3x3x8x12xbf16, #tpu.memory_space<vmem>>, vector<1x1x8x12xbf16>
    %476 = vector.shape_cast %475 : vector<1x1x8x12xbf16> to vector<8x12xbf16>
    %cst_476 = arith.constant dense<0.000000e+00> : vector<8x256xf32>
    %477 = tpu.matmul %476, %474, %cst_476 {dimension_numbers = #tpu.dot_dimension_numbers<[1], [0], [0], [1], [0, 0, 1, 1], [], []>} : vector<8x12xbf16>, vector<12x256xbf16>, vector<8x256xf32> -> vector<8x256xf32>
    %478 = arith.addf %470, %477 : vector<8x256xf32>
    %c0_i32_477 = arith.constant 0 : i32
    %479 = arith.addi %461, %c0_i32_477 : i32
    %c0_478 = arith.constant 0 : index
    %480 = arith.index_cast %479 : i32 to index
    %c0_479 = arith.constant 0 : index
    %c32_480 = arith.constant 32 : index
    %481 = vector.load %arg2[%c0_478, %480, %c0_479, %c32_480] : memref<1x18x12x288xbf16, #tpu.memory_space<vmem>>, vector<1x1x12x256xbf16>
    %482 = vector.shape_cast %481 : vector<1x1x12x256xbf16> to vector<12x256xbf16>
    %c0_481 = arith.constant 0 : index
    %c2_482 = arith.constant 2 : index
    %c0_483 = arith.constant 0 : index
    %c0_484 = arith.constant 0 : index
    %483 = vector.load %arg3[%c0_481, %c2_482, %c0_483, %c0_484] : memref<3x3x8x12xbf16, #tpu.memory_space<vmem>>, vector<1x1x8x12xbf16>
    %484 = vector.shape_cast %483 : vector<1x1x8x12xbf16> to vector<8x12xbf16>
    %cst_485 = arith.constant dense<0.000000e+00> : vector<8x256xf32>
    %485 = tpu.matmul %484, %482, %cst_485 {dimension_numbers = #tpu.dot_dimension_numbers<[1], [0], [0], [1], [0, 0, 1, 1], [], []>} : vector<8x12xbf16>, vector<12x256xbf16>, vector<8x256xf32> -> vector<8x256xf32>
    %486 = arith.addf %478, %485 : vector<8x256xf32>
    %c1_i32_486 = arith.constant 1 : i32
    %487 = arith.addi %461, %c1_i32_486 : i32
    %c0_487 = arith.constant 0 : index
    %488 = arith.index_cast %487 : i32 to index
    %c0_488 = arith.constant 0 : index
    %c0_489 = arith.constant 0 : index
    %489 = vector.load %arg2[%c0_487, %488, %c0_488, %c0_489] : memref<1x18x12x288xbf16, #tpu.memory_space<vmem>>, vector<1x1x12x256xbf16>
    %490 = vector.shape_cast %489 : vector<1x1x12x256xbf16> to vector<12x256xbf16>
    %c1_490 = arith.constant 1 : index
    %c0_491 = arith.constant 0 : index
    %c0_492 = arith.constant 0 : index
    %c0_493 = arith.constant 0 : index
    %491 = vector.load %arg3[%c1_490, %c0_491, %c0_492, %c0_493] : memref<3x3x8x12xbf16, #tpu.memory_space<vmem>>, vector<1x1x8x12xbf16>
    %492 = vector.shape_cast %491 : vector<1x1x8x12xbf16> to vector<8x12xbf16>
    %cst_494 = arith.constant dense<0.000000e+00> : vector<8x256xf32>
    %493 = tpu.matmul %492, %490, %cst_494 {dimension_numbers = #tpu.dot_dimension_numbers<[1], [0], [0], [1], [0, 0, 1, 1], [], []>} : vector<8x12xbf16>, vector<12x256xbf16>, vector<8x256xf32> -> vector<8x256xf32>
    %494 = arith.addf %486, %493 : vector<8x256xf32>
    %c1_i32_495 = arith.constant 1 : i32
    %495 = arith.addi %461, %c1_i32_495 : i32
    %c0_496 = arith.constant 0 : index
    %496 = arith.index_cast %495 : i32 to index
    %c0_497 = arith.constant 0 : index
    %c16_498 = arith.constant 16 : index
    %497 = vector.load %arg2[%c0_496, %496, %c0_497, %c16_498] : memref<1x18x12x288xbf16, #tpu.memory_space<vmem>>, vector<1x1x12x256xbf16>
    %498 = vector.shape_cast %497 : vector<1x1x12x256xbf16> to vector<12x256xbf16>
    %c1_499 = arith.constant 1 : index
    %c1_500 = arith.constant 1 : index
    %c0_501 = arith.constant 0 : index
    %c0_502 = arith.constant 0 : index
    %499 = vector.load %arg3[%c1_499, %c1_500, %c0_501, %c0_502] : memref<3x3x8x12xbf16, #tpu.memory_space<vmem>>, vector<1x1x8x12xbf16>
    %500 = vector.shape_cast %499 : vector<1x1x8x12xbf16> to vector<8x12xbf16>
    %cst_503 = arith.constant dense<0.000000e+00> : vector<8x256xf32>
    %501 = tpu.matmul %500, %498, %cst_503 {dimension_numbers = #tpu.dot_dimension_numbers<[1], [0], [0], [1], [0, 0, 1, 1], [], []>} : vector<8x12xbf16>, vector<12x256xbf16>, vector<8x256xf32> -> vector<8x256xf32>
    %502 = arith.addf %494, %501 : vector<8x256xf32>
    %c1_i32_504 = arith.constant 1 : i32
    %503 = arith.addi %461, %c1_i32_504 : i32
    %c0_505 = arith.constant 0 : index
    %504 = arith.index_cast %503 : i32 to index
    %c0_506 = arith.constant 0 : index
    %c32_507 = arith.constant 32 : index
    %505 = vector.load %arg2[%c0_505, %504, %c0_506, %c32_507] : memref<1x18x12x288xbf16, #tpu.memory_space<vmem>>, vector<1x1x12x256xbf16>
    %506 = vector.shape_cast %505 : vector<1x1x12x256xbf16> to vector<12x256xbf16>
    %c1_508 = arith.constant 1 : index
    %c2_509 = arith.constant 2 : index
    %c0_510 = arith.constant 0 : index
    %c0_511 = arith.constant 0 : index
    %507 = vector.load %arg3[%c1_508, %c2_509, %c0_510, %c0_511] : memref<3x3x8x12xbf16, #tpu.memory_space<vmem>>, vector<1x1x8x12xbf16>
    %508 = vector.shape_cast %507 : vector<1x1x8x12xbf16> to vector<8x12xbf16>
    %cst_512 = arith.constant dense<0.000000e+00> : vector<8x256xf32>
    %509 = tpu.matmul %508, %506, %cst_512 {dimension_numbers = #tpu.dot_dimension_numbers<[1], [0], [0], [1], [0, 0, 1, 1], [], []>} : vector<8x12xbf16>, vector<12x256xbf16>, vector<8x256xf32> -> vector<8x256xf32>
    %510 = arith.addf %502, %509 : vector<8x256xf32>
    %c2_i32_513 = arith.constant 2 : i32
    %511 = arith.addi %461, %c2_i32_513 : i32
    %c0_514 = arith.constant 0 : index
    %512 = arith.index_cast %511 : i32 to index
    %c0_515 = arith.constant 0 : index
    %c0_516 = arith.constant 0 : index
    %513 = vector.load %arg2[%c0_514, %512, %c0_515, %c0_516] : memref<1x18x12x288xbf16, #tpu.memory_space<vmem>>, vector<1x1x12x256xbf16>
    %514 = vector.shape_cast %513 : vector<1x1x12x256xbf16> to vector<12x256xbf16>
    %c2_517 = arith.constant 2 : index
    %c0_518 = arith.constant 0 : index
    %c0_519 = arith.constant 0 : index
    %c0_520 = arith.constant 0 : index
    %515 = vector.load %arg3[%c2_517, %c0_518, %c0_519, %c0_520] : memref<3x3x8x12xbf16, #tpu.memory_space<vmem>>, vector<1x1x8x12xbf16>
    %516 = vector.shape_cast %515 : vector<1x1x8x12xbf16> to vector<8x12xbf16>
    %cst_521 = arith.constant dense<0.000000e+00> : vector<8x256xf32>
    %517 = tpu.matmul %516, %514, %cst_521 {dimension_numbers = #tpu.dot_dimension_numbers<[1], [0], [0], [1], [0, 0, 1, 1], [], []>} : vector<8x12xbf16>, vector<12x256xbf16>, vector<8x256xf32> -> vector<8x256xf32>
    %518 = arith.addf %510, %517 : vector<8x256xf32>
    %c2_i32_522 = arith.constant 2 : i32
    %519 = arith.addi %461, %c2_i32_522 : i32
    %c0_523 = arith.constant 0 : index
    %520 = arith.index_cast %519 : i32 to index
    %c0_524 = arith.constant 0 : index
    %c16_525 = arith.constant 16 : index
    %521 = vector.load %arg2[%c0_523, %520, %c0_524, %c16_525] : memref<1x18x12x288xbf16, #tpu.memory_space<vmem>>, vector<1x1x12x256xbf16>
    %522 = vector.shape_cast %521 : vector<1x1x12x256xbf16> to vector<12x256xbf16>
    %c2_526 = arith.constant 2 : index
    %c1_527 = arith.constant 1 : index
    %c0_528 = arith.constant 0 : index
    %c0_529 = arith.constant 0 : index
    %523 = vector.load %arg3[%c2_526, %c1_527, %c0_528, %c0_529] : memref<3x3x8x12xbf16, #tpu.memory_space<vmem>>, vector<1x1x8x12xbf16>
    %524 = vector.shape_cast %523 : vector<1x1x8x12xbf16> to vector<8x12xbf16>
    %cst_530 = arith.constant dense<0.000000e+00> : vector<8x256xf32>
    %525 = tpu.matmul %524, %522, %cst_530 {dimension_numbers = #tpu.dot_dimension_numbers<[1], [0], [0], [1], [0, 0, 1, 1], [], []>} : vector<8x12xbf16>, vector<12x256xbf16>, vector<8x256xf32> -> vector<8x256xf32>
    %526 = arith.addf %518, %525 : vector<8x256xf32>
    %c2_i32_531 = arith.constant 2 : i32
    %527 = arith.addi %461, %c2_i32_531 : i32
    %c0_532 = arith.constant 0 : index
    %528 = arith.index_cast %527 : i32 to index
    %c0_533 = arith.constant 0 : index
    %c32_534 = arith.constant 32 : index
    %529 = vector.load %arg2[%c0_532, %528, %c0_533, %c32_534] : memref<1x18x12x288xbf16, #tpu.memory_space<vmem>>, vector<1x1x12x256xbf16>
    %530 = vector.shape_cast %529 : vector<1x1x12x256xbf16> to vector<12x256xbf16>
    %c2_535 = arith.constant 2 : index
    %c2_536 = arith.constant 2 : index
    %c0_537 = arith.constant 0 : index
    %c0_538 = arith.constant 0 : index
    %531 = vector.load %arg3[%c2_535, %c2_536, %c0_537, %c0_538] : memref<3x3x8x12xbf16, #tpu.memory_space<vmem>>, vector<1x1x8x12xbf16>
    %532 = vector.shape_cast %531 : vector<1x1x8x12xbf16> to vector<8x12xbf16>
    %cst_539 = arith.constant dense<0.000000e+00> : vector<8x256xf32>
    %533 = tpu.matmul %532, %530, %cst_539 {dimension_numbers = #tpu.dot_dimension_numbers<[1], [0], [0], [1], [0, 0, 1, 1], [], []>} : vector<8x12xbf16>, vector<12x256xbf16>, vector<8x256xf32> -> vector<8x256xf32>
    %534 = arith.addf %526, %533 : vector<8x256xf32>
    %535 = arith.truncf %534 : vector<8x256xf32> to vector<8x256xbf16>
    %c0_540 = arith.constant 0 : index
    %c1280 = arith.constant 1280 : index
    %536 = vector.load %arg4[%c0_540, %c1280] : memref<8x2048xbf16, #tpu.memory_space<vmem>>, vector<8x256xbf16>
    tpu.vector_store %arg4[%c0_540, %c1280], %535 {strides = array<i32>} : memref<8x2048xbf16, #tpu.memory_space<vmem>>, vector<8x256xbf16>,
    %cst_541 = arith.constant dense<0.000000e+00> : vector<8xf32>
    %537 = vector.multi_reduction <add>, %534, %cst_541 [1] : vector<8x256xf32> to vector<8xf32>
    %538 = vector.shape_cast %537 : vector<8xf32> to vector<8x1xf32>
    %cst_542 = arith.constant 3.906250e-03 : f32
    %539 = vector.broadcast %cst_542 : f32 to vector<8x1xf32>
    %540 = arith.mulf %538, %539 : vector<8x1xf32>
    %541 = vector.broadcast %540 : vector<8x1xf32> to vector<8x256xf32>
    %542 = arith.subf %534, %541 : vector<8x256xf32>
    %c5 = arith.constant 5 : index
    %c0_543 = arith.constant 0 : index
    %c0_544 = arith.constant 0 : index
    %543 = vector.load %arg5[%c5, %c0_543, %c0_544] : memref<8x8x1xf32, #tpu.memory_space<vmem>>, vector<1x8x1xf32>
    %544 = vector.shape_cast %543 : vector<1x8x1xf32> to vector<8x1xf32>
    %545 = vector.shape_cast %538 : vector<8x1xf32> to vector<1x8x1xf32>
    tpu.vector_store %arg5[%c5, %c0_543, %c0_544], %545 {strides = array<i32>} : memref<8x8x1xf32, #tpu.memory_space<vmem>>, vector<1x8x1xf32>,
    %546 = arith.mulf %542, %542 : vector<8x256xf32>
    %cst_545 = arith.constant dense<0.000000e+00> : vector<8xf32>
    %547 = vector.multi_reduction <add>, %546, %cst_545 [1] : vector<8x256xf32> to vector<8xf32>
    %548 = vector.shape_cast %547 : vector<8xf32> to vector<8x1xf32>
    %c5_546 = arith.constant 5 : index
    %c0_547 = arith.constant 0 : index
    %c0_548 = arith.constant 0 : index
    %549 = vector.load %arg6[%c5_546, %c0_547, %c0_548] : memref<8x8x1xf32, #tpu.memory_space<vmem>>, vector<1x8x1xf32>
    %550 = vector.shape_cast %549 : vector<1x8x1xf32> to vector<8x1xf32>
    %551 = vector.shape_cast %548 : vector<8x1xf32> to vector<1x8x1xf32>
    tpu.vector_store %arg6[%c5_546, %c0_547, %c0_548], %551 {strides = array<i32>} : memref<8x8x1xf32, #tpu.memory_space<vmem>>, vector<1x8x1xf32>,
    %c8_i32_549 = arith.constant 8 : i32
    %552 = arith.muli %arg1, %c8_i32_549 : i32
    %c6_i32 = arith.constant 6 : i32
    %553 = arith.addi %552, %c6_i32 : i32
    %cst_550 = arith.constant 0.000000e+00 : f32
    %554 = vector.broadcast %cst_550 : f32 to vector<8x256xf32>
    %c0_i32_551 = arith.constant 0 : i32
    %555 = arith.addi %553, %c0_i32_551 : i32
    %c0_552 = arith.constant 0 : index
    %556 = arith.index_cast %555 : i32 to index
    %c0_553 = arith.constant 0 : index
    %c0_554 = arith.constant 0 : index
    %557 = vector.load %arg2[%c0_552, %556, %c0_553, %c0_554] : memref<1x18x12x288xbf16, #tpu.memory_space<vmem>>, vector<1x1x12x256xbf16>
    %558 = vector.shape_cast %557 : vector<1x1x12x256xbf16> to vector<12x256xbf16>
    %c0_555 = arith.constant 0 : index
    %c0_556 = arith.constant 0 : index
    %c0_557 = arith.constant 0 : index
    %c0_558 = arith.constant 0 : index
    %559 = vector.load %arg3[%c0_555, %c0_556, %c0_557, %c0_558] : memref<3x3x8x12xbf16, #tpu.memory_space<vmem>>, vector<1x1x8x12xbf16>
    %560 = vector.shape_cast %559 : vector<1x1x8x12xbf16> to vector<8x12xbf16>
    %cst_559 = arith.constant dense<0.000000e+00> : vector<8x256xf32>
    %561 = tpu.matmul %560, %558, %cst_559 {dimension_numbers = #tpu.dot_dimension_numbers<[1], [0], [0], [1], [0, 0, 1, 1], [], []>} : vector<8x12xbf16>, vector<12x256xbf16>, vector<8x256xf32> -> vector<8x256xf32>
    %562 = arith.addf %554, %561 : vector<8x256xf32>
    %c0_i32_560 = arith.constant 0 : i32
    %563 = arith.addi %553, %c0_i32_560 : i32
    %c0_561 = arith.constant 0 : index
    %564 = arith.index_cast %563 : i32 to index
    %c0_562 = arith.constant 0 : index
    %c16_563 = arith.constant 16 : index
    %565 = vector.load %arg2[%c0_561, %564, %c0_562, %c16_563] : memref<1x18x12x288xbf16, #tpu.memory_space<vmem>>, vector<1x1x12x256xbf16>
    %566 = vector.shape_cast %565 : vector<1x1x12x256xbf16> to vector<12x256xbf16>
    %c0_564 = arith.constant 0 : index
    %c1_565 = arith.constant 1 : index
    %c0_566 = arith.constant 0 : index
    %c0_567 = arith.constant 0 : index
    %567 = vector.load %arg3[%c0_564, %c1_565, %c0_566, %c0_567] : memref<3x3x8x12xbf16, #tpu.memory_space<vmem>>, vector<1x1x8x12xbf16>
    %568 = vector.shape_cast %567 : vector<1x1x8x12xbf16> to vector<8x12xbf16>
    %cst_568 = arith.constant dense<0.000000e+00> : vector<8x256xf32>
    %569 = tpu.matmul %568, %566, %cst_568 {dimension_numbers = #tpu.dot_dimension_numbers<[1], [0], [0], [1], [0, 0, 1, 1], [], []>} : vector<8x12xbf16>, vector<12x256xbf16>, vector<8x256xf32> -> vector<8x256xf32>
    %570 = arith.addf %562, %569 : vector<8x256xf32>
    %c0_i32_569 = arith.constant 0 : i32
    %571 = arith.addi %553, %c0_i32_569 : i32
    %c0_570 = arith.constant 0 : index
    %572 = arith.index_cast %571 : i32 to index
    %c0_571 = arith.constant 0 : index
    %c32_572 = arith.constant 32 : index
    %573 = vector.load %arg2[%c0_570, %572, %c0_571, %c32_572] : memref<1x18x12x288xbf16, #tpu.memory_space<vmem>>, vector<1x1x12x256xbf16>
    %574 = vector.shape_cast %573 : vector<1x1x12x256xbf16> to vector<12x256xbf16>
    %c0_573 = arith.constant 0 : index
    %c2_574 = arith.constant 2 : index
    %c0_575 = arith.constant 0 : index
    %c0_576 = arith.constant 0 : index
    %575 = vector.load %arg3[%c0_573, %c2_574, %c0_575, %c0_576] : memref<3x3x8x12xbf16, #tpu.memory_space<vmem>>, vector<1x1x8x12xbf16>
    %576 = vector.shape_cast %575 : vector<1x1x8x12xbf16> to vector<8x12xbf16>
    %cst_577 = arith.constant dense<0.000000e+00> : vector<8x256xf32>
    %577 = tpu.matmul %576, %574, %cst_577 {dimension_numbers = #tpu.dot_dimension_numbers<[1], [0], [0], [1], [0, 0, 1, 1], [], []>} : vector<8x12xbf16>, vector<12x256xbf16>, vector<8x256xf32> -> vector<8x256xf32>
    %578 = arith.addf %570, %577 : vector<8x256xf32>
    %c1_i32_578 = arith.constant 1 : i32
    %579 = arith.addi %553, %c1_i32_578 : i32
    %c0_579 = arith.constant 0 : index
    %580 = arith.index_cast %579 : i32 to index
    %c0_580 = arith.constant 0 : index
    %c0_581 = arith.constant 0 : index
    %581 = vector.load %arg2[%c0_579, %580, %c0_580, %c0_581] : memref<1x18x12x288xbf16, #tpu.memory_space<vmem>>, vector<1x1x12x256xbf16>
    %582 = vector.shape_cast %581 : vector<1x1x12x256xbf16> to vector<12x256xbf16>
    %c1_582 = arith.constant 1 : index
    %c0_583 = arith.constant 0 : index
    %c0_584 = arith.constant 0 : index
    %c0_585 = arith.constant 0 : index
    %583 = vector.load %arg3[%c1_582, %c0_583, %c0_584, %c0_585] : memref<3x3x8x12xbf16, #tpu.memory_space<vmem>>, vector<1x1x8x12xbf16>
    %584 = vector.shape_cast %583 : vector<1x1x8x12xbf16> to vector<8x12xbf16>
    %cst_586 = arith.constant dense<0.000000e+00> : vector<8x256xf32>
    %585 = tpu.matmul %584, %582, %cst_586 {dimension_numbers = #tpu.dot_dimension_numbers<[1], [0], [0], [1], [0, 0, 1, 1], [], []>} : vector<8x12xbf16>, vector<12x256xbf16>, vector<8x256xf32> -> vector<8x256xf32>
    %586 = arith.addf %578, %585 : vector<8x256xf32>
    %c1_i32_587 = arith.constant 1 : i32
    %587 = arith.addi %553, %c1_i32_587 : i32
    %c0_588 = arith.constant 0 : index
    %588 = arith.index_cast %587 : i32 to index
    %c0_589 = arith.constant 0 : index
    %c16_590 = arith.constant 16 : index
    %589 = vector.load %arg2[%c0_588, %588, %c0_589, %c16_590] : memref<1x18x12x288xbf16, #tpu.memory_space<vmem>>, vector<1x1x12x256xbf16>
    %590 = vector.shape_cast %589 : vector<1x1x12x256xbf16> to vector<12x256xbf16>
    %c1_591 = arith.constant 1 : index
    %c1_592 = arith.constant 1 : index
    %c0_593 = arith.constant 0 : index
    %c0_594 = arith.constant 0 : index
    %591 = vector.load %arg3[%c1_591, %c1_592, %c0_593, %c0_594] : memref<3x3x8x12xbf16, #tpu.memory_space<vmem>>, vector<1x1x8x12xbf16>
    %592 = vector.shape_cast %591 : vector<1x1x8x12xbf16> to vector<8x12xbf16>
    %cst_595 = arith.constant dense<0.000000e+00> : vector<8x256xf32>
    %593 = tpu.matmul %592, %590, %cst_595 {dimension_numbers = #tpu.dot_dimension_numbers<[1], [0], [0], [1], [0, 0, 1, 1], [], []>} : vector<8x12xbf16>, vector<12x256xbf16>, vector<8x256xf32> -> vector<8x256xf32>
    %594 = arith.addf %586, %593 : vector<8x256xf32>
    %c1_i32_596 = arith.constant 1 : i32
    %595 = arith.addi %553, %c1_i32_596 : i32
    %c0_597 = arith.constant 0 : index
    %596 = arith.index_cast %595 : i32 to index
    %c0_598 = arith.constant 0 : index
    %c32_599 = arith.constant 32 : index
    %597 = vector.load %arg2[%c0_597, %596, %c0_598, %c32_599] : memref<1x18x12x288xbf16, #tpu.memory_space<vmem>>, vector<1x1x12x256xbf16>
    %598 = vector.shape_cast %597 : vector<1x1x12x256xbf16> to vector<12x256xbf16>
    %c1_600 = arith.constant 1 : index
    %c2_601 = arith.constant 2 : index
    %c0_602 = arith.constant 0 : index
    %c0_603 = arith.constant 0 : index
    %599 = vector.load %arg3[%c1_600, %c2_601, %c0_602, %c0_603] : memref<3x3x8x12xbf16, #tpu.memory_space<vmem>>, vector<1x1x8x12xbf16>
    %600 = vector.shape_cast %599 : vector<1x1x8x12xbf16> to vector<8x12xbf16>
    %cst_604 = arith.constant dense<0.000000e+00> : vector<8x256xf32>
    %601 = tpu.matmul %600, %598, %cst_604 {dimension_numbers = #tpu.dot_dimension_numbers<[1], [0], [0], [1], [0, 0, 1, 1], [], []>} : vector<8x12xbf16>, vector<12x256xbf16>, vector<8x256xf32> -> vector<8x256xf32>
    %602 = arith.addf %594, %601 : vector<8x256xf32>
    %c2_i32_605 = arith.constant 2 : i32
    %603 = arith.addi %553, %c2_i32_605 : i32
    %c0_606 = arith.constant 0 : index
    %604 = arith.index_cast %603 : i32 to index
    %c0_607 = arith.constant 0 : index
    %c0_608 = arith.constant 0 : index
    %605 = vector.load %arg2[%c0_606, %604, %c0_607, %c0_608] : memref<1x18x12x288xbf16, #tpu.memory_space<vmem>>, vector<1x1x12x256xbf16>
    %606 = vector.shape_cast %605 : vector<1x1x12x256xbf16> to vector<12x256xbf16>
    %c2_609 = arith.constant 2 : index
    %c0_610 = arith.constant 0 : index
    %c0_611 = arith.constant 0 : index
    %c0_612 = arith.constant 0 : index
    %607 = vector.load %arg3[%c2_609, %c0_610, %c0_611, %c0_612] : memref<3x3x8x12xbf16, #tpu.memory_space<vmem>>, vector<1x1x8x12xbf16>
    %608 = vector.shape_cast %607 : vector<1x1x8x12xbf16> to vector<8x12xbf16>
    %cst_613 = arith.constant dense<0.000000e+00> : vector<8x256xf32>
    %609 = tpu.matmul %608, %606, %cst_613 {dimension_numbers = #tpu.dot_dimension_numbers<[1], [0], [0], [1], [0, 0, 1, 1], [], []>} : vector<8x12xbf16>, vector<12x256xbf16>, vector<8x256xf32> -> vector<8x256xf32>
    %610 = arith.addf %602, %609 : vector<8x256xf32>
    %c2_i32_614 = arith.constant 2 : i32
    %611 = arith.addi %553, %c2_i32_614 : i32
    %c0_615 = arith.constant 0 : index
    %612 = arith.index_cast %611 : i32 to index
    %c0_616 = arith.constant 0 : index
    %c16_617 = arith.constant 16 : index
    %613 = vector.load %arg2[%c0_615, %612, %c0_616, %c16_617] : memref<1x18x12x288xbf16, #tpu.memory_space<vmem>>, vector<1x1x12x256xbf16>
    %614 = vector.shape_cast %613 : vector<1x1x12x256xbf16> to vector<12x256xbf16>
    %c2_618 = arith.constant 2 : index
    %c1_619 = arith.constant 1 : index
    %c0_620 = arith.constant 0 : index
    %c0_621 = arith.constant 0 : index
    %615 = vector.load %arg3[%c2_618, %c1_619, %c0_620, %c0_621] : memref<3x3x8x12xbf16, #tpu.memory_space<vmem>>, vector<1x1x8x12xbf16>
    %616 = vector.shape_cast %615 : vector<1x1x8x12xbf16> to vector<8x12xbf16>
    %cst_622 = arith.constant dense<0.000000e+00> : vector<8x256xf32>
    %617 = tpu.matmul %616, %614, %cst_622 {dimension_numbers = #tpu.dot_dimension_numbers<[1], [0], [0], [1], [0, 0, 1, 1], [], []>} : vector<8x12xbf16>, vector<12x256xbf16>, vector<8x256xf32> -> vector<8x256xf32>
    %618 = arith.addf %610, %617 : vector<8x256xf32>
    %c2_i32_623 = arith.constant 2 : i32
    %619 = arith.addi %553, %c2_i32_623 : i32
    %c0_624 = arith.constant 0 : index
    %620 = arith.index_cast %619 : i32 to index
    %c0_625 = arith.constant 0 : index
    %c32_626 = arith.constant 32 : index
    %621 = vector.load %arg2[%c0_624, %620, %c0_625, %c32_626] : memref<1x18x12x288xbf16, #tpu.memory_space<vmem>>, vector<1x1x12x256xbf16>
    %622 = vector.shape_cast %621 : vector<1x1x12x256xbf16> to vector<12x256xbf16>
    %c2_627 = arith.constant 2 : index
    %c2_628 = arith.constant 2 : index
    %c0_629 = arith.constant 0 : index
    %c0_630 = arith.constant 0 : index
    %623 = vector.load %arg3[%c2_627, %c2_628, %c0_629, %c0_630] : memref<3x3x8x12xbf16, #tpu.memory_space<vmem>>, vector<1x1x8x12xbf16>
    %624 = vector.shape_cast %623 : vector<1x1x8x12xbf16> to vector<8x12xbf16>
    %cst_631 = arith.constant dense<0.000000e+00> : vector<8x256xf32>
    %625 = tpu.matmul %624, %622, %cst_631 {dimension_numbers = #tpu.dot_dimension_numbers<[1], [0], [0], [1], [0, 0, 1, 1], [], []>} : vector<8x12xbf16>, vector<12x256xbf16>, vector<8x256xf32> -> vector<8x256xf32>
    %626 = arith.addf %618, %625 : vector<8x256xf32>
    %627 = arith.truncf %626 : vector<8x256xf32> to vector<8x256xbf16>
    %c0_632 = arith.constant 0 : index
    %c1536 = arith.constant 1536 : index
    %628 = vector.load %arg4[%c0_632, %c1536] : memref<8x2048xbf16, #tpu.memory_space<vmem>>, vector<8x256xbf16>
    tpu.vector_store %arg4[%c0_632, %c1536], %627 {strides = array<i32>} : memref<8x2048xbf16, #tpu.memory_space<vmem>>, vector<8x256xbf16>,
    %cst_633 = arith.constant dense<0.000000e+00> : vector<8xf32>
    %629 = vector.multi_reduction <add>, %626, %cst_633 [1] : vector<8x256xf32> to vector<8xf32>
    %630 = vector.shape_cast %629 : vector<8xf32> to vector<8x1xf32>
    %cst_634 = arith.constant 3.906250e-03 : f32
    %631 = vector.broadcast %cst_634 : f32 to vector<8x1xf32>
    %632 = arith.mulf %630, %631 : vector<8x1xf32>
    %633 = vector.broadcast %632 : vector<8x1xf32> to vector<8x256xf32>
    %634 = arith.subf %626, %633 : vector<8x256xf32>
    %c6 = arith.constant 6 : index
    %c0_635 = arith.constant 0 : index
    %c0_636 = arith.constant 0 : index
    %635 = vector.load %arg5[%c6, %c0_635, %c0_636] : memref<8x8x1xf32, #tpu.memory_space<vmem>>, vector<1x8x1xf32>
    %636 = vector.shape_cast %635 : vector<1x8x1xf32> to vector<8x1xf32>
    %637 = vector.shape_cast %630 : vector<8x1xf32> to vector<1x8x1xf32>
    tpu.vector_store %arg5[%c6, %c0_635, %c0_636], %637 {strides = array<i32>} : memref<8x8x1xf32, #tpu.memory_space<vmem>>, vector<1x8x1xf32>,
    %638 = arith.mulf %634, %634 : vector<8x256xf32>
    %cst_637 = arith.constant dense<0.000000e+00> : vector<8xf32>
    %639 = vector.multi_reduction <add>, %638, %cst_637 [1] : vector<8x256xf32> to vector<8xf32>
    %640 = vector.shape_cast %639 : vector<8xf32> to vector<8x1xf32>
    %c6_638 = arith.constant 6 : index
    %c0_639 = arith.constant 0 : index
    %c0_640 = arith.constant 0 : index
    %641 = vector.load %arg6[%c6_638, %c0_639, %c0_640] : memref<8x8x1xf32, #tpu.memory_space<vmem>>, vector<1x8x1xf32>
    %642 = vector.shape_cast %641 : vector<1x8x1xf32> to vector<8x1xf32>
    %643 = vector.shape_cast %640 : vector<8x1xf32> to vector<1x8x1xf32>
    tpu.vector_store %arg6[%c6_638, %c0_639, %c0_640], %643 {strides = array<i32>} : memref<8x8x1xf32, #tpu.memory_space<vmem>>, vector<1x8x1xf32>,
    %c8_i32_641 = arith.constant 8 : i32
    %644 = arith.muli %arg1, %c8_i32_641 : i32
    %c7_i32 = arith.constant 7 : i32
    %645 = arith.addi %644, %c7_i32 : i32
    %cst_642 = arith.constant 0.000000e+00 : f32
    %646 = vector.broadcast %cst_642 : f32 to vector<8x256xf32>
    %c0_i32_643 = arith.constant 0 : i32
    %647 = arith.addi %645, %c0_i32_643 : i32
    %c0_644 = arith.constant 0 : index
    %648 = arith.index_cast %647 : i32 to index
    %c0_645 = arith.constant 0 : index
    %c0_646 = arith.constant 0 : index
    %649 = vector.load %arg2[%c0_644, %648, %c0_645, %c0_646] : memref<1x18x12x288xbf16, #tpu.memory_space<vmem>>, vector<1x1x12x256xbf16>
    %650 = vector.shape_cast %649 : vector<1x1x12x256xbf16> to vector<12x256xbf16>
    %c0_647 = arith.constant 0 : index
    %c0_648 = arith.constant 0 : index
    %c0_649 = arith.constant 0 : index
    %c0_650 = arith.constant 0 : index
    %651 = vector.load %arg3[%c0_647, %c0_648, %c0_649, %c0_650] : memref<3x3x8x12xbf16, #tpu.memory_space<vmem>>, vector<1x1x8x12xbf16>
    %652 = vector.shape_cast %651 : vector<1x1x8x12xbf16> to vector<8x12xbf16>
    %cst_651 = arith.constant dense<0.000000e+00> : vector<8x256xf32>
    %653 = tpu.matmul %652, %650, %cst_651 {dimension_numbers = #tpu.dot_dimension_numbers<[1], [0], [0], [1], [0, 0, 1, 1], [], []>} : vector<8x12xbf16>, vector<12x256xbf16>, vector<8x256xf32> -> vector<8x256xf32>
    %654 = arith.addf %646, %653 : vector<8x256xf32>
    %c0_i32_652 = arith.constant 0 : i32
    %655 = arith.addi %645, %c0_i32_652 : i32
    %c0_653 = arith.constant 0 : index
    %656 = arith.index_cast %655 : i32 to index
    %c0_654 = arith.constant 0 : index
    %c16_655 = arith.constant 16 : index
    %657 = vector.load %arg2[%c0_653, %656, %c0_654, %c16_655] : memref<1x18x12x288xbf16, #tpu.memory_space<vmem>>, vector<1x1x12x256xbf16>
    %658 = vector.shape_cast %657 : vector<1x1x12x256xbf16> to vector<12x256xbf16>
    %c0_656 = arith.constant 0 : index
    %c1_657 = arith.constant 1 : index
    %c0_658 = arith.constant 0 : index
    %c0_659 = arith.constant 0 : index
    %659 = vector.load %arg3[%c0_656, %c1_657, %c0_658, %c0_659] : memref<3x3x8x12xbf16, #tpu.memory_space<vmem>>, vector<1x1x8x12xbf16>
    %660 = vector.shape_cast %659 : vector<1x1x8x12xbf16> to vector<8x12xbf16>
    %cst_660 = arith.constant dense<0.000000e+00> : vector<8x256xf32>
    %661 = tpu.matmul %660, %658, %cst_660 {dimension_numbers = #tpu.dot_dimension_numbers<[1], [0], [0], [1], [0, 0, 1, 1], [], []>} : vector<8x12xbf16>, vector<12x256xbf16>, vector<8x256xf32> -> vector<8x256xf32>
    %662 = arith.addf %654, %661 : vector<8x256xf32>
    %c0_i32_661 = arith.constant 0 : i32
    %663 = arith.addi %645, %c0_i32_661 : i32
    %c0_662 = arith.constant 0 : index
    %664 = arith.index_cast %663 : i32 to index
    %c0_663 = arith.constant 0 : index
    %c32_664 = arith.constant 32 : index
    %665 = vector.load %arg2[%c0_662, %664, %c0_663, %c32_664] : memref<1x18x12x288xbf16, #tpu.memory_space<vmem>>, vector<1x1x12x256xbf16>
    %666 = vector.shape_cast %665 : vector<1x1x12x256xbf16> to vector<12x256xbf16>
    %c0_665 = arith.constant 0 : index
    %c2_666 = arith.constant 2 : index
    %c0_667 = arith.constant 0 : index
    %c0_668 = arith.constant 0 : index
    %667 = vector.load %arg3[%c0_665, %c2_666, %c0_667, %c0_668] : memref<3x3x8x12xbf16, #tpu.memory_space<vmem>>, vector<1x1x8x12xbf16>
    %668 = vector.shape_cast %667 : vector<1x1x8x12xbf16> to vector<8x12xbf16>
    %cst_669 = arith.constant dense<0.000000e+00> : vector<8x256xf32>
    %669 = tpu.matmul %668, %666, %cst_669 {dimension_numbers = #tpu.dot_dimension_numbers<[1], [0], [0], [1], [0, 0, 1, 1], [], []>} : vector<8x12xbf16>, vector<12x256xbf16>, vector<8x256xf32> -> vector<8x256xf32>
    %670 = arith.addf %662, %669 : vector<8x256xf32>
    %c1_i32_670 = arith.constant 1 : i32
    %671 = arith.addi %645, %c1_i32_670 : i32
    %c0_671 = arith.constant 0 : index
    %672 = arith.index_cast %671 : i32 to index
    %c0_672 = arith.constant 0 : index
    %c0_673 = arith.constant 0 : index
    %673 = vector.load %arg2[%c0_671, %672, %c0_672, %c0_673] : memref<1x18x12x288xbf16, #tpu.memory_space<vmem>>, vector<1x1x12x256xbf16>
    %674 = vector.shape_cast %673 : vector<1x1x12x256xbf16> to vector<12x256xbf16>
    %c1_674 = arith.constant 1 : index
    %c0_675 = arith.constant 0 : index
    %c0_676 = arith.constant 0 : index
    %c0_677 = arith.constant 0 : index
    %675 = vector.load %arg3[%c1_674, %c0_675, %c0_676, %c0_677] : memref<3x3x8x12xbf16, #tpu.memory_space<vmem>>, vector<1x1x8x12xbf16>
    %676 = vector.shape_cast %675 : vector<1x1x8x12xbf16> to vector<8x12xbf16>
    %cst_678 = arith.constant dense<0.000000e+00> : vector<8x256xf32>
    %677 = tpu.matmul %676, %674, %cst_678 {dimension_numbers = #tpu.dot_dimension_numbers<[1], [0], [0], [1], [0, 0, 1, 1], [], []>} : vector<8x12xbf16>, vector<12x256xbf16>, vector<8x256xf32> -> vector<8x256xf32>
    %678 = arith.addf %670, %677 : vector<8x256xf32>
    %c1_i32_679 = arith.constant 1 : i32
    %679 = arith.addi %645, %c1_i32_679 : i32
    %c0_680 = arith.constant 0 : index
    %680 = arith.index_cast %679 : i32 to index
    %c0_681 = arith.constant 0 : index
    %c16_682 = arith.constant 16 : index
    %681 = vector.load %arg2[%c0_680, %680, %c0_681, %c16_682] : memref<1x18x12x288xbf16, #tpu.memory_space<vmem>>, vector<1x1x12x256xbf16>
    %682 = vector.shape_cast %681 : vector<1x1x12x256xbf16> to vector<12x256xbf16>
    %c1_683 = arith.constant 1 : index
    %c1_684 = arith.constant 1 : index
    %c0_685 = arith.constant 0 : index
    %c0_686 = arith.constant 0 : index
    %683 = vector.load %arg3[%c1_683, %c1_684, %c0_685, %c0_686] : memref<3x3x8x12xbf16, #tpu.memory_space<vmem>>, vector<1x1x8x12xbf16>
    %684 = vector.shape_cast %683 : vector<1x1x8x12xbf16> to vector<8x12xbf16>
    %cst_687 = arith.constant dense<0.000000e+00> : vector<8x256xf32>
    %685 = tpu.matmul %684, %682, %cst_687 {dimension_numbers = #tpu.dot_dimension_numbers<[1], [0], [0], [1], [0, 0, 1, 1], [], []>} : vector<8x12xbf16>, vector<12x256xbf16>, vector<8x256xf32> -> vector<8x256xf32>
    %686 = arith.addf %678, %685 : vector<8x256xf32>
    %c1_i32_688 = arith.constant 1 : i32
    %687 = arith.addi %645, %c1_i32_688 : i32
    %c0_689 = arith.constant 0 : index
    %688 = arith.index_cast %687 : i32 to index
    %c0_690 = arith.constant 0 : index
    %c32_691 = arith.constant 32 : index
    %689 = vector.load %arg2[%c0_689, %688, %c0_690, %c32_691] : memref<1x18x12x288xbf16, #tpu.memory_space<vmem>>, vector<1x1x12x256xbf16>
    %690 = vector.shape_cast %689 : vector<1x1x12x256xbf16> to vector<12x256xbf16>
    %c1_692 = arith.constant 1 : index
    %c2_693 = arith.constant 2 : index
    %c0_694 = arith.constant 0 : index
    %c0_695 = arith.constant 0 : index
    %691 = vector.load %arg3[%c1_692, %c2_693, %c0_694, %c0_695] : memref<3x3x8x12xbf16, #tpu.memory_space<vmem>>, vector<1x1x8x12xbf16>
    %692 = vector.shape_cast %691 : vector<1x1x8x12xbf16> to vector<8x12xbf16>
    %cst_696 = arith.constant dense<0.000000e+00> : vector<8x256xf32>
    %693 = tpu.matmul %692, %690, %cst_696 {dimension_numbers = #tpu.dot_dimension_numbers<[1], [0], [0], [1], [0, 0, 1, 1], [], []>} : vector<8x12xbf16>, vector<12x256xbf16>, vector<8x256xf32> -> vector<8x256xf32>
    %694 = arith.addf %686, %693 : vector<8x256xf32>
    %c2_i32_697 = arith.constant 2 : i32
    %695 = arith.addi %645, %c2_i32_697 : i32
    %c0_698 = arith.constant 0 : index
    %696 = arith.index_cast %695 : i32 to index
    %c0_699 = arith.constant 0 : index
    %c0_700 = arith.constant 0 : index
    %697 = vector.load %arg2[%c0_698, %696, %c0_699, %c0_700] : memref<1x18x12x288xbf16, #tpu.memory_space<vmem>>, vector<1x1x12x256xbf16>
    %698 = vector.shape_cast %697 : vector<1x1x12x256xbf16> to vector<12x256xbf16>
    %c2_701 = arith.constant 2 : index
    %c0_702 = arith.constant 0 : index
    %c0_703 = arith.constant 0 : index
    %c0_704 = arith.constant 0 : index
    %699 = vector.load %arg3[%c2_701, %c0_702, %c0_703, %c0_704] : memref<3x3x8x12xbf16, #tpu.memory_space<vmem>>, vector<1x1x8x12xbf16>
    %700 = vector.shape_cast %699 : vector<1x1x8x12xbf16> to vector<8x12xbf16>
    %cst_705 = arith.constant dense<0.000000e+00> : vector<8x256xf32>
    %701 = tpu.matmul %700, %698, %cst_705 {dimension_numbers = #tpu.dot_dimension_numbers<[1], [0], [0], [1], [0, 0, 1, 1], [], []>} : vector<8x12xbf16>, vector<12x256xbf16>, vector<8x256xf32> -> vector<8x256xf32>
    %702 = arith.addf %694, %701 : vector<8x256xf32>
    %c2_i32_706 = arith.constant 2 : i32
    %703 = arith.addi %645, %c2_i32_706 : i32
    %c0_707 = arith.constant 0 : index
    %704 = arith.index_cast %703 : i32 to index
    %c0_708 = arith.constant 0 : index
    %c16_709 = arith.constant 16 : index
    %705 = vector.load %arg2[%c0_707, %704, %c0_708, %c16_709] : memref<1x18x12x288xbf16, #tpu.memory_space<vmem>>, vector<1x1x12x256xbf16>
    %706 = vector.shape_cast %705 : vector<1x1x12x256xbf16> to vector<12x256xbf16>
    %c2_710 = arith.constant 2 : index
    %c1_711 = arith.constant 1 : index
    %c0_712 = arith.constant 0 : index
    %c0_713 = arith.constant 0 : index
    %707 = vector.load %arg3[%c2_710, %c1_711, %c0_712, %c0_713] : memref<3x3x8x12xbf16, #tpu.memory_space<vmem>>, vector<1x1x8x12xbf16>
    %708 = vector.shape_cast %707 : vector<1x1x8x12xbf16> to vector<8x12xbf16>
    %cst_714 = arith.constant dense<0.000000e+00> : vector<8x256xf32>
    %709 = tpu.matmul %708, %706, %cst_714 {dimension_numbers = #tpu.dot_dimension_numbers<[1], [0], [0], [1], [0, 0, 1, 1], [], []>} : vector<8x12xbf16>, vector<12x256xbf16>, vector<8x256xf32> -> vector<8x256xf32>
    %710 = arith.addf %702, %709 : vector<8x256xf32>
    %c2_i32_715 = arith.constant 2 : i32
    %711 = arith.addi %645, %c2_i32_715 : i32
    %c0_716 = arith.constant 0 : index
    %712 = arith.index_cast %711 : i32 to index
    %c0_717 = arith.constant 0 : index
    %c32_718 = arith.constant 32 : index
    %713 = vector.load %arg2[%c0_716, %712, %c0_717, %c32_718] : memref<1x18x12x288xbf16, #tpu.memory_space<vmem>>, vector<1x1x12x256xbf16>
    %714 = vector.shape_cast %713 : vector<1x1x12x256xbf16> to vector<12x256xbf16>
    %c2_719 = arith.constant 2 : index
    %c2_720 = arith.constant 2 : index
    %c0_721 = arith.constant 0 : index
    %c0_722 = arith.constant 0 : index
    %715 = vector.load %arg3[%c2_719, %c2_720, %c0_721, %c0_722] : memref<3x3x8x12xbf16, #tpu.memory_space<vmem>>, vector<1x1x8x12xbf16>
    %716 = vector.shape_cast %715 : vector<1x1x8x12xbf16> to vector<8x12xbf16>
    %cst_723 = arith.constant dense<0.000000e+00> : vector<8x256xf32>
    %717 = tpu.matmul %716, %714, %cst_723 {dimension_numbers = #tpu.dot_dimension_numbers<[1], [0], [0], [1], [0, 0, 1, 1], [], []>} : vector<8x12xbf16>, vector<12x256xbf16>, vector<8x256xf32> -> vector<8x256xf32>
    %718 = arith.addf %710, %717 : vector<8x256xf32>
    %719 = arith.truncf %718 : vector<8x256xf32> to vector<8x256xbf16>
    %c0_724 = arith.constant 0 : index
    %c1792 = arith.constant 1792 : index
    %720 = vector.load %arg4[%c0_724, %c1792] : memref<8x2048xbf16, #tpu.memory_space<vmem>>, vector<8x256xbf16>
    tpu.vector_store %arg4[%c0_724, %c1792], %719 {strides = array<i32>} : memref<8x2048xbf16, #tpu.memory_space<vmem>>, vector<8x256xbf16>,
    %cst_725 = arith.constant dense<0.000000e+00> : vector<8xf32>
    %721 = vector.multi_reduction <add>, %718, %cst_725 [1] : vector<8x256xf32> to vector<8xf32>
    %722 = vector.shape_cast %721 : vector<8xf32> to vector<8x1xf32>
    %cst_726 = arith.constant 3.906250e-03 : f32
    %723 = vector.broadcast %cst_726 : f32 to vector<8x1xf32>
    %724 = arith.mulf %722, %723 : vector<8x1xf32>
    %725 = vector.broadcast %724 : vector<8x1xf32> to vector<8x256xf32>
    %726 = arith.subf %718, %725 : vector<8x256xf32>
    %c7 = arith.constant 7 : index
    %c0_727 = arith.constant 0 : index
    %c0_728 = arith.constant 0 : index
    %727 = vector.load %arg5[%c7, %c0_727, %c0_728] : memref<8x8x1xf32, #tpu.memory_space<vmem>>, vector<1x8x1xf32>
    %728 = vector.shape_cast %727 : vector<1x8x1xf32> to vector<8x1xf32>
    %729 = vector.shape_cast %722 : vector<8x1xf32> to vector<1x8x1xf32>
    tpu.vector_store %arg5[%c7, %c0_727, %c0_728], %729 {strides = array<i32>} : memref<8x8x1xf32, #tpu.memory_space<vmem>>, vector<1x8x1xf32>,
    %730 = arith.mulf %726, %726 : vector<8x256xf32>
    %cst_729 = arith.constant dense<0.000000e+00> : vector<8xf32>
    %731 = vector.multi_reduction <add>, %730, %cst_729 [1] : vector<8x256xf32> to vector<8xf32>
    %732 = vector.shape_cast %731 : vector<8xf32> to vector<8x1xf32>
    %c7_730 = arith.constant 7 : index
    %c0_731 = arith.constant 0 : index
    %c0_732 = arith.constant 0 : index
    %733 = vector.load %arg6[%c7_730, %c0_731, %c0_732] : memref<8x8x1xf32, #tpu.memory_space<vmem>>, vector<1x8x1xf32>
    %734 = vector.shape_cast %733 : vector<1x8x1xf32> to vector<8x1xf32>
    %735 = vector.shape_cast %732 : vector<8x1xf32> to vector<1x8x1xf32>
    tpu.vector_store %arg6[%c7_730, %c0_731, %c0_732], %735 {strides = array<i32>} : memref<8x8x1xf32, #tpu.memory_space<vmem>>, vector<1x8x1xf32>,
    return
  }
  func.func @transform_0(%arg0: i32, %arg1: i32) -> (i32, i32, i32, i32) {
    %c0_i32 = arith.constant 0 : i32
    %c0_i32_0 = arith.constant 0 : i32
    %c0_i32_1 = arith.constant 0 : i32
    %c0_i32_2 = arith.constant 0 : i32
    return %arg0, %c0_i32, %c0_i32_0, %c0_i32_1 : i32, i32, i32, i32
  }
  func.func @transform_1(%arg0: i32, %arg1: i32) -> (i32, i32, i32, i32) {
    %c0_i32 = arith.constant 0 : i32
    %c0_i32_0 = arith.constant 0 : i32
    %c0_i32_1 = arith.constant 0 : i32
    %c0_i32_2 = arith.constant 0 : i32
    %c0_i32_3 = arith.constant 0 : i32
    return %c0_i32, %c0_i32_0, %c0_i32_1, %c0_i32_2 : i32, i32, i32, i32
  }
  func.func @transform_2(%arg0: i32, %arg1: i32) -> (i32, i32) {
    %c2_i32 = arith.constant 2 : i32
    %0 = arith.muli %arg0, %c2_i32 : i32
    %1 = arith.addi %0, %arg1 : i32
    %c0_i32 = arith.constant 0 : i32
    %c0_i32_0 = arith.constant 0 : i32
    return %c0_i32, %1 : i32, i32
  }
  func.func @transform_3(%arg0: i32, %arg1: i32) -> (i32, i32, i32) {
    %c2_i32 = arith.constant 2 : i32
    %0 = arith.muli %arg0, %c2_i32 : i32
    %1 = arith.addi %0, %arg1 : i32
    %c0_i32 = arith.constant 0 : i32
    %c0_i32_0 = arith.constant 0 : i32
    %c0_i32_1 = arith.constant 0 : i32
    return %1, %c0_i32, %c0_i32_0 : i32, i32, i32
  }
  func.func @transform_4(%arg0: i32, %arg1: i32) -> (i32, i32, i32) {
    %c2_i32 = arith.constant 2 : i32
    %0 = arith.muli %arg0, %c2_i32 : i32
    %1 = arith.addi %0, %arg1 : i32
    %c0_i32 = arith.constant 0 : i32
    %c0_i32_0 = arith.constant 0 : i32
    %c0_i32_1 = arith.constant 0 : i32
    return %1, %c0_i32, %c0_i32_0 : i32, i32, i32
  }
}

</mosaic_0001>

<bundles_post_ra>
// kernel: tpu_custom_call.1
= control target key start
LH: loop header
LB: loop body
LE: loop exit
PB: predicated region body
PF: predicated region fallthrough
CT: control target
= control target key end

     0   :  { %10 = vsyncpa [#allocation3], 0  ;;  %s7768_s0 = inlined_call_operand.vmem [shape: bf16[2,18,12,288], index: 0, kind: input, shape index: {}]   ;;  %s7769_s1 = inlined_call_operand.vmem [shape: bf16[3,3,8,12], index: 1, kind: input, shape index: {}]   ;;  %s7770_s2 = inlined_call_operand.hbm [shape: bf16[8,8192], index: 2, kind: output, shape index: {0}]   ;;  %s7771_s3 = inlined_call_operand.vmem [shape: f32[32,8,1], index: 3, kind: output, shape index: {1}]   ;;  %s7772_s4 = inlined_call_operand.vmem [shape: f32[32,8,1], index: 4, kind: output, shape index: {2}]  }
   0x1   :  { %12 = vsyncpa [#allocation3 + $0x1], 0  ;;  %s6526_s15 = smov 0   ;;  %s6528_s16 = smov 0  }
   0x2   :  { %s6530_s17 = smov 0   ;;  %s6532_s18 = smov 0  }
   0x3   :  { %s6534_s19 = smov 0   ;;  %s6536_s20 = smov 0  }
   0x4   :  { %s6538_s21 = smov 0   ;;  %s6540_s22 = smov 0  }
   0x5 LB: > { %s5449_s23 = sadd.s32 4294967295, %s6495_s22   ;;  %s27_s24 = sadd.s32 1, %s6487_s20  ;;  %s6495_s22 = sphi %s6540_s22, %s18_s22   ;;  %s6491_s21 = sphi %s6538_s21, %s7781_s21   ;;  %s6487_s20 = sphi %s6536_s20, %s7780_s20   ;;  %s6483_s19 = sphi %s6534_s19, %s7779_s19   ;;  %s6479_s18 = sphi %s6532_s18, %s7778_s18   ;;  %s6475_s17 = sphi %s6530_s17, %s7777_s17   ;;  %s6471_s16 = sphi %s6528_s16, %s7776_s16   ;;  %s6467_s15 = sphi %s6526_s15, %s7775_s15  }
   0x6   : > { %s30_s25 = sadd.s32 1, %s6491_s21  ;;  %p28_p0 = scmp.ge.s32.totalorder %s27_s24, 2 }
   0x7   : > { %s5451_s26 = sshll.u32 %s6491_s21, 1  ;;  %s5450_s27 = sadd.s32 4294967294, %s6495_s22  }
   0x8   : > { %s82_s28 = sadd.s32 %s6487_s20, %s5451_s26  ;;  %s7783_s24 = smov (%p28_p0, %s27_s24), 0 }
   0x9   : > { %s7785_s25 = smov (!%p28_p0, %s30_s25), %s6491_s21  ;;  %p98_p1 = scmp.ne.s32.totalorder %s6475_s17, %s6471_s16 }
   0xa   : > { %p99_p2 = scmp.eq.s32.totalorder %s5449_s23, 3  ;;  %p32_p3 = scmp.ge.s32.totalorder %s7785_s25, 2 }
   0xb   : > { %p104_p4 = scmp.ne.s32.totalorder %s6471_s16, %s6467_s15  ;;  %p105_p6 = scmp.eq.s32.totalorder %s5450_s27, 3 }
   0xc   : > { %p6579_p5 = por %p99_p2, %p98_p1  ;;  %s7787_s25 = smov (%p32_p3, %s7785_s25), 0 }
   0xd   : > { %p6585_p7 = por %p105_p6, %p104_p4  ;;  %p5459_p8 = scmp.ge.s32.totalorder %s6495_s22, 1 }
   0xe   : > { %s5452_s5 = sshll.u32 %s7787_s25, 1  ;;  %p194_p9 = scmp.lt.s32.totalorder %s6495_s22, 5 }
   0xf   : > { %s84_s6 = sadd.s32 %s5452_s5, %s7783_s24  ;;  %s88_s7 = sadd.s32 1, %s6475_s17 }
  0x10   : > { %s85_s8 = ssub.s32 %s82_s28, %s84_s6  ;;  %p195_p10 = pnand %p5459_p8, %p194_p9 }
  0x11   : > { %p86_p11 = scmp.eq.s32.totalorder %s85_s8, 0  ;;  %p234_p12 = scmp.lt.s32.totalorder (!%p195_p10), %s6483_s19, 1  ;;  %v6497_v0 = vmov (!%p195_p10), 0   ;;  %vm293_vm0 = vcmask (!%p195_p10), 916480   ;;  %vm300_vm1 = vcmask (!%p195_p10), 1045504   ;;  %vm296_vm2 = vcmask (!%p195_p10), 97280  }
  0x12   : > { %198 = sbr.rel (%p195_p10) target bundleno = 1077 (0x435), region = 28  ;;  %339 = vmatprep.mubr.bf16.mxu0 (!%p195_p10), %v6497_v0  ;;  %970 = vmatprep.mubr.bf16.mxu1 (!%p195_p10), %v6497_v0  ;;  %s6498_s27 = smov (!%p195_p10), 112   ;;  %v5471_v58 = vld [vmem:[%s7769_s1 + $0x4] sm:$0xf] (!%p195_p10)  ;;  %vm406_vm3 = vcmask (!%p195_p10), 785408   ;;  %vm894_vm4 = vcmask (!%p195_p10), 7168  }
  0x13   : > { %s6595_s9 = scalar_select %p86_p11, %s6475_s17, %s88_s7  }
  0x14   : > { %s5953_s11 = smul.u32 (!%p195_p10), 192, %s6479_s18  ;;  %s6499_s28 = smov (!%p195_p10), 96  }
  0x15   : > { %s213_s13 = sand.u32 (!%p195_p10), 1, %s6471_s16  }
  0x16   : > { %s5460_s14 = sshll.u32 (!%p195_p10), %s213_s13, 6 }
  0x17   : > { %s7492_s7 = scalar_lea.vmem (!%p195_p10), [#allocation2], %s5460_s14 }
  0x19   : > { %s235_s10 = scalar_select %p234_p12, %s6483_s19, 1 }
  0x1b   : > { %s6219_s12 = smul.u32 432, %s235_s10 }
  0x1d   : > { %s238_s23 = scalar_lea.vmem %s7768_s0, %s6219_s12 }
  0x1e   : > { %s6603_s26 = scalar_lea.vmem %s238_s23, %s5953_s11  ;;  %s5462_s11 = sshll.u32 %s6483_s19, 1 }
  0x1f   : > { %v6294_v1 = vld [vmem:[%s6603_s26 + $0x8] ss:$12 sps:$4 sm:$0x3f]   ;;  %v6609_v2 = vld [vmem:[%s6603_s26 + $0x18] sm:$0xff]  ;;  %v6731_v38 = vld [vmem:[%s6603_s26 + $0x60] sm:$0xff]  ;;  %s6500_s23 = smov [#allocation2]  }
  0x20   : > { %v6612_v3 = vld [vmem:[%s6603_s26] ss:$12 sps:$4 sm:$0x3f]   ;;  %v5528_v4 = vld [vmem:[%s6603_s26 + $0x24] sm:$0x33]  ;;  %291 = vrot.lane.b32.xlu1 %v6294_v1, %s6498_s27  ;;  %v6644_v10 = vld [vmem:[%s6603_s26 + $0x30] sm:$0xff] }
  0x21   : > { %v6617_v5 = vcombine.low %v6609_v2, %v5528_v4  ;;  %287 = vrot.lane.b32.xlu0 %v6612_v3, %s6498_s27  ;;  %v6622_v6 = vld [vmem:[%s6603_s26 + $0x4] ss:$12 sps:$4 sm:$0x3f]   ;;  %v6299_v7 = vld [vmem:[%s6603_s26 + $0x20] ss:$12 sps:$4 sm:$0x3f]   ;;  %v6630_v8 = vcombine.high %v6609_v2, %v5528_v4 }
  0x22   : > { %v5493_v9 = vld [vmem:[%s6603_s26 + $0x24] sm:$0x33]  ;;  %v5551_v13 = vld [vmem:[%s6603_s26 + $0x3c] sm:$0x33]  ;;  %v5573_v22 = vld [vmem:[%s6603_s26 + $0x54] sm:$0x33] }
  0x23   : > { %v5497_v11 = vcombine.high %v6609_v2, %v5493_v9  ;;  %v5496_v12 = vcombine.low %v6609_v2, %v5493_v9  ;;  %v6303_v14 = vld [vmem:[%s6603_s26 + $0x20] ss:$12 sps:$4 sm:$0x3f]   ;;  %v5554_v15 = vcombine.low %v6644_v10, %v5551_v13  ;;  %v6306_v16 = vld [vmem:[%s6603_s26 + $0x38] ss:$12 sps:$4 sm:$0x3f]   ;;  %v5555_v17 = vcombine.high %v6644_v10, %v5551_v13 }
  0x24   : > { %921 = vrot.lane.b32.xlu1 %v6617_v5, %s6498_s27  ;;  %v5515_v18 = vld [vmem:[%s6603_s26 + $0x3c] sm:$0x33]  ;;  %v6672_v21 = vld [vmem:[%s6603_s26 + $0x48] sm:$0xff]  ;;  %v6309_v24 = vld [vmem:[%s6603_s26 + $0x38] ss:$12 sps:$4 sm:$0x3f]  }
  0x25   : > { %289 = vrot.lane.b32.xlu0 %v6622_v6, %s6498_s27  ;;  %v5519_v19 = vcombine.high %v6644_v10, %v5515_v18  ;;  %v5518_v20 = vcombine.low %v6644_v10, %v5515_v18  ;;  %v5576_v23 = vcombine.low %v6672_v21, %v5573_v22  ;;  %v6312_v25 = vld [vmem:[%s6603_s26 + $0x50] ss:$12 sps:$4 sm:$0x3f]   ;;  %v5577_v26 = vcombine.high %v6672_v21, %v5573_v22  ;;  %v5648_v30 = vld [vmem:[%s6603_s26 + $0x54] sm:$0x33] }
  0x26   : > { %v5588_v27 = vld [vmem:[%s6603_s26 + $0x3c] sm:$0x33]  ;;  %v6702_v31 = vcombine.low %v6672_v21, %v5648_v30  ;;  %v6315_v32 = vld [vmem:[%s6603_s26 + $0x38] ss:$12 sps:$4 sm:$0x3f]   ;;  %v6712_v34 = vcombine.high %v6672_v21, %v5648_v30  ;;  %v352_v60 = vsel %vm300_vm1, %v6612_v3, 0 }
  0x27   : > { %v6692_v28 = vcombine.high %v6644_v10, %v5588_v27  ;;  %v6696_v29 = vcombine.low %v6644_v10, %v5588_v27  ;;  %v6318_v33 = vld [vmem:[%s6603_s26 + $0x50] ss:$12 sps:$4 sm:$0x3f]   ;;  %v5611_v35 = vld [vmem:[%s6603_s26 + $0x54] sm:$0x33]  ;;  %v983_v9 = vsel %vm300_vm1, %v6617_v5, 0 }
  0x28   : > { %925 = vrot.lane.b32.xlu1 %v6299_v7, %s6498_s27  ;;  %v5615_v36 = vcombine.high %v6672_v21, %v5611_v35  ;;  %v5614_v37 = vcombine.low %v6672_v21, %v5611_v35  ;;  %v5671_v39 = vld [vmem:[%s6603_s26 + $0x6c] sm:$0x33]  ;;  %v6326_v42 = vld [vmem:[%s6603_s26 + $0x68] ss:$12 sps:$4 sm:$0x3f]   ;;  %v6754_v49 = vld [vmem:[%s6603_s26 + $0x78] sm:$0xff] }
  0x29   : > { %923 = vrot.lane.b32.xlu0 %v6630_v8, %s6498_s27  ;;  %v5674_v40 = vcombine.low %v6731_v38, %v5671_v39  ;;  %v6321_v41 = vld [vmem:[%s6603_s26 + $0x50] ss:$12 sps:$4 sm:$0x3f]   ;;  %v5675_v43 = vcombine.high %v6731_v38, %v5671_v39  ;;  %v5693_v50 = vld [vmem:[%s6603_s26 + $0x84] sm:$0x33] }
  0x2a   : > { %v5633_v44 = vld [vmem:[%s6603_s26 + $0x6c] sm:$0x33]  ;;  %v5696_v55 = vcombine.low %v6754_v49, %v5693_v50  ;;  %v6331_v63 = vld [vmem:[%s6603_s26 + $0x68] ss:$12 sps:$4 sm:$0x3f]  }
  0x2b   : > { %v5637_v47 = vcombine.high %v6731_v38, %v5633_v44  ;;  %v5636_v48 = vcombine.low %v6731_v38, %v5633_v44  ;;  %v5768_v35 = vld [vmem:[%s6603_s26 + $0x84] sm:$0x33] }
  0x2c   : > { %402 = vrot.lane.b32.xlu1 %v6622_v6, %s6499_s28 }
  0x2d   : > { %400 = vrot.lane.b32.xlu0 %v6612_v3, %s6499_s28  ;;  %v5531_v3 = vld [vmem:[%s7769_s1 + $0x4] sm:$0xf] }
  0x30   : > { %1030 = vrot.lane.b32.xlu1 %v6617_v5, %s6499_s28 }
  0x31   : > { %404 = vrot.lane.b32.xlu0 %v6294_v1, %s6499_s28  ;;  %v6336_v1 = vld [vmem:[%s6603_s26 + $0x80] ss:$12 sps:$4 sm:$0x3f]  }
  0x34   : > { %1034 = vrot.lane.b32.xlu1 %v6299_v7, %s6499_s28 }
  0x35   : > { %1032 = vrot.lane.b32.xlu0 %v6630_v8, %s6499_s28 }
  0x38   : > { %550 = vrot.lane.b32.xlu1 %v5497_v11, %s6498_s27 }
  0x39   : > { %548 = vrot.lane.b32.xlu0 %v5496_v12, %s6498_s27 }
  0x3c   : > { %1171 = vrot.lane.b32.xlu1 %v5554_v15, %s6498_s27 }
  0x3d   : > { %552 = vrot.lane.b32.xlu0 %v6303_v14, %s6498_s27 }
  0x40   : > { %1175 = vrot.lane.b32.xlu1 %v6306_v16, %s6498_s27 }
  0x41   : > { %1173 = vrot.lane.b32.xlu0 %v5555_v17, %s6498_s27 }
  0x44   : > { %612 = vrot.lane.b32.xlu1 %v5497_v11, %s6499_s28  ;;  %v5697_v11 = vcombine.high %v6754_v49, %v5693_v50  ;;  %v5539_v50 = vld [vmem:[%s7769_s1 + $0x8] sm:$0xf] }
  0x45   : > { %610 = vrot.lane.b32.xlu0 %v5496_v12, %s6499_s28 }
  0x48   : > { %1232 = vrot.lane.b32.xlu1 %v5554_v15, %s6499_s28  ;;  %v269_v15 = vld [vmem:[%s7769_s1] sm:$0xf] }
  0x49   : > { %614 = vrot.lane.b32.xlu0 %v6303_v14, %s6499_s28  ;;  %v5485_v14 = vld [vmem:[%s6603_s26 + $0x24] sm:$0x33] }
  0x4c   : > { %1236 = vrot.lane.b32.xlu1 %v6306_v16, %s6499_s28 }
  0x4d   : > { %1234 = vrot.lane.b32.xlu0 %v5555_v17, %s6499_s28 }
  0x50   : > { %759 = vrot.lane.b32.xlu1 %v5519_v19, %s6498_s27 }
  0x51   : > { %757 = vrot.lane.b32.xlu0 %v5518_v20, %s6498_s27 }
  0x54   : > { %1377 = vrot.lane.b32.xlu1 %v5576_v23, %s6498_s27 }
  0x55   : > { %761 = vrot.lane.b32.xlu0 %v6309_v24, %s6498_s27 }
  0x58   : > { %1381 = vrot.lane.b32.xlu1 %v6312_v25, %s6498_s27 }
  0x59   : > { %1379 = vrot.lane.b32.xlu0 %v5577_v26, %s6498_s27 }
  0x5c   : > { %821 = vrot.lane.b32.xlu1 %v5519_v19, %s6499_s28  ;;  %v5488_v19 = vcombine.high %v6609_v2, %v5485_v14 }
  0x5d   : > { %819 = vrot.lane.b32.xlu0 %v5518_v20, %s6499_s28 }
  0x60   : > { %1438 = vrot.lane.b32.xlu1 %v5576_v23, %s6499_s28  ;;  %v5543_v23 = vld [vmem:[%s6603_s26 + $0x3c] sm:$0x33] }
  0x61   : > { %823 = vrot.lane.b32.xlu0 %v6309_v24, %s6499_s28  ;;  %v5708_v24 = vld [vmem:[%s6603_s26 + $0x6c] sm:$0x33]  ;;  %v5545_v44 = vcombine.low %v6644_v10, %v5543_v23 }
  0x64   : > { %1442 = vrot.lane.b32.xlu1 %v6312_v25, %s6499_s28  ;;  %v904_v25 = vld [vmem:[%s7769_s1] sm:$0xf] }
  0x65   : > { %1440 = vrot.lane.b32.xlu0 %v5577_v26, %s6499_s28 }
  0x68   : > { %1543 = vrot.lane.b32.xlu1 %v6692_v28, %s6498_s27 }
  0x69   : > { %1541 = vrot.lane.b32.xlu0 %v6696_v29, %s6498_s27 }
  0x6c   : > { %2161 = vrot.lane.b32.xlu1 %v6702_v31, %s6498_s27 }
  0x6d   : > { %1545 = vrot.lane.b32.xlu0 %v6315_v32, %s6498_s27 }
  0x70   : > { %2165 = vrot.lane.b32.xlu1 %v6318_v33, %s6498_s27 }
  0x71   : > { %2163 = vrot.lane.b32.xlu0 %v6712_v34, %s6498_s27 }
  0x74   : > { %1652 = vrot.lane.b32.xlu1 %v6692_v28, %s6499_s28 }
  0x75   : > { %1650 = vrot.lane.b32.xlu0 %v6696_v29, %s6499_s28 }
  0x78   : > { %2270 = vrot.lane.b32.xlu1 %v6702_v31, %s6499_s28 }
  0x79   : > { %1654 = vrot.lane.b32.xlu0 %v6315_v32, %s6499_s28  ;;  %v5546_v32 = vcombine.high %v6644_v10, %v5543_v23  ;;  %v5565_v23 = vld [vmem:[%s6603_s26 + $0x54] sm:$0x33] }
  0x7c   : > { %2274 = vrot.lane.b32.xlu1 %v6318_v33, %s6499_s28  ;;  %v6821_v33 = vcombine.high %v6731_v38, %v5708_v24 }
  0x7d   : > { %2272 = vrot.lane.b32.xlu0 %v6712_v34, %s6499_s28 }
  0x80   : > { %1793 = vrot.lane.b32.xlu1 %v5615_v36, %s6498_s27 }
  0x81   : > { %1791 = vrot.lane.b32.xlu0 %v5614_v37, %s6498_s27 }
  0x84   : > { %2411 = vrot.lane.b32.xlu1 %v5674_v40, %s6498_s27 }
  0x85   : > { %1795 = vrot.lane.b32.xlu0 %v6321_v41, %s6498_s27 }
  0x88   : > { %2415 = vrot.lane.b32.xlu1 %v6326_v42, %s6498_s27 }
  0x89   : > { %2413 = vrot.lane.b32.xlu0 %v5675_v43, %s6498_s27 }
  0x8c   : > { %1854 = vrot.lane.b32.xlu1 %v5615_v36, %s6499_s28 }
  0x8d   : > { %1852 = vrot.lane.b32.xlu0 %v5614_v37, %s6499_s28  ;;  %v5487_v37 = vcombine.low %v6609_v2, %v5485_v14 }
  0x90   : > { %2472 = vrot.lane.b32.xlu1 %v5674_v40, %s6499_s28  ;;  %v6830_v40 = vcombine.low %v6731_v38, %v5708_v24 }
  0x91   : > { %1856 = vrot.lane.b32.xlu0 %v6321_v41, %s6499_s28  ;;  %v6835_v41 = vcombine.low %v6754_v49, %v5768_v35 }
  0x92   : > { %v292_v45 = vpop.permute.xlu1 %291 }
  0x93   : > { %v288_v46 = vpop.permute.xlu0 %287 }
  0x94   : > { %2476 = vrot.lane.b32.xlu1 %v6326_v42, %s6499_s28  ;;  %v5479_v42 = vld [vmem:[%s7769_s1 + $0x8] sm:$0xf] }
  0x95   : > { %2474 = vrot.lane.b32.xlu0 %v5675_v43, %s6499_s28  ;;  %v481_v43 = vsel %vm300_vm1, %v5487_v37, 0 }
  0x96   : > { %v922_v51 = vpop.permute.xlu1 %921 }
  0x97   : > { %v290_v52 = vpop.permute.xlu0 %289 }
  0x98   : > { %v295_v53 = vsel %vm293_vm0, %v290_v52, %v292_v45  ;;  %v294_v54 = vsel %vm293_vm0, %v288_v46, %v290_v52  ;;  %1999 = vrot.lane.b32.xlu1 %v5637_v47, %s6498_s27  ;;  %v1105_v52 = vsel %vm300_vm1, %v5545_v44, 0 }
  0x99   : > { %5475 = vmatprep.subr.msk.bf16.mxu0 %vm300_vm1, %v295_v53  ;;  %v302_v56 = vsel %vm300_vm1, %v294_v54, 0  ;;  %1997 = vrot.lane.b32.xlu0 %v5636_v48, %s6498_s27 }
  0x9a   : > { %308 = vmatpush1.bf16.msra.mxu0 %v302_v56  ;;  %v926_v57 = vpop.permute.xlu1 %925 }
  0x9b   : > { %v924_v59 = vpop.permute.xlu0 %923  ;;  %5477 = vmatprep.subr.msk.bf16.mxu0 %vm300_vm1, %v6622_v6 }
  0x9c   : > { %v928_v61 = vsel %vm293_vm0, %v924_v59, %v926_v57  ;;  %v927_v62 = vsel %vm293_vm0, %v922_v51, %v924_v59  ;;  %2617 = vrot.lane.b32.xlu1 %v5696_v55, %s6498_s27  ;;  %v5486_v59 = vld [vmem:[%s7769_s1 + $0xc] sm:$0xf] }
  0x9d   : > { %5476 = vmatmul.mubr.msk.bf16.vlgmr.msra.gmra.mrb[0].mxu0 %vm296_vm2, %v5471_v58  ;;  %5535 = vmatprep.subr.msk.bf16.mxu1 %vm300_vm1, %v928_v61  ;;  %v933_v4 = vsel %vm300_vm1, %v927_v62, 0 }
  0x9e   : > { %358 = vmatpush1.bf16.msra.mxu0 %v352_v60  ;;  %939 = vmatpush1.bf16.msra.mxu1 %v933_v4  ;;  %v403_v6 = vpop.permute.xlu1 %402  ;;  %v5731_v4 = vld [vmem:[%s6603_s26 + $0x84] sm:$0x33] }
  0x9f   : > { %v401_v7 = vpop.permute.xlu0 %400  ;;  %5537 = vmatprep.subr.msk.bf16.mxu1 %vm300_vm1, %v6630_v8  ;;  %389 = vmatprep.mubr.bf16.mxu0 %v6497_v0 }
  0xa0   : > { %2001 = vrot.lane.b32.xlu0 %v6331_v63, %s6498_s27  ;;  %2621 = vrot.lane.b32.xlu1 %v6336_v1, %s6498_s27  ;;  %v407_v13 = vsel %vm406_vm3, %v401_v7, %v403_v6 }
  0xa1   : > { %5536 = vmatmul.mubr.msk.bf16.vlgmr.msra.gmra.mrb[0].mxu1 %vm296_vm2, %v5531_v3  ;;  %v413_v18 = vsel %vm300_vm1, %v407_v13, 0  ;;  %v5544_v3 = vld [vmem:[%s7769_s1 + $0xc] sm:$0xf]  ;;  %v5791_v13 = vld [vmem:[%s6603_s26 + $0x9c] sm:$0x33] }
  0xa2   : > { %989 = vmatpush1.bf16.msra.mxu1 %v983_v9  ;;  %v1031_v12 = vpop.permute.xlu1 %1030  ;;  %1020 = vmatprep.mubr.bf16.mxu1 %v6497_v0 }
  0xa3   : > { %v405_v8 = vpop.permute.xlu0 %404 }
  0xa4   : > { %v408_v5 = vsel %vm406_vm3, %v403_v6, %v405_v8  ;;  %2619 = vrot.lane.b32.xlu0 %v5697_v11, %s6498_s27  ;;  %2060 = vrot.lane.b32.xlu1 %v5637_v47, %s6499_s28  ;;  %v6341_v47 = vld [vmem:[%s6603_s26 + $0x68] ss:$12 sps:$4 sm:$0x3f]  }
  0xa5   : > { %5480 = vmatprep.subr.msk.bf16.mxu0 %vm300_vm1, %v408_v5  ;;  %v6898_v8 = vld [vmem:[%s6603_s26 + $0x90] sm:$0xff] }
  0xa6   : > { %v1035_v16 = vpop.permute.xlu1 %1034  ;;  %v5795_v37 = vcombine.high %v6898_v8, %v5791_v13 }
  0xa7   : > { %v1033_v17 = vpop.permute.xlu0 %1032 }
  0xa8   : > { %v1036_v20 = vsel %vm406_vm3, %v1031_v12, %v1033_v17  ;;  %v1037_v22 = vsel %vm406_vm3, %v1033_v17, %v1035_v16  ;;  %2058 = vrot.lane.b32.xlu0 %v5636_v48, %s6499_s28  ;;  %2678 = vrot.lane.b32.xlu1 %v5696_v55, %s6499_s28  ;;  %v6344_v48 = vld [vmem:[%s6603_s26 + $0x80] ss:$12 sps:$4 sm:$0x3f]   ;;  %v6859_v55 = vcombine.high %v6754_v49, %v5768_v35 }
  0xa9   : > { %5478 = vmatmul.mubr.msk.bf16.vlgmr.msra.gmra.mrb[0].mxu0 %vm296_vm2, %v269_v15  ;;  %5540 = vmatprep.subr.msk.bf16.mxu1 %vm300_vm1, %v1037_v22  ;;  %v1042_v27 = vsel %vm300_vm1, %v1036_v20, 0  ;;  %v5735_v12 = vcombine.high %v6754_v49, %v5731_v4  ;;  %v5507_v16 = vld [vmem:[%s6603_s26 + $0x3c] sm:$0x33]  ;;  %v5734_v17 = vcombine.low %v6754_v49, %v5731_v4 }
  0xaa   : > { %419 = vmatpush1.bf16.msra.mxu0 %v413_v18  ;;  %450 = vmatprep.mubr.bf16.mxu0 %v6497_v0  ;;  %v551_v26 = vpop.permute.xlu1 %550  ;;  %v5794_v18 = vcombine.low %v6898_v8, %v5791_v13  ;;  %v5510_v22 = vcombine.high %v6644_v10, %v5507_v16 }
  0xab   : > { %5489 = vmatprep.subr.msk.bf16.mxu0 %vm300_vm1, %v5488_v19  ;;  %v549_v30 = vpop.permute.xlu0 %548  ;;  %v5495_v19 = vld [vmem:[%s7769_s1 + $0x10] sm:$0xf] }
  0xac   : > { %2062 = vrot.lane.b32.xlu0 %v6331_v63, %s6499_s28  ;;  %2682 = vrot.lane.b32.xlu1 %v6336_v1, %s6499_s28  ;;  %v554_v58 = vsel %vm293_vm0, %v549_v30, %v551_v26 }
  0xad   : > { %5538 = vmatmul.mubr.msk.bf16.vlgmr.msra.gmra.mrb[0].mxu1 %vm296_vm2, %v904_v25  ;;  %v560_v61 = vsel %vm300_vm1, %v554_v58, 0  ;;  %v6347_v25 = vld [vmem:[%s6603_s26 + $0x80] ss:$12 sps:$4 sm:$0x3f]  }
  0xae   : > { %1048 = vmatpush1.bf16.msra.mxu1 %v1042_v27  ;;  %1079 = vmatprep.mubr.bf16.mxu1 %v6497_v0  ;;  %v1172_v36 = vpop.permute.xlu1 %1171 }
  0xaf   : > { %5547 = vmatprep.subr.msk.bf16.mxu1 %vm300_vm1, %v5546_v32  ;;  %v553_v39 = vpop.permute.xlu0 %552  ;;  %v5553_v32 = vld [vmem:[%s7769_s1 + $0x10] sm:$0xf] }
  0xb0   : > { %2680 = vrot.lane.b32.xlu0 %v5697_v11, %s6499_s28  ;;  %2783 = vrot.lane.b32.xlu1 %v6821_v33, %s6498_s27  ;;  %v555_v46 = vsel %vm293_vm0, %v551_v26, %v553_v39  ;;  %v6352_v26 = vld [vmem:[%s6603_s26 + $0x98] ss:$12 sps:$4 sm:$0x3f]   ;;  %v5509_v39 = vcombine.low %v6644_v10, %v5507_v16 }
  0xb2   : > { %v1176_v2 = vpop.permute.xlu1 %1175  ;;  %v690_v44 = vsel %vm300_vm1, %v5509_v39, 0 }
  0xb3   : > { %v1174_v45 = vpop.permute.xlu0 %1173 }
  0xb4   : > { %2781 = vrot.lane.b32.xlu0 %v6830_v40, %s6498_s27  ;;  %3401 = vrot.lane.b32.xlu1 %v6835_v41, %s6498_s27  ;;  %v1178_v54 = vsel %vm293_vm0, %v1174_v45, %v1176_v2  ;;  %v1177_v63 = vsel %vm293_vm0, %v1172_v36, %v1174_v45  ;;  %v5568_v36 = vcombine.high %v6672_v21, %v5565_v23 }
  0xb5   : > { %5481 = vmatmul.mubr.msk.bf16.vlgmr.msra.gmra.mrb[0].mxu0 %vm296_vm2, %v5479_v42  ;;  %v1183_v7 = vsel %vm300_vm1, %v1177_v63, 0  ;;  %v5567_v45 = vcombine.low %v6672_v21, %v5565_v23 }
  0xb6   : > { %487 = vmatpush1.bf16.msra.mxu0 %v481_v43  ;;  %518 = vmatprep.mubr.bf16.mxu0 %v6497_v0  ;;  %v613_v51 = vpop.permute.xlu1 %612  ;;  %v5501_v43 = vld [vmem:[%s7769_s1 + $0x14] sm:$0xf] }
  0xb7   : > { %5499 = vmatprep.subr.msk.bf16.mxu0 %vm300_vm1, %v555_v46  ;;  %v611_v53 = vpop.permute.xlu0 %610 }
  0xb8   : > { %2785 = vrot.lane.b32.xlu0 %v6341_v47, %s6498_s27  ;;  %3405 = vrot.lane.b32.xlu1 %v6344_v48, %s6498_s27  ;;  %v616_v15 = vsel %vm406_vm3, %v611_v53, %v613_v51 }
  0xb9   : > { %5541 = vmatmul.mubr.msk.bf16.vlgmr.msra.gmra.mrb[0].mxu1 %vm296_vm2, %v5539_v50  ;;  %v622_v20 = vsel %vm300_vm1, %v616_v15, 0  ;;  %v5559_v50 = vld [vmem:[%s7769_s1 + $0x14] sm:$0xf] }
  0xba   : > { %1111 = vmatpush1.bf16.msra.mxu1 %v1105_v52  ;;  %1142 = vmatprep.mubr.bf16.mxu1 %v6497_v0  ;;  %v1233_v56 = vpop.permute.xlu1 %1232 }
  0xbb   : > { %5557 = vmatprep.subr.msk.bf16.mxu1 %vm300_vm1, %v1178_v54  ;;  %v615_v57 = vpop.permute.xlu0 %614  ;;  %v6965_v54 = vld [vmem:[%s6603_s26 + $0xa8] sm:$0xff] }
  0xbc   : > { %3403 = vrot.lane.b32.xlu0 %v6859_v55, %s6498_s27  ;;  %2892 = vrot.lane.b32.xlu1 %v6821_v33, %s6499_s28  ;;  %v617_v1 = vsel %vm406_vm3, %v613_v51, %v615_v57  ;;  %v1311_v51 = vsel %vm300_vm1, %v5567_v45, 0  ;;  %v6367_v45 = vld [vmem:[%s6603_s26 + $0x98] ss:$12 sps:$4 sm:$0x3f]  }
  0xbe   : > { %v1237_v60 = vpop.permute.xlu1 %1236 }
  0xbf   : > { %v1235_v62 = vpop.permute.xlu0 %1234 }
  0xc0   : > { %2890 = vrot.lane.b32.xlu0 %v6830_v40, %s6499_s28  ;;  %3510 = vrot.lane.b32.xlu1 %v6835_v41, %s6499_s28  ;;  %v1239_v11 = vsel %vm406_vm3, %v1235_v62, %v1237_v60  ;;  %v1238_v24 = vsel %vm406_vm3, %v1233_v56, %v1235_v62  ;;  %v5813_v56 = vld [vmem:[%s6603_s26 + $0xb4] sm:$0x33] }
  0xc1   : > { %5490 = vmatmul.mubr.msk.bf16.vlgmr.msra.gmra.mrb[0].mxu0 %vm296_vm2, %v5486_v59  ;;  %v1244_v35 = vsel %vm300_vm1, %v1238_v24, 0  ;;  %v5508_v62 = vld [vmem:[%s7769_s1 + $0x18] sm:$0xf]  ;;  %v5828_v24 = vld [vmem:[%s6603_s26 + $0x9c] sm:$0x33] }
  0xc2   : > { %566 = vmatpush1.bf16.msra.mxu0 %v560_v61  ;;  %597 = vmatprep.mubr.bf16.mxu0 %v6497_v0  ;;  %v6886_v6 = vpop.permute.xlu1 %759  ;;  %v5816_v61 = vcombine.low %v6965_v54, %v5813_v56  ;;  %v7035_v39 = vcombine.low %v6898_v8, %v5828_v24 }
  0xc3   : > { %5502 = vmatprep.subr.msk.bf16.mxu0 %vm300_vm1, %v617_v1  ;;  %v6890_v9 = vpop.permute.xlu0 %757 }
  0xc4   : > { %2894 = vrot.lane.b32.xlu0 %v6341_v47, %s6499_s28  ;;  %3514 = vrot.lane.b32.xlu1 %v6344_v48, %s6499_s28  ;;  %v5753_v48 = vld [vmem:[%s6603_s26 + $0x9c] sm:$0x33]  ;;  %v763_v59 = vsel %vm293_vm0, %v6890_v9, %v6886_v6 }
  0xc5   : > { %5548 = vmatmul.mubr.msk.bf16.vlgmr.msra.gmra.mrb[0].mxu1 %vm296_vm2, %v5544_v3  ;;  %v5757_v53 = vcombine.high %v6898_v8, %v5753_v48  ;;  %v5756_v60 = vcombine.low %v6898_v8, %v5753_v48  ;;  %v769_v63 = vsel %vm300_vm1, %v763_v59, 0  ;;  %v6357_v3 = vld [vmem:[%s6603_s26 + $0x98] ss:$12 sps:$4 sm:$0x3f]   ;;  %v5581_v48 = vld [vmem:[%s7769_s1 + $0x20] sm:$0xf] }
  0xc6   : > { %1189 = vmatpush1.bf16.msra.mxu1 %v1183_v7  ;;  %1220 = vmatprep.mubr.bf16.mxu1 %v6497_v0  ;;  %v6903_v14 = vpop.permute.xlu1 %1377 }
  0xc7   : > { %5560 = vmatprep.subr.msk.bf16.mxu1 %vm300_vm1, %v1239_v11  ;;  %v762_v5 = vpop.permute.xlu0 %761  ;;  %v5566_v11 = vld [vmem:[%s7769_s1 + $0x18] sm:$0xf] }
  0xc8   : > { %3512 = vrot.lane.b32.xlu0 %v6859_v55, %s6499_s28  ;;  %3033 = vrot.lane.b32.xlu1 %v5735_v12, %s6498_s27  ;;  %v764_v10 = vsel %vm293_vm0, %v6886_v6, %v762_v5  ;;  %v6362_v6 = vld [vmem:[%s6603_s26 + $0xb0] ss:$12 sps:$4 sm:$0x3f]   ;;  %v5817_v5 = vcombine.high %v6965_v54, %v5813_v56 }
  0xca   : > { %v1382_v30 = vpop.permute.xlu1 %1381 }
  0xcb   : > { %v1380_v27 = vpop.permute.xlu0 %1379 }
  0xcc   : > { %3031 = vrot.lane.b32.xlu0 %v5734_v17, %s6498_s27  ;;  %3651 = vrot.lane.b32.xlu1 %v5794_v18, %s6498_s27  ;;  %v1384_v52 = vsel %vm293_vm0, %v1380_v27, %v1382_v30  ;;  %v1383_v1 = vsel %vm293_vm0, %v6903_v14, %v1380_v27  ;;  %v7026_v30 = vcombine.high %v6898_v8, %v5828_v24 }
  0xcd   : > { %5500 = vmatmul.mubr.msk.bf16.vlgmr.msra.gmra.mrb[0].mxu0 %vm296_vm2, %v5495_v19 }
  0xce   : > { %628 = vmatpush1.bf16.msra.mxu0 %v622_v20  ;;  %659 = vmatprep.mubr.bf16.mxu0 %v6497_v0  ;;  %v822_v2 = vpop.permute.xlu1 %821 }
  0xcf   : > { %5511 = vmatprep.subr.msk.bf16.mxu0 %vm300_vm1, %v5510_v22  ;;  %v6938_v42 = vpop.permute.xlu0 %819 }
  0xd0   : > { %3035 = vrot.lane.b32.xlu0 %v6347_v25, %s6498_s27  ;;  %3655 = vrot.lane.b32.xlu1 %v6352_v26, %s6498_s27  ;;  %v825_v16 = vsel %vm406_vm3, %v6938_v42, %v822_v2 }
  0xd1   : > { %5558 = vmatmul.mubr.msk.bf16.vlgmr.msra.gmra.mrb[0].mxu1 %vm296_vm2, %v5553_v32  ;;  %v5888_v32 = vld [vmem:[%s6603_s26 + $0xb4] sm:$0x33] }
  0xd2   : > { %1250 = vmatpush1.bf16.msra.mxu1 %v1244_v35  ;;  %1281 = vmatprep.mubr.bf16.mxu1 %v6497_v0  ;;  %v1439_v47 = vpop.permute.xlu1 %1438  ;;  %v7040_v42 = vcombine.low %v6965_v54, %v5888_v32 }
  0xd3   : > { %5569 = vmatprep.subr.msk.bf16.mxu1 %vm300_vm1, %v5568_v36  ;;  %v824_v46 = vpop.permute.xlu0 %823 }
  0xd4   : > { %3653 = vrot.lane.b32.xlu0 %v5795_v37, %s6498_s27  ;;  %3094 = vrot.lane.b32.xlu1 %v5735_v12, %s6499_s28  ;;  %v826_v4 = vsel %vm406_vm3, %v822_v2, %v824_v46  ;;  %v1389_v12 = vsel %vm300_vm1, %v1383_v1, 0  ;;  %v5523_v2 = vld [vmem:[%s7769_s1 + $0x20] sm:$0xf] }
  0xd6   : > { %v1443_v58 = vpop.permute.xlu1 %1442 }
  0xd7   : > { %v1441_v57 = vpop.permute.xlu0 %1440 }
  0xd8   : > { %3092 = vrot.lane.b32.xlu0 %v5734_v17, %s6499_s28  ;;  %3712 = vrot.lane.b32.xlu1 %v5794_v18, %s6499_s28  ;;  %v1445_v13 = vsel %vm406_vm3, %v1441_v57, %v1443_v58  ;;  %v5517_v17 = vld [vmem:[%s7769_s1 + $0x1c] sm:$0xf]  ;;  %v831_v18 = vsel %vm300_vm1, %v825_v16, 0  ;;  %v1444_v19 = vsel %vm406_vm3, %v1439_v47, %v1441_v57 }
  0xd9   : > { %5503 = vmatmul.mubr.msk.bf16.vlgmr.msra.gmra.mrb[0].mxu0 %vm296_vm2, %v5501_v43 }
  0xda   : > { %696 = vmatpush1.bf16.msra.mxu0 %v690_v44  ;;  %727 = vmatprep.mubr.bf16.mxu0 %v6497_v0  ;;  %v1544_v9 = vpop.permute.xlu1 %1543 }
  0xdb   : > { %5521 = vmatprep.subr.msk.bf16.mxu0 %vm300_vm1, %v764_v10  ;;  %v1542_v7 = vpop.permute.xlu0 %1541  ;;  %v6370_v10 = vld [vmem:[%s6603_s26 + $0xb0] ss:$12 sps:$4 sm:$0x3f]  }
  0xdc   : > { %3096 = vrot.lane.b32.xlu0 %v6347_v25, %s6499_s28  ;;  %3716 = vrot.lane.b32.xlu1 %v6352_v26, %s6499_s28  ;;  %v5575_v25 = vld [vmem:[%s7769_s1 + $0x1c] sm:$0xf]  ;;  %v1450_v26 = vsel %vm300_vm1, %v1444_v19, 0 }
  0xdd   : > { %5561 = vmatmul.mubr.msk.bf16.vlgmr.msra.gmra.mrb[0].mxu1 %vm296_vm2, %v5559_v50 }
  0xde   : > { %1317 = vmatpush1.bf16.msra.mxu1 %v1311_v51  ;;  %1348 = vmatprep.mubr.bf16.mxu1 %v6497_v0  ;;  %v2162_v15 = vpop.permute.xlu1 %2161  ;;  %v7063_v51 = vcombine.high %v6965_v54, %v5888_v32 }
  0xdf   : > { %5579 = vmatprep.subr.msk.bf16.mxu1 %vm300_vm1, %v1384_v52  ;;  %v1546_v14 = vpop.permute.xlu0 %1545  ;;  %v5591_v52 = vld [vmem:[%s7769_s1 + $0x4] sm:$0xf] }
  0xe0   : > { %3714 = vrot.lane.b32.xlu0 %v5795_v37, %s6499_s28  ;;  %3239 = vrot.lane.b32.xlu1 %v5757_v53, %s6498_s27  ;;  %v1548_v20 = vsel %vm293_vm0, %v1544_v9, %v1546_v14  ;;  %v1547_v37 = vsel %vm293_vm0, %v1542_v7, %v1544_v9  ;;  %v1524_v7 = vld [vmem:[%s7769_s1] sm:$0xf] }
  0xe1   : > { %v1553_v43 = vsel %vm300_vm1, %v1547_v37, 0 }
  0xe2   : > { %v2166_v23 = vpop.permute.xlu1 %2165 }
  0xe3   : > { %v2164_v22 = vpop.permute.xlu0 %2163 }
  0xe4   : > { %3237 = vrot.lane.b32.xlu0 %v5756_v60, %s6498_s27  ;;  %3857 = vrot.lane.b32.xlu1 %v5816_v61, %s6498_s27  ;;  %v2168_v27 = vsel %vm293_vm0, %v2164_v22, %v2166_v23  ;;  %v2167_v44 = vsel %vm293_vm0, %v2162_v15, %v2164_v22  ;;  %v2144_v15 = vld [vmem:[%s7769_s1] sm:$0xf]  ;;  %v6378_v22 = vld [vmem:[%s6603_s26 + $0xc8] ss:$12 sps:$4 sm:$0x3f]  }
  0xe5   : > { %5512 = vmatmul.mubr.msk.bf16.vlgmr.msra.gmra.mrb[0].mxu0 %vm296_vm2, %v5508_v62  ;;  %v2173_v50 = vsel %vm300_vm1, %v2167_v44, 0  ;;  %v5603_v62 = vld [vmem:[%s6603_s26 + $0x54] sm:$0x33] }
  0xe6   : > { %775 = vmatpush1.bf16.msra.mxu0 %v769_v63  ;;  %806 = vmatprep.mubr.bf16.mxu0 %v6497_v0  ;;  %v1653_v36 = vpop.permute.xlu1 %1652  ;;  %v5605_v23 = vcombine.low %v6672_v21, %v5603_v62 }
  0xe7   : > { %5524 = vmatprep.subr.msk.bf16.mxu0 %vm300_vm1, %v826_v4  ;;  %v1651_v35 = vpop.permute.xlu0 %1650 }
  0xe8   : > { %3241 = vrot.lane.b32.xlu0 %v6357_v3, %s6498_s27  ;;  %3861 = vrot.lane.b32.xlu1 %v6362_v6, %s6498_s27  ;;  %v1725_v32 = vsel %vm300_vm1, %v5605_v23, 0 }
  0xe9   : > { %5570 = vmatmul.mubr.msk.bf16.vlgmr.msra.gmra.mrb[0].mxu1 %vm296_vm2, %v5566_v11  ;;  %v5606_v11 = vcombine.high %v6672_v21, %v5603_v62  ;;  %v6383_v62 = vld [vmem:[%s6603_s26 + $0xc8] ss:$12 sps:$4 sm:$0x3f]  }
  0xea   : > { %1395 = vmatpush1.bf16.msra.mxu1 %v1389_v12  ;;  %1426 = vmatprep.mubr.bf16.mxu1 %v6497_v0  ;;  %v2271_v47 = vpop.permute.xlu1 %2270 }
  0xeb   : > { %5582 = vmatprep.subr.msk.bf16.mxu1 %vm300_vm1, %v1445_v13  ;;  %v1655_v46 = vpop.permute.xlu0 %1654  ;;  %v5663_v13 = vld [vmem:[%s6603_s26 + $0x6c] sm:$0x33] }
  0xec   : > { %3859 = vrot.lane.b32.xlu0 %v5817_v5, %s6498_s27  ;;  %3300 = vrot.lane.b32.xlu1 %v5757_v53, %s6499_s28  ;;  %v1603_v53 = vsel %vm300_vm1, %v6696_v29, 0  ;;  %v1657_v57 = vsel %vm406_vm3, %v1653_v36, %v1655_v46  ;;  %v5651_v29 = vld [vmem:[%s7769_s1 + $0x4] sm:$0xf] }
  0xee   : > { %v2275_v56 = vpop.permute.xlu1 %2274 }
  0xf0   : > { %3298 = vrot.lane.b32.xlu0 %v5756_v60, %s6499_s28  ;;  %3918 = vrot.lane.b32.xlu1 %v5816_v61, %s6499_s28  ;;  %v5851_v61 = vld [vmem:[%s6603_s26 + $0xb4] sm:$0x33] }
  0xf1   : > { %5522 = vmatmul.mubr.msk.bf16.vlgmr.msra.gmra.mrb[0].mxu0 %vm296_vm2, %v5517_v17  ;;  %v5855_v63 = vcombine.high %v6965_v54, %v5851_v61  ;;  %v5666_v17 = vcombine.high %v6731_v38, %v5663_v13 }
  0xf2   : > { %837 = vmatpush1.bf16.msra.mxu0 %v831_v18  ;;  %868 = vmatprep.mubr.bf16.mxu0 %v6497_v0  ;;  %v7090_v59 = vpop.permute.xlu1 %1793 }
  0xf3   : > { %5595 = vmatprep.subr.msk.bf16.mxu0 %vm300_vm1, %v1548_v20  ;;  %v6373_v20 = vld [vmem:[%s6603_s26 + $0xb0] ss:$12 sps:$4 sm:$0x3f]  }
  0xf4   : > { %3302 = vrot.lane.b32.xlu0 %v6357_v3, %s6499_s28  ;;  %3922 = vrot.lane.b32.xlu1 %v6362_v6, %s6499_s28  ;;  %v7109_v3 = vld [vmem:[%s6603_s26 + $0xc0] sm:$0xff]  ;;  %v5911_v6 = vld [vmem:[%s6603_s26 + $0xcc] sm:$0x33] }
  0xf5   : > { %5580 = vmatmul.mubr.msk.bf16.vlgmr.msra.gmra.mrb[0].mxu1 %vm296_vm2, %v5575_v25  ;;  %v5914_v14 = vcombine.low %v7109_v3, %v5911_v6  ;;  %v5915_v24 = vcombine.high %v7109_v3, %v5911_v6 }
  0xf6   : > { %1456 = vmatpush1.bf16.msra.mxu1 %v1450_v26  ;;  %1487 = vmatprep.mubr.bf16.mxu1 %v6497_v0  ;;  %v7106_v4 = vpop.permute.xlu1 %2411 }
  0xf7   : > { %5655 = vmatprep.subr.msk.bf16.mxu1 %vm300_vm1, %v2168_v27  ;;  %v5599_v27 = vld [vmem:[%s7769_s1 + $0x8] sm:$0xf] }
  0xf8   : > { %3920 = vrot.lane.b32.xlu0 %v5817_v5, %s6499_s28  ;;  %4023 = vrot.lane.b32.xlu1 %v7026_v30, %s6498_s27  ;;  %v5854_v5 = vcombine.low %v6965_v54, %v5851_v61 }
  0xfa   : > { %v2416_v19 = vpop.permute.xlu1 %2415 }
  0xfc   : > { %4021 = vrot.lane.b32.xlu0 %v7035_v39, %s6498_s27  ;;  %4641 = vrot.lane.b32.xlu1 %v7040_v42, %s6498_s27 }
  0xfd   : > { %5525 = vmatmul.mubr.msk.bf16.vlgmr.msra.gmra.mrb[0].mxu0 %vm296_vm2, %v5523_v2 }
  0xfe   : > { %1559 = vmatpush1.bf16.msra.mxu0 %v1553_v43  ;;  %1590 = vmatprep.mubr.bf16.mxu0 %v6497_v0  ;;  %v1855_v26 = vpop.permute.xlu1 %1854 }
  0xff   : > { %5597 = vmatprep.subr.msk.bf16.mxu0 %vm300_vm1, %v6692_v28  ;;  %v2273_v28 = vpop.permute.xlu0 %2272 }
 0x100   : > { %4025 = vrot.lane.b32.xlu0 %v6367_v45, %s6498_s27  ;;  %4645 = vrot.lane.b32.xlu1 %v6370_v10, %s6498_s27  ;;  %v2277_v60 = vsel %vm406_vm3, %v2273_v28, %v2275_v56  ;;  %v2276_v12 = vsel %vm406_vm3, %v2271_v47, %v2273_v28  ;;  %v7179_v28 = vld [vmem:[%s6603_s26 + $0xd8] sm:$0xff]  ;;  %v5933_v56 = vld [vmem:[%s6603_s26 + $0xe4] sm:$0x33] }
 0x101   : > { %5583 = vmatmul.mubr.msk.bf16.vlgmr.msra.gmra.mrb[0].mxu1 %vm296_vm2, %v5581_v48  ;;  %v2282_v16 = vsel %vm300_vm1, %v2276_v12, 0 }
 0x102   : > { %2179 = vmatpush1.bf16.msra.mxu1 %v2173_v50  ;;  %2210 = vmatprep.mubr.bf16.mxu1 %v6497_v0  ;;  %v2473_v43 = vpop.permute.xlu1 %2472  ;;  %v5604_v50 = vld [vmem:[%s7769_s1 + $0xc] sm:$0xf] }
 0x103   : > { %5657 = vmatprep.subr.msk.bf16.mxu1 %vm300_vm1, %v6712_v34  ;;  %v2223_v34 = vsel %vm300_vm1, %v6702_v31, 0  ;;  %v7088_v58 = vpop.permute.xlu0 %1791  ;;  %v1656_v31 = vsel %vm406_vm3, %v1651_v35, %v1653_v36  ;;  %v5665_v35 = vcombine.low %v6731_v38, %v5663_v13  ;;  %v5659_v36 = vld [vmem:[%s7769_s1 + $0x8] sm:$0xf] }
 0x104   : > { %4643 = vrot.lane.b32.xlu0 %v7063_v51, %s6498_s27  ;;  %4132 = vrot.lane.b32.xlu1 %v7026_v30, %s6499_s28  ;;  %v1662_v9 = vsel %vm300_vm1, %v1656_v31, 0 }
 0x105   : > { %5596 = vmatmul.mubr.msk.bf16.vlgmr.msra.gmra.mrb[4].mxu0 %vm296_vm2, %v5591_v52  ;;  %v2345_v37 = vsel %vm300_vm1, %v5665_v35, 0  ;;  %v5679_v35 = vld [vmem:[%s7769_s1 + $0x14] sm:$0xf] }
 0x106   : > { %1609 = vmatpush1.bf16.msra.mxu0 %v1603_v53  ;;  %1640 = vmatprep.mubr.bf16.mxu0 %v6497_v0  ;;  %v2477_v48 = vpop.permute.xlu1 %2476 }
 0x107   : > { %5600 = vmatprep.subr.msk.bf16.mxu0 %vm300_vm1, %v1657_v57  ;;  %v1796_v1 = vpop.permute.xlu0 %1795 }
 0x108   : > { %4130 = vrot.lane.b32.xlu0 %v7035_v39, %s6499_s28  ;;  %4750 = vrot.lane.b32.xlu1 %v7040_v42, %s6499_s28  ;;  %v1798_v21 = vsel %vm293_vm0, %v7090_v59, %v1796_v1 }
 0x109   : > { %5656 = vmatmul.mubr.msk.bf16.vlgmr.msra.gmra.mrb[4].mxu1 %vm296_vm2, %v5651_v29 }
 0x10a   : > { %2229 = vmatpush1.bf16.msra.mxu1 %v2223_v34  ;;  %2260 = vmatprep.mubr.bf16.mxu1 %v6497_v0  ;;  %v5936_v34 = vcombine.low %v7179_v28, %v5933_v56 }
 0x10b   : > { %5660 = vmatprep.subr.msk.bf16.mxu1 %vm300_vm1, %v2277_v60  ;;  %v2414_v18 = vpop.permute.xlu0 %2413  ;;  %v5664_v60 = vld [vmem:[%s7769_s1 + $0xc] sm:$0xf] }
 0x10c   : > { %4134 = vrot.lane.b32.xlu0 %v6367_v45, %s6499_s28  ;;  %4754 = vrot.lane.b32.xlu1 %v6370_v10, %s6499_s28  ;;  %v2418_v44 = vsel %vm293_vm0, %v2414_v18, %v2416_v19  ;;  %v5873_v45 = vld [vmem:[%s6603_s26 + $0xcc] sm:$0x33]  ;;  %v1797_v10 = vsel %vm293_vm0, %v7088_v58, %v7090_v59  ;;  %v2417_v52 = vsel %vm293_vm0, %v7106_v4, %v2414_v18  ;;  %v7190_v59 = vpop.permute.xlu1 %1999 }
 0x10d   : > { %v5877_v46 = vcombine.high %v7109_v3, %v5873_v45  ;;  %v1803_v53 = vsel %vm300_vm1, %v1797_v10, 0  ;;  %v5876_v29 = vcombine.low %v7109_v3, %v5873_v45  ;;  %v2423_v61 = vsel %vm300_vm1, %v2417_v52, 0 }
 0x10f   : > { %v1853_v25 = vpop.permute.xlu0 %1852 }
 0x110   : > { %4752 = vrot.lane.b32.xlu0 %v7063_v51, %s6499_s28  ;;  %4273 = vrot.lane.b32.xlu1 %v5855_v63, %s6498_s27  ;;  %v2618_v4 = vpop.permute.xlu1 %2617  ;;  %v1858_v6 = vsel %vm406_vm3, %v1853_v25, %v1855_v26 }
 0x111   : > { %5598 = vmatmul.mubr.msk.bf16.vlgmr.msra.gmra.mrb[4].mxu0 %vm296_vm2, %v1524_v7  ;;  %v5625_v7 = vld [vmem:[%s6603_s26 + $0x6c] sm:$0x33]  ;;  %v1864_v12 = vsel %vm300_vm1, %v1858_v6, 0 }
 0x112   : > { %1668 = vmatpush1.bf16.msra.mxu0 %v1662_v9  ;;  %1699 = vmatprep.mubr.bf16.mxu0 %v6497_v0  ;;  %v5937_v9 = vcombine.high %v7179_v28, %v5933_v56  ;;  %v5628_v13 = vcombine.high %v6731_v38, %v5625_v7 }
 0x113   : > { %5607 = vmatprep.subr.msk.bf16.mxu0 %vm300_vm1, %v5606_v11  ;;  %v1857_v2 = vpop.permute.xlu0 %1856  ;;  %v5613_v11 = vld [vmem:[%s7769_s1 + $0x10] sm:$0xf] }
 0x114   : > { %4271 = vrot.lane.b32.xlu0 %v5854_v5, %s6498_s27  ;;  %4891 = vrot.lane.b32.xlu1 %v5914_v14, %s6498_s27  ;;  %v1859_v57 = vsel %vm406_vm3, %v1855_v26, %v1857_v2 }
 0x115   : > { %5658 = vmatmul.mubr.msk.bf16.vlgmr.msra.gmra.mrb[4].mxu1 %vm296_vm2, %v2144_v15 }
 0x116   : > { %2288 = vmatpush1.bf16.msra.mxu1 %v2282_v16  ;;  %2319 = vmatprep.mubr.bf16.mxu1 %v6497_v0  ;;  %v2622_v16 = vpop.permute.xlu1 %2621 }
 0x117   : > { %5667 = vmatprep.subr.msk.bf16.mxu1 %vm300_vm1, %v5666_v17  ;;  %v2475_v47 = vpop.permute.xlu0 %2474  ;;  %v5673_v17 = vld [vmem:[%s7769_s1 + $0x10] sm:$0xf] }
 0x118   : > { %4275 = vrot.lane.b32.xlu0 %v6373_v20, %s6498_s27  ;;  %4895 = vrot.lane.b32.xlu1 %v6378_v22, %s6498_s27  ;;  %v2479_v31 = vsel %vm406_vm3, %v2475_v47, %v2477_v48  ;;  %v5686_v48 = vld [vmem:[%s7769_s1 + $0x18] sm:$0xf] }
 0x11a   : > { %v2061_v23 = vpop.permute.xlu1 %2060 }
 0x11b   : > { %v7188_v58 = vpop.permute.xlu0 %1997 }
 0x11c   : > { %4893 = vrot.lane.b32.xlu0 %v5915_v24, %s6498_s27  ;;  %4334 = vrot.lane.b32.xlu1 %v5855_v63, %s6499_s28  ;;  %v6388_v63 = vld [vmem:[%s6603_s26 + $0xe0] ss:$12 sps:$4 sm:$0x3f]   ;;  %v2003_v2 = vsel %vm293_vm0, %v7188_v58, %v7190_v59 }
 0x11d   : > { %5601 = vmatmul.mubr.msk.bf16.vlgmr.msra.gmra.mrb[4].mxu0 %vm296_vm2, %v5599_v27 }
 0x11e   : > { %1731 = vmatpush1.bf16.msra.mxu0 %v1725_v32  ;;  %1762 = vmatprep.mubr.bf16.mxu0 %v6497_v0  ;;  %v2679_v32 = vpop.permute.xlu1 %2678 }
 0x11f   : > { %5617 = vmatprep.subr.msk.bf16.mxu0 %vm300_vm1, %v1798_v21  ;;  %v2002_v1 = vpop.permute.xlu0 %2001 }
 0x120   : > { %4332 = vrot.lane.b32.xlu0 %v5854_v5, %s6499_s28  ;;  %4952 = vrot.lane.b32.xlu1 %v5914_v14, %s6499_s28  ;;  %v2478_v5 = vsel %vm406_vm3, %v2473_v43, %v2475_v47  ;;  %v5685_v14 = vld [vmem:[%s6603_s26 + $0x84] sm:$0x33]  ;;  %v2004_v27 = vsel %vm293_vm0, %v7190_v59, %v2002_v1  ;;  %v5626_v43 = vld [vmem:[%s7769_s1 + $0x18] sm:$0xf] }
 0x121   : > { %5661 = vmatmul.mubr.msk.bf16.vlgmr.msra.gmra.mrb[4].mxu1 %vm296_vm2, %v5659_v36  ;;  %v2484_v18 = vsel %vm300_vm1, %v2478_v5, 0  ;;  %v5688_v19 = vcombine.high %v6754_v49, %v5685_v14  ;;  %v5687_v26 = vcombine.low %v6754_v49, %v5685_v14  ;;  %v5701_v5 = vld [vmem:[%s7769_s1 + $0x20] sm:$0xf] }
 0x122   : > { %2351 = vmatpush1.bf16.msra.mxu1 %v2345_v37  ;;  %2382 = vmatprep.mubr.bf16.mxu1 %v6497_v0  ;;  %v2683_v37 = vpop.permute.xlu1 %2682 }
 0x123   : > { %5677 = vmatprep.subr.msk.bf16.mxu1 %vm300_vm1, %v2418_v44  ;;  %v2620_v15 = vpop.permute.xlu0 %2619  ;;  %v2551_v21 = vsel %vm300_vm1, %v5687_v26, 0  ;;  %v2009_v44 = vsel %vm300_vm1, %v2003_v2, 0 }
 0x124   : > { %4336 = vrot.lane.b32.xlu0 %v6373_v20, %s6499_s28  ;;  %4956 = vrot.lane.b32.xlu1 %v6378_v22, %s6499_s28  ;;  %v5627_v20 = vcombine.low %v6731_v38, %v5625_v7  ;;  %v2624_v49 = vsel %vm293_vm0, %v2620_v15, %v2622_v16  ;;  %v2623_v45 = vsel %vm293_vm0, %v2618_v4, %v2620_v15  ;;  %v5641_v7 = vld [vmem:[%s7769_s1 + $0x20] sm:$0xf]  ;;  %v5711_v15 = vld [vmem:[%s7769_s1 + $0x4] sm:$0xf]  ;;  %v2843_v16 = vsel %vm300_vm1, %v6830_v40, 0 }
 0x125   : > { %v3463_v40 = vsel %vm300_vm1, %v6835_v41, 0  ;;  %v2764_v41 = vld [vmem:[%s7769_s1] sm:$0xf] }
 0x126   : > { %v1931_v25 = vsel %vm300_vm1, %v5627_v20, 0  ;;  %v2784_v47 = vpop.permute.xlu1 %2783 }
 0x127   : > { %v2059_v22 = vpop.permute.xlu0 %2058 }
 0x128   : > { %4954 = vrot.lane.b32.xlu0 %v5915_v24, %s6499_s28  ;;  %4479 = vrot.lane.b32.xlu1 %v5877_v46, %s6498_s27  ;;  %v5619_v24 = vld [vmem:[%s7769_s1 + $0x14] sm:$0xf] }
 0x129   : > { %5608 = vmatmul.mubr.msk.bf16.vlgmr.msra.gmra.mrb[4].mxu0 %vm296_vm2, %v5604_v50  ;;  %v2629_v50 = vsel %vm300_vm1, %v2623_v45, 0 }
 0x12a   : > { %1809 = vmatpush1.bf16.msra.mxu0 %v1803_v53  ;;  %1840 = vmatprep.mubr.bf16.mxu0 %v6497_v0  ;;  %v3402_v56 = vpop.permute.xlu1 %3401 }
 0x12b   : > { %5620 = vmatprep.subr.msk.bf16.mxu0 %vm300_vm1, %v1859_v57  ;;  %v2063_v38 = vpop.permute.xlu0 %2062  ;;  %v2064_v57 = vsel %vm406_vm3, %v2059_v22, %v2061_v23 }
 0x12c   : > { %4477 = vrot.lane.b32.xlu0 %v5876_v29, %s6498_s27  ;;  %5097 = vrot.lane.b32.xlu1 %v5936_v34, %s6498_s27  ;;  %v2065_v10 = vsel %vm406_vm3, %v2061_v23, %v2063_v38  ;;  %v6399_v38 = vld [vmem:[%s6603_s26 + $0x78] sm:$0xff] }
 0x12d   : > { %5668 = vmatmul.mubr.msk.bf16.vlgmr.msra.gmra.mrb[4].mxu1 %vm296_vm2, %v5664_v60 }
 0x12e   : > { %2429 = vmatpush1.bf16.msra.mxu1 %v2423_v61  ;;  %2460 = vmatprep.mubr.bf16.mxu1 %v6497_v0  ;;  %v3406_v61 = vpop.permute.xlu1 %3405 }
 0x12f   : > { %5680 = vmatprep.subr.msk.bf16.mxu1 %vm300_vm1, %v2479_v31  ;;  %v2681_v36 = vpop.permute.xlu0 %2680  ;;  %v5695_v31 = vld [vmem:[%s7769_s1 + $0x1c] sm:$0xf] }
 0x130   : > { %4481 = vrot.lane.b32.xlu0 %v6383_v62, %s6498_s27  ;;  %5101 = vrot.lane.b32.xlu1 %v6388_v63, %s6498_s27  ;;  %v2685_v52 = vsel %vm406_vm3, %v2681_v36, %v2683_v37  ;;  %v2684_v58 = vsel %vm406_vm3, %v2679_v32, %v2681_v36 }
 0x132   : > { %v2893_v4 = vpop.permute.xlu1 %2892 }
 0x134   : > { %5099 = vrot.lane.b32.xlu0 %v5937_v9, %s6498_s27  ;;  %4540 = vrot.lane.b32.xlu1 %v5877_v46, %s6499_s28  ;;  %v2782_v46 = vpop.permute.xlu0 %2781  ;;  %s7654_s27 = sadd.s32 %s6479_s18, %s5462_s11 }
 0x135   : > { %5618 = vmatmul.mubr.msk.bf16.vlgmr.msra.gmra.mrb[4].mxu0 %vm296_vm2, %v5613_v11  ;;  %v2787_v6 = vsel %vm293_vm0, %v2782_v46, %v2784_v47  ;;  %v5719_v46 = vld [vmem:[%s7769_s1 + $0x8] sm:$0xf]  ;;  %s5463_s12 = sshll.u32 %s7654_s27, 3  ;;  %s5962_s6 = sshll.u32 %s7654_s27, 10 }
 0x136   : > { %1870 = vmatpush1.bf16.msra.mxu0 %v1864_v12  ;;  %1901 = vmatprep.mubr.bf16.mxu0 %v6497_v0  ;;  %p245_p13 = scmp.lt.s32.totalorder %s5463_s12, 31  ;;  %s7710_s11 = scalar_lea.hbm %s7770_s2, %s5962_s6 }
 0x137   : > { %5629 = vmatprep.subr.msk.bf16.mxu0 %vm300_vm1, %v5628_v13  ;;  %v3511_v13 = vpop.permute.xlu1 %3510 }
 0x138   : > { %4538 = vrot.lane.b32.xlu0 %v5876_v29, %s6499_s28  ;;  %5158 = vrot.lane.b32.xlu1 %v5936_v34, %s6499_s28  ;;  %v2786_v53 = vpop.permute.xlu0 %2785  ;;  %v5635_v29 = vld [vmem:[%s7769_s1 + $0x1c] sm:$0xf]  ;;  %v2070_v34 = vsel %vm300_vm1, %v2064_v57, 0  ;;  %s7789_s12 = smov (!%p245_p13, %s5463_s12), 31 }
 0x139   : > { %5678 = vmatmul.mubr.msk.bf16.vlgmr.msra.gmra.mrb[4].mxu1 %vm296_vm2, %v5673_v17  ;;  %v2788_v59 = vsel %vm293_vm0, %v2784_v47, %v2786_v53  ;;  %s5464_s14 = sshll.u32 %s7789_s12, 3  ;;  %s5273_s12 = sshll.u32 %s7492_s7, 4  ;;  %s5274_s12 = int_to_ptr.vmem [resolvable:$true] %s5273_s12 }
 0x13a   : > { %2490 = vmatpush1.bf16.msra.mxu1 %v2484_v18  ;;  %2521 = vmatprep.mubr.bf16.mxu1 %v6497_v0  ;;  %s7686_s5 = scalar_lea.vmem %s7772_s4, %s5464_s14 }
 0x13b   : > { %5689 = vmatprep.subr.msk.bf16.mxu1 %vm300_vm1, %v5688_v19  ;;  %v3515_v18 = vpop.permute.xlu1 %3514  ;;  %v5771_v19 = vld [vmem:[%s7769_s1 + $0x4] sm:$0xf] }
 0x13c   : > { %4542 = vrot.lane.b32.xlu0 %v6383_v62, %s6499_s28  ;;  %5162 = vrot.lane.b32.xlu1 %v6388_v63, %s6499_s28  ;;  %v3404_v60 = vpop.permute.xlu0 %3403  ;;  %v2690_v62 = vsel %vm300_vm1, %v2684_v58, 0 }
 0x13d   : > { %v3408_v63 = vsel %vm293_vm0, %v3404_v60, %v3406_v61  ;;  %v3407_v11 = vsel %vm293_vm0, %v3402_v56, %v3404_v60  ;;  %v5724_v60 = vld [vmem:[%s7769_s1 + $0xc] sm:$0xf] }
 0x13e   : > { %v3413_v14 = vsel %vm300_vm1, %v3407_v11, 0 }
 0x13f   : > { %v3034_v20 = vpop.permute.xlu1 %3033 }
 0x140   : > { %5160 = vrot.lane.b32.xlu0 %v5937_v9, %s6499_s28  ;;  %v2891_v1 = vpop.permute.xlu0 %2890  ;;  %v2793_v9 = vsel %vm300_vm1, %v2787_v6, 0  ;;  %s6401_s28 = scalar_lea.vmem %s5274_s12, 1024 }
 0x141   : > { %5621 = vmatmul.mubr.msk.bf16.vlgmr.msra.gmra.mrb[4].mxu0 %vm296_vm2, %v5619_v24  ;;  %v2896_v23 = vsel %vm406_vm3, %v2891_v1, %v2893_v4  ;;  %v5723_v24 = vld [vmem:[%s6603_s26 + $0x84] sm:$0x33]  ;;  %p6402_p0 = scmp.ne.s32.totalorder %s5274_s12, %s6401_s28 }
 0x142   : > { %1937 = vmatpush1.bf16.msra.mxu0 %v1931_v25  ;;  %1968 = vmatprep.mubr.bf16.mxu0 %v6497_v0  ;;  %v5726_v32 = vcombine.high %v6399_v38, %v5723_v24 }
 0x143   : > { %5639 = vmatprep.subr.msk.bf16.mxu0 %vm300_vm1, %v2004_v27  ;;  %v3652_v26 = vpop.permute.xlu1 %3651  ;;  %v2902_v27 = vsel %vm300_vm1, %v2896_v23, 0  ;;  %p6403_p1 = pnand %p6402_p0, %p6579_p5 }
 0x144   : > { %v2895_v12 = vpop.permute.xlu0 %2894 }
 0x145   : > { %5681 = vmatmul.mubr.msk.bf16.vlgmr.msra.gmra.mrb[4].mxu1 %vm296_vm2, %v5679_v35  ;;  %p6404_p2 = pneg %p6403_p1 }
 0x146   : > { %2557 = vmatpush1.bf16.msra.mxu1 %v2551_v21  ;;  %2588 = vmatprep.mubr.bf16.mxu1 %v6497_v0  ;;  %v5783_v21 = vld [vmem:[%s6603_s26 + $0x9c] sm:$0x33] }
 0x147   : > { %5699 = vmatprep.subr.msk.bf16.mxu1 %vm300_vm1, %v2624_v49  ;;  %v3384_v49 = vld [vmem:[%s7769_s1] sm:$0xf]  ;;  %v5786_v37 = vcombine.high %v6898_v8, %v5783_v21 }
 0x148   : > { %v3513_v17 = vpop.permute.xlu0 %3512 }
 0x149   : > { %v3517_v22 = vsel %vm406_vm3, %v3513_v17, %v3515_v18  ;;  %v3516_v35 = vsel %vm406_vm3, %v3511_v13, %v3513_v17  ;;  %v5745_v13 = vld [vmem:[%s6603_s26 + $0x9c] sm:$0x33]  ;;  %v5805_v17 = vld [vmem:[%s6603_s26 + $0xb4] sm:$0x33] }
 0x14a   : > { %v3522_v36 = vsel %vm300_vm1, %v3516_v35, 0 }
 0x14d   : > { %5630 = vmatmul.mubr.msk.bf16.vlgmr.msra.gmra.mrb[4].mxu0 %vm296_vm2, %v5626_v43  ;;  %v3656_v43 = vpop.permute.xlu1 %3655 }
 0x14e   : > { %2015 = vmatpush1.bf16.msra.mxu0 %v2009_v44  ;;  %2046 = vmatprep.mubr.bf16.mxu0 %v6497_v0  ;;  %v5725_v44 = vcombine.low %v6399_v38, %v5723_v24  ;;  %v5739_v24 = vld [vmem:[%s7769_s1 + $0x14] sm:$0xf] }
 0x14f   : > { %5642 = vmatprep.subr.msk.bf16.mxu0 %vm300_vm1, %v2065_v10 }
 0x150   : > { %v2965_v47 = vsel %vm300_vm1, %v5725_v44, 0 }
 0x151   : > { %5690 = vmatmul.mubr.msk.bf16.vlgmr.msra.gmra.mrb[4].mxu1 %vm296_vm2, %v5686_v48  ;;  %v3095_v10 = vpop.permute.xlu1 %3094  ;;  %v5785_v48 = vcombine.low %v6898_v8, %v5783_v21 }
 0x152   : > { %2635 = vmatpush1.bf16.msra.mxu1 %v2629_v50  ;;  %2666 = vmatprep.mubr.bf16.mxu1 %v6497_v0 }
 0x153   : > { %5702 = vmatprep.subr.msk.bf16.mxu1 %vm300_vm1, %v2685_v52  ;;  %v5779_v52 = vld [vmem:[%s7769_s1 + $0x8] sm:$0xf]  ;;  %v3585_v53 = vsel %vm300_vm1, %v5785_v48, 0 }
 0x155   : > { %v3713_v57 = vpop.permute.xlu1 %3712 }
 0x159   : > { %5640 = vmatmul.mubr.msk.bf16.vlgmr.msra.gmra.mrb[4].mxu0 %vm296_vm2, %v5635_v29 }
 0x15a   : > { %2076 = vmatpush1.bf16.msra.mxu0 %v2070_v34  ;;  %2107 = vmatprep.mubr.bf16.mxu0 %v6497_v0 }
 0x15b   : > { %5715 = vmatprep.subr.msk.bf16.mxu0 %vm300_vm1, %v2788_v59  ;;  %v3717_v59 = vpop.permute.xlu1 %3716 }
 0x15d   : > { %5700 = vmatmul.mubr.msk.bf16.vlgmr.msra.gmra.mrb[4].mxu1 %vm296_vm2, %v5695_v31 }
 0x15e   : > { %2696 = vmatpush1.bf16.msra.mxu1 %v2690_v62  ;;  %2727 = vmatprep.mubr.bf16.mxu1 %v6497_v0 }
 0x15f   : > { %5775 = vmatprep.subr.msk.bf16.mxu1 %vm300_vm1, %v3408_v63  ;;  %v3240_v1 = vpop.permute.xlu1 %3239 }
 0x163   : > { %v3858_v11 = vpop.permute.xlu1 %3857 }
 0x165   : > { %5643 = vmatmul.mubr.msk.bf16.vlgmr.msra.gmra.mrb[4].mxu0 %vm296_vm2, %v5641_v7 }
 0x166   : > { %2799 = vmatpush1.bf16.msra.mxu0 %v2793_v9  ;;  %2830 = vmatprep.mubr.bf16.mxu0 %v6497_v0 }
 0x167   : > { %5717 = vmatprep.subr.msk.bf16.mxu0 %vm300_vm1, %v6821_v33  ;;  %v2897_v33 = vsel %vm406_vm3, %v2893_v4, %v2895_v12  ;;  %v5784_v4 = vld [vmem:[%s7769_s1 + $0xc] sm:$0xf] }
 0x169   : > { %5703 = vmatmul.mubr.msk.bf16.vlgmr.msra.gmra.mrb[4].mxu1 %vm296_vm2, %v5701_v5  ;;  %v5733_v5 = vld [vmem:[%s7769_s1 + $0x10] sm:$0xf] }
 0x16a   : > { %3419 = vmatpush1.bf16.msra.mxu1 %v3413_v14  ;;  %3450 = vmatprep.mubr.bf16.mxu1 %v6497_v0 }
 0x16b   : > { %5777 = vmatprep.subr.msk.bf16.mxu1 %vm300_vm1, %v6859_v55  ;;  %v3032_v55 = vpop.permute.xlu0 %3031 }
 0x16c   : > { %v3037_v34 = vsel %vm293_vm0, %v3032_v55, %v3034_v20  ;;  %v5808_v55 = vcombine.high %v6965_v54, %v5805_v17 }
 0x16d   : > { %5716 = vmatmul.mubr.msk.bf16.vlgmr.msra.gmra.mrb[8].mxu0 %vm296_vm2, %v5711_v15  ;;  %v3043_v61 = vsel %vm300_vm1, %v3037_v34, 0  ;;  %v5748_v15 = vcombine.high %v6898_v8, %v5745_v13 }
 0x16e   : > { %2849 = vmatpush1.bf16.msra.mxu0 %v2843_v16  ;;  %2880 = vmatprep.mubr.bf16.mxu0 %v6497_v0 }
 0x16f   : > { %5720 = vmatprep.subr.msk.bf16.mxu0 %vm300_vm1, %v2897_v33  ;;  %v3036_v25 = vpop.permute.xlu0 %3035  ;;  %v3862_v33 = vpop.permute.xlu1 %3861 }
 0x170   : > { %v3038_v50 = vsel %vm293_vm0, %v3034_v20, %v3036_v25  ;;  %v5747_v20 = vcombine.low %v6898_v8, %v5745_v13  ;;  %v5799_v8 = vld [vmem:[%s7769_s1 + $0x14] sm:$0xf] }
 0x171   : > { %5776 = vmatmul.mubr.msk.bf16.vlgmr.msra.gmra.mrb[8].mxu1 %vm296_vm2, %v5771_v19  ;;  %v5793_v19 = vld [vmem:[%s7769_s1 + $0x10] sm:$0xf] }
 0x172   : > { %3469 = vmatpush1.bf16.msra.mxu1 %v3463_v40  ;;  %3500 = vmatprep.mubr.bf16.mxu1 %v6497_v0  ;;  %v3171_v25 = vsel %vm300_vm1, %v5747_v20, 0 }
 0x173   : > { %5780 = vmatprep.subr.msk.bf16.mxu1 %vm300_vm1, %v3517_v22  ;;  %v3654_v2 = vpop.permute.xlu0 %3653  ;;  %v3301_v23 = vpop.permute.xlu1 %3300 }
 0x174   : > { %v3658_v29 = vsel %vm293_vm0, %v3654_v2, %v3656_v43  ;;  %v3657_v31 = vsel %vm293_vm0, %v3652_v26, %v3654_v2  ;;  %v5807_v26 = vcombine.low %v6965_v54, %v5805_v17  ;;  %v5831_v17 = vld [vmem:[%s7769_s1 + $0x4] sm:$0xf] }
 0x175   : > { %v3663_v6 = vsel %vm300_vm1, %v3657_v31, 0 }
 0x177   : > { %v3093_v45 = vpop.permute.xlu0 %3092  ;;  %v3919_v38 = vpop.permute.xlu1 %3918 }
 0x178   : > { %v3098_v12 = vsel %vm406_vm3, %v3093_v45, %v3095_v10 }
 0x179   : > { %5718 = vmatmul.mubr.msk.bf16.vlgmr.msra.gmra.mrb[8].mxu0 %vm296_vm2, %v2764_v41  ;;  %v3104_v14 = vsel %vm300_vm1, %v3098_v12, 0 }
 0x17a   : > { %2908 = vmatpush1.bf16.msra.mxu0 %v2902_v27  ;;  %2939 = vmatprep.mubr.bf16.mxu0 %v6497_v0 }
 0x17b   : > { %5727 = vmatprep.subr.msk.bf16.mxu0 %vm300_vm1, %v5726_v32  ;;  %v3097_v56 = vpop.permute.xlu0 %3096  ;;  %v3791_v32 = vsel %vm300_vm1, %v5807_v26, 0  ;;  %v3923_v21 = vpop.permute.xlu1 %3922 }
 0x17c   : > { %v3099_v62 = vsel %vm406_vm3, %v3095_v10, %v3097_v56  ;;  %v5806_v10 = vld [vmem:[%s7769_s1 + $0x18] sm:$0xf] }
 0x17d   : > { %5778 = vmatmul.mubr.msk.bf16.vlgmr.msra.gmra.mrb[8].mxu1 %vm296_vm2, %v3384_v49 }
 0x17e   : > { %3528 = vmatpush1.bf16.msra.mxu1 %v3522_v36  ;;  %3559 = vmatprep.mubr.bf16.mxu1 %v6497_v0  ;;  %v5746_v36 = vld [vmem:[%s7769_s1 + $0x18] sm:$0xf] }
 0x17f   : > { %5787 = vmatprep.subr.msk.bf16.mxu1 %vm300_vm1, %v5786_v37  ;;  %v3715_v58 = vpop.permute.xlu0 %3714  ;;  %v4024_v45 = vpop.permute.xlu1 %4023 }
 0x180   : > { %v3719_v7 = vsel %vm406_vm3, %v3715_v58, %v3717_v59  ;;  %v3718_v16 = vsel %vm406_vm3, %v3713_v57, %v3715_v58  ;;  %v5815_v59 = vld [vmem:[%s7769_s1 + $0x1c] sm:$0xf] }
 0x181   : > { %v3724_v40 = vsel %vm300_vm1, %v3718_v16, 0 }
 0x183   : > { %v3238_v63 = vpop.permute.xlu0 %3237 }
 0x184   : > { %v3243_v49 = vsel %vm293_vm0, %v3238_v63, %v3240_v1 }
 0x185   : > { %5721 = vmatmul.mubr.msk.bf16.vlgmr.msra.gmra.mrb[8].mxu0 %vm296_vm2, %v5719_v46  ;;  %v3249_v37 = vsel %vm300_vm1, %v3243_v49, 0  ;;  %v5903_v49 = vld [vmem:[%s6603_s26 + $0xcc] sm:$0x33] }
 0x186   : > { %2971 = vmatpush1.bf16.msra.mxu0 %v2965_v47  ;;  %3002 = vmatprep.mubr.bf16.mxu0 %v6497_v0 }
 0x187   : > { %5737 = vmatprep.subr.msk.bf16.mxu0 %vm300_vm1, %v3038_v50  ;;  %v3242_v9 = vpop.permute.xlu0 %3241  ;;  %v4642_v50 = vpop.permute.xlu1 %4641 }
 0x188   : > { %v3244_v41 = vsel %vm293_vm0, %v3240_v1, %v3242_v9  ;;  %v5761_v1 = vld [vmem:[%s7769_s1 + $0x20] sm:$0xf] }
 0x189   : > { %5781 = vmatmul.mubr.msk.bf16.vlgmr.msra.gmra.mrb[8].mxu1 %vm296_vm2, %v5779_v52 }
 0x18a   : > { %3591 = vmatpush1.bf16.msra.mxu1 %v3585_v53  ;;  %3622 = vmatprep.mubr.bf16.mxu1 %v6497_v0  ;;  %v5755_v53 = vld [vmem:[%s7769_s1 + $0x1c] sm:$0xf] }
 0x18b   : > { %5797 = vmatprep.subr.msk.bf16.mxu1 %vm300_vm1, %v3658_v29  ;;  %v3860_v18 = vpop.permute.xlu0 %3859  ;;  %v4646_v58 = vpop.permute.xlu1 %4645 }
 0x18c   : > { %v3864_v35 = vsel %vm293_vm0, %v3860_v18, %v3862_v33  ;;  %v3863_v2 = vsel %vm293_vm0, %v3858_v11, %v3860_v18  ;;  %v4083_v18 = vsel %vm300_vm1, %v7035_v39, 0 }
 0x18d   : > { %v3869_v46 = vsel %vm300_vm1, %v3863_v2, 0  ;;  %v4624_v2 = vld [vmem:[%s7769_s1] sm:$0xf] }
 0x18f   : > { %v3299_v22 = vpop.permute.xlu0 %3298 }
 0x190   : > { %v3304_v52 = vsel %vm406_vm3, %v3299_v22, %v3301_v23 }
 0x191   : > { %5728 = vmatmul.mubr.msk.bf16.vlgmr.msra.gmra.mrb[8].mxu0 %vm296_vm2, %v5724_v60  ;;  %v3310_v56 = vsel %vm300_vm1, %v3304_v52, 0 }
 0x192   : > { %3049 = vmatpush1.bf16.msra.mxu0 %v3043_v61  ;;  %3080 = vmatprep.mubr.bf16.mxu0 %v6497_v0 }
 0x193   : > { %5740 = vmatprep.subr.msk.bf16.mxu0 %vm300_vm1, %v3099_v62  ;;  %v3303_v27 = vpop.permute.xlu0 %3302  ;;  %v4133_v62 = vpop.permute.xlu1 %4132 }
 0x194   : > { %v3305_v43 = vsel %vm406_vm3, %v3301_v23, %v3303_v27  ;;  %v5891_v23 = vld [vmem:[%s7769_s1 + $0x4] sm:$0xf] }
 0x195   : > { %5788 = vmatmul.mubr.msk.bf16.vlgmr.msra.gmra.mrb[8].mxu1 %vm296_vm2, %v5784_v4 }
 0x196   : > { %3669 = vmatpush1.bf16.msra.mxu1 %v3663_v6  ;;  %3700 = vmatprep.mubr.bf16.mxu1 %v6497_v0 }
 0x197   : > { %5800 = vmatprep.subr.msk.bf16.mxu1 %vm300_vm1, %v3719_v7  ;;  %v3921_v54 = vpop.permute.xlu0 %3920  ;;  %v5821_v7 = vld [vmem:[%s7769_s1 + $0x20] sm:$0xf]  ;;  %v4751_v9 = vpop.permute.xlu1 %4750 }
 0x198   : > { %v3925_v47 = vsel %vm406_vm3, %v3921_v54, %v3923_v21  ;;  %v3924_v57 = vsel %vm406_vm3, %v3919_v38, %v3921_v54 }
 0x199   : > { %v3930_v60 = vsel %vm300_vm1, %v3924_v57, 0  ;;  %v5899_v57 = vld [vmem:[%s7769_s1 + $0x8] sm:$0xf] }
 0x19b   : > { %v4022_v44 = vpop.permute.xlu0 %4021 }
 0x19c   : > { %v4027_v31 = vsel %vm293_vm0, %v4022_v44, %v4024_v45  ;;  %v5906_v44 = vcombine.high %v7109_v3, %v5903_v49 }
 0x19d   : > { %5738 = vmatmul.mubr.msk.bf16.vlgmr.msra.gmra.mrb[8].mxu0 %vm296_vm2, %v5733_v5  ;;  %v4033_v4 = vsel %vm300_vm1, %v4027_v31, 0 }
 0x19e   : > { %3110 = vmatpush1.bf16.msra.mxu0 %v3104_v14  ;;  %3141 = vmatprep.mubr.bf16.mxu0 %v6497_v0 }
 0x19f   : > { %5749 = vmatprep.subr.msk.bf16.mxu0 %vm300_vm1, %v5748_v15  ;;  %v4026_v48 = vpop.permute.xlu0 %4025 }
 0x1a0   : > { %v4028_v29 = vsel %vm293_vm0, %v4024_v45, %v4026_v48 }
 0x1a1   : > { %5798 = vmatmul.mubr.msk.bf16.vlgmr.msra.gmra.mrb[8].mxu1 %vm296_vm2, %v5793_v19 }
 0x1a2   : > { %3730 = vmatpush1.bf16.msra.mxu1 %v3724_v40  ;;  %3761 = vmatprep.mubr.bf16.mxu1 %v6497_v0  ;;  %v4755_v40 = vpop.permute.xlu1 %4754 }
 0x1a3   : > { %5809 = vmatprep.subr.msk.bf16.mxu1 %vm300_vm1, %v5808_v55  ;;  %v4644_v34 = vpop.permute.xlu0 %4643 }
 0x1a4   : > { %v4648_v61 = vsel %vm293_vm0, %v4644_v34, %v4646_v58  ;;  %v4647_v6 = vsel %vm293_vm0, %v4642_v50, %v4644_v34  ;;  %v5905_v50 = vcombine.low %v7109_v3, %v5903_v49  ;;  %v5866_v49 = vld [vmem:[%s7769_s1 + $0x18] sm:$0xf] }
 0x1a5   : > { %v4653_v11 = vsel %vm300_vm1, %v4647_v6, 0  ;;  %v5904_v6 = vld [vmem:[%s7769_s1 + $0xc] sm:$0xf] }
 0x1a6   : > { %v4274_v27 = vpop.permute.xlu1 %4273 }
 0x1a7   : > { %v4131_v63 = vpop.permute.xlu0 %4130 }
 0x1a8   : > { %v4136_v38 = vsel %vm406_vm3, %v4131_v63, %v4133_v62 }
 0x1a9   : > { %5741 = vmatmul.mubr.msk.bf16.vlgmr.msra.gmra.mrb[8].mxu0 %vm296_vm2, %v5739_v24 }
 0x1aa   : > { %3177 = vmatpush1.bf16.msra.mxu0 %v3171_v25  ;;  %3208 = vmatprep.mubr.bf16.mxu0 %v6497_v0  ;;  %v4703_v25 = vsel %vm300_vm1, %v7040_v42, 0  ;;  %v4004_v42 = vld [vmem:[%s7769_s1] sm:$0xf] }
 0x1ab   : > { %5759 = vmatprep.subr.msk.bf16.mxu0 %vm300_vm1, %v3244_v41  ;;  %v4135_v12 = vpop.permute.xlu0 %4134 }
 0x1ac   : > { %v4137_v19 = vsel %vm406_vm3, %v4133_v62, %v4135_v12 }
 0x1ad   : > { %5801 = vmatmul.mubr.msk.bf16.vlgmr.msra.gmra.mrb[8].mxu1 %vm296_vm2, %v5799_v8  ;;  %v5843_v8 = vld [vmem:[%s6603_s26 + $0xb4] sm:$0x33] }
 0x1ae   : > { %3797 = vmatpush1.bf16.msra.mxu1 %v3791_v32  ;;  %3828 = vmatprep.mubr.bf16.mxu1 %v6497_v0  ;;  %v4142_v32 = vsel %vm300_vm1, %v4136_v38, 0 }
 0x1af   : > { %5819 = vmatprep.subr.msk.bf16.mxu1 %vm300_vm1, %v3864_v35  ;;  %v4753_v20 = vpop.permute.xlu0 %4752  ;;  %v6400_v35 = vld [vmem:[%s6603_s26 + $0xa8] sm:$0xff] }
 0x1b0   : > { %v4757_v26 = vsel %vm406_vm3, %v4753_v20, %v4755_v40  ;;  %v5846_v54 = vcombine.high %v6400_v35, %v5843_v8  ;;  %v4756_v21 = vsel %vm406_vm3, %v4751_v9, %v4753_v20  ;;  %v5845_v45 = vcombine.low %v6400_v35, %v5843_v8 }
 0x1b2   : > { %v4205_v48 = vsel %vm300_vm1, %v5845_v45, 0  ;;  %v5926_v45 = vld [vmem:[%s7769_s1 + $0x18] sm:$0xf] }
 0x1b3   : > { %v4272_v41 = vpop.permute.xlu0 %4271 }
 0x1b5   : > { %5750 = vmatmul.mubr.msk.bf16.vlgmr.msra.gmra.mrb[8].mxu0 %vm296_vm2, %v5746_v36 }
 0x1b6   : > { %3255 = vmatpush1.bf16.msra.mxu0 %v3249_v37  ;;  %3286 = vmatprep.mubr.bf16.mxu0 %v6497_v0  ;;  %v4892_v37 = vpop.permute.xlu1 %4891 }
 0x1b7   : > { %5762 = vmatprep.subr.msk.bf16.mxu0 %vm300_vm1, %v3305_v43  ;;  %v4276_v36 = vpop.permute.xlu0 %4275  ;;  %v4762_v43 = vsel %vm300_vm1, %v4756_v21, 0 }
 0x1b8   : > { %v4278_v52 = vsel %vm293_vm0, %v4274_v27, %v4276_v36 }
 0x1b9   : > { %5810 = vmatmul.mubr.msk.bf16.vlgmr.msra.gmra.mrb[8].mxu1 %vm296_vm2, %v5806_v10 }
 0x1ba   : > { %3875 = vmatpush1.bf16.msra.mxu1 %v3869_v46  ;;  %3906 = vmatprep.mubr.bf16.mxu1 %v6497_v0  ;;  %v4896_v46 = vpop.permute.xlu1 %4895 }
 0x1bb   : > { %5822 = vmatprep.subr.msk.bf16.mxu1 %vm300_vm1, %v3925_v47  ;;  %v4894_v10 = vpop.permute.xlu0 %4893  ;;  %v5839_v47 = vld [vmem:[%s7769_s1 + $0x8] sm:$0xf] }
 0x1bc   : > { %v4898_v34 = vsel %vm293_vm0, %v4894_v10, %v4896_v46  ;;  %v4897_v62 = vsel %vm293_vm0, %v4892_v37, %v4894_v10 }
 0x1c1   : > { %5760 = vmatmul.mubr.msk.bf16.vlgmr.msra.gmra.mrb[8].mxu0 %vm296_vm2, %v5755_v53  ;;  %v4333_v53 = vpop.permute.xlu0 %4332 }
 0x1c2   : > { %3316 = vmatpush1.bf16.msra.mxu0 %v3310_v56  ;;  %3347 = vmatprep.mubr.bf16.mxu0 %v6497_v0  ;;  %v4335_v56 = vpop.permute.xlu1 %4334 }
 0x1c3   : > { %5835 = vmatprep.subr.msk.bf16.mxu0 %vm300_vm1, %v4028_v29  ;;  %v4825_v29 = vsel %vm300_vm1, %v5905_v50, 0 }
 0x1c5   : > { %5820 = vmatmul.mubr.msk.bf16.vlgmr.msra.gmra.mrb[8].mxu1 %vm296_vm2, %v5815_v59  ;;  %v4337_v58 = vpop.permute.xlu0 %4336 }
 0x1c6   : > { %3936 = vmatpush1.bf16.msra.mxu1 %v3930_v60  ;;  %3967 = vmatprep.mubr.bf16.mxu1 %v6497_v0  ;;  %v4953_v59 = vpop.permute.xlu1 %4952  ;;  %v4277_v60 = vsel %vm293_vm0, %v4272_v41, %v4274_v27  ;;  %v4339_v63 = vsel %vm406_vm3, %v4335_v56, %v4337_v58 }
 0x1c7   : > { %5895 = vmatprep.subr.msk.bf16.mxu1 %vm300_vm1, %v4648_v61  ;;  %v5844_v61 = vld [vmem:[%s7769_s1 + $0xc] sm:$0xf]  ;;  %v4283_v31 = vsel %vm300_vm1, %v4277_v60, 0 }
 0x1cd   : > { %5763 = vmatmul.mubr.msk.bf16.vlgmr.msra.gmra.mrb[8].mxu0 %vm296_vm2, %v5761_v1  ;;  %v4955_v1 = vpop.permute.xlu0 %4954 }
 0x1ce   : > { %4039 = vmatpush1.bf16.msra.mxu0 %v4033_v4  ;;  %4070 = vmatprep.mubr.bf16.mxu0 %v6497_v0  ;;  %v4957_v4 = vpop.permute.xlu1 %4956 }
 0x1cf   : > { %5837 = vmatprep.subr.msk.bf16.mxu0 %vm300_vm1, %v7026_v30  ;;  %v4959_v9 = vsel %vm406_vm3, %v4955_v1, %v4957_v4 }
 0x1d0   : > { %v7475_v13 = vpop.f32.mrb[0].mxu0 }
 0x1d1   : > { %v7477_v5 = vpop.f32.mrb[1].mxu0  ;;  %5823 = vmatmul.mubr.msk.bf16.vlgmr.msra.gmra.mrb[8].mxu1 %vm296_vm2, %v5821_v7  ;;  %v4903_v7 = vsel %vm300_vm1, %v4897_v62, 0 }
 0x1d2   : > { %v5954_v14 = vpack.c.bf16 %v7477_v5, %v7475_v13  ;;  %v888_v15 = vadd.f32 %v7477_v5, %v7475_v13  ;;  %4659 = vmatpush1.bf16.msra.mxu1 %v4653_v11  ;;  %v874_v16 = vpop.f32.mrb[2].mxu0  ;;  %4690 = vmatprep.mubr.bf16.mxu1 %v6497_v0  ;;  %v4478_v11 = vpop.permute.xlu0 %4477 }
 0x1d3   : > { %v875_v30 = vpop.f32.mrb[3].mxu0  ;;  %5897 = vmatprep.subr.msk.bf16.mxu1 %vm300_vm1, %v7063_v51  ;;  %v4480_v12 = vpop.permute.xlu1 %4479  ;;  %v5853_v16 = vld [vmem:[%s7769_s1 + $0x10] sm:$0xf] }
 0x1d4   : > { %887 = vst [vmem:[%s7492_s7] sm:$0xff] %v5954_v14  ;;  %v7495_v33 = vpop.f32.mrb[0].mxu1  ;;  %889 = vadd.xlane.f32.xlu0 %v888_v15  ;;  %v4338_v14 = vsel %vm406_vm3, %v4333_v53, %v4335_v56  ;;  %v5865_v15 = vld [vmem:[%s6603_s26 + $0xcc] sm:$0x33]  ;;  %v4483_v21 = vsel %vm293_vm0, %v4478_v11, %v4480_v12  ;;  %v5935_v53 = vld [vmem:[%s7769_s1 + $0x1c] sm:$0xf] }
 0x1d5   : > { %v7498_v55 = vpop.f32.mrb[1].mxu1  ;;  %5836 = vmatmul.mubr.msk.bf16.vlgmr.msra.gmra.mrb[12].mxu0 %vm296_vm2, %v5831_v17  ;;  %v4344_v17 = vsel %vm300_vm1, %v4338_v14, 0  ;;  %v5868_v30 = vcombine.high %v7109_v3, %v5865_v15  ;;  %v4489_v36 = vsel %vm300_vm1, %v4483_v21, 0 }
 0x1d6   : > { %v5955_v39 = vpack.c.bf16 %v7498_v55, %v7495_v33  ;;  %v1507_v51 = vadd.f32 %v7498_v55, %v7495_v33  ;;  %v1493_v22 = vpop.f32.mrb[2].mxu1  ;;  %4089 = vmatpush1.bf16.msra.mxu0 %v4083_v18  ;;  %4120 = vmatprep.mubr.bf16.mxu0 %v6497_v0  ;;  %v4958_v18 = vsel %vm406_vm3, %v4953_v59, %v4955_v1  ;;  %v4482_v40 = vpop.permute.xlu0 %4481 }
 0x1d7   : > { %v1494_v24 = vpop.f32.mrb[3].mxu1  ;;  %5840 = vmatprep.subr.msk.bf16.mxu0 %vm300_vm1, %v4137_v19  ;;  %v5925_v19 = vld [vmem:[%s6603_s26 + $0xe4] sm:$0x33]  ;;  %v5098_v20 = vpop.permute.xlu1 %5097  ;;  %v4484_v38 = vsel %vm293_vm0, %v4480_v12, %v4482_v40  ;;  %s7665_s26 = scalar_lea.vmem %s7771_s3, %s5464_s14  ;;  %s5243_s14 = scalar_lea.sflag [#allocation3], %s213_s13 }
 0x1d8   : > { %1506 = vst [vmem:[%s7492_s7 + $0x8] sm:$0xff] %v5955_v39  ;;  %1508 = vadd.xlane.f32.xlu0 %v1507_v51  ;;  %v5913_v39 = vld [vmem:[%s7769_s1 + $0x10] sm:$0xf]  ;;  %v4964_v51 = vsel %vm300_vm1, %v4958_v18, 0  ;;  %v5928_v22 = vcombine.high %v7179_v28, %v5925_v19  ;;  %v5927_v27 = vcombine.low %v7179_v28, %v5925_v19 }
 0x1d9   : > { %5896 = vmatmul.mubr.msk.bf16.vlgmr.msra.gmra.mrb[12].mxu1 %vm296_vm2, %v5891_v23  ;;  %v5867_v23 = vcombine.low %v7109_v3, %v5865_v15  ;;  %v5919_v3 = vld [vmem:[%s7769_s1 + $0x14] sm:$0xf] }
 0x1da   : > { %4709 = vmatpush1.bf16.msra.mxu1 %v4703_v25  ;;  %4740 = vmatprep.mubr.bf16.mxu1 %v6497_v0  ;;  %v5100_v24 = vpop.permute.xlu0 %5099 }
 0x1db   : > { %5900 = vmatprep.subr.msk.bf16.mxu1 %vm300_vm1, %v4757_v26  ;;  %v5102_v25 = vpop.permute.xlu1 %5101  ;;  %v5859_v26 = vld [vmem:[%s7769_s1 + $0x14] sm:$0xf]  ;;  %v4411_v41 = vsel %vm300_vm1, %v5867_v23, 0  ;;  %v5103_v37 = vsel %vm293_vm0, %v5098_v20, %v5100_v24 }
 0x1dc   : > { %v5104_v35 = vsel %vm293_vm0, %v5100_v24, %v5102_v25  ;;  %v5109_v10 = vsel %vm300_vm1, %v5103_v37, 0 }
 0x1de   : > { %v4539_v8 = vpop.permute.xlu0 %4538 }
 0x1e1   : > { %5838 = vmatmul.mubr.msk.bf16.vlgmr.msra.gmra.mrb[12].mxu0 %vm296_vm2, %v4004_v42  ;;  %v4541_v42 = vpop.permute.xlu1 %4540 }
 0x1e2   : > { %4148 = vmatpush1.bf16.msra.mxu0 %v4142_v32  ;;  %4179 = vmatprep.mubr.bf16.mxu0 %v6497_v0  ;;  %v5031_v32 = vsel %vm300_vm1, %v5927_v27, 0  ;;  %v4543_v28 = vpop.permute.xlu0 %4542 }
 0x1e3   : > { %5847 = vmatprep.subr.msk.bf16.mxu0 %vm300_vm1, %v5846_v54 }
 0x1e5   : > { %5898 = vmatmul.mubr.msk.bf16.vlgmr.msra.gmra.mrb[12].mxu1 %vm296_vm2, %v4624_v2  ;;  %v5159_v54 = vpop.permute.xlu1 %5158  ;;  %v4545_v2 = vsel %vm406_vm3, %v4541_v42, %v4543_v28 }
 0x1e6   : > { %4768 = vmatpush1.bf16.msra.mxu1 %v4762_v43  ;;  %4799 = vmatprep.mubr.bf16.mxu1 %v6497_v0  ;;  %v5161_v43 = vpop.permute.xlu0 %5160 }
 0x1e7   : > { %5907 = vmatprep.subr.msk.bf16.mxu1 %vm300_vm1, %v5906_v44 }
 0x1e9   : > { %v5163_v44 = vpop.permute.xlu1 %5162 }
 0x1ea   : > { %v5165_v46 = vsel %vm406_vm3, %v5161_v43, %v5163_v44 }
 0x1ed   : > { %5841 = vmatmul.mubr.msk.bf16.vlgmr.msra.gmra.mrb[12].mxu0 %vm296_vm2, %v5839_v47  ;;  %v4544_v47 = vsel %vm406_vm3, %v4539_v8, %v4541_v42 }
 0x1ee   : > { %4211 = vmatpush1.bf16.msra.mxu0 %v4205_v48  ;;  %4242 = vmatprep.mubr.bf16.mxu0 %v6497_v0  ;;  %v5875_v48 = vld [vmem:[%s7769_s1 + $0x1c] sm:$0xf]  ;;  %v4550_v50 = vsel %vm300_vm1, %v4544_v47, 0 }
 0x1ef   : > { %5857 = vmatprep.subr.msk.bf16.mxu0 %vm300_vm1, %v4278_v52  ;;  %v5164_v52 = vsel %vm406_vm3, %v5159_v54, %v5161_v43 }
 0x1f0   : > { %v5170_v56 = vsel %vm300_vm1, %v5164_v52, 0 }
 0x1f1   : > { %5901 = vmatmul.mubr.msk.bf16.vlgmr.msra.gmra.mrb[12].mxu1 %vm296_vm2, %v5899_v57  ;;  %v5881_v57 = vld [vmem:[%s7769_s1 + $0x20] sm:$0xf] }
 0x1f2   : > { %4831 = vmatpush1.bf16.msra.mxu1 %v4825_v29  ;;  %4862 = vmatprep.mubr.bf16.mxu1 %v6497_v0  ;;  %v5941_v29 = vld [vmem:[%s7769_s1 + $0x20] sm:$0xf] }
 0x1f3   : > { %5917 = vmatprep.subr.msk.bf16.mxu1 %vm300_vm1, %v4898_v34 }
 0x1f9   : > { %5848 = vmatmul.mubr.msk.bf16.vlgmr.msra.gmra.mrb[12].mxu0 %vm296_vm2, %v5844_v61 }
 0x1fa   : > { %4289 = vmatpush1.bf16.msra.mxu0 %v4283_v31  ;;  %4320 = vmatprep.mubr.bf16.mxu0 %v6497_v0 }
 0x1fb   : > { %5860 = vmatprep.subr.msk.bf16.mxu0 %vm300_vm1, %v4339_v63 }
 0x1fd   : > { %5908 = vmatmul.mubr.msk.bf16.vlgmr.msra.gmra.mrb[12].mxu1 %vm296_vm2, %v5904_v6 }
 0x1fe   : > { %4909 = vmatpush1.bf16.msra.mxu1 %v4903_v7  ;;  %4940 = vmatprep.mubr.bf16.mxu1 %v6497_v0 }
 0x1ff   : > { %5920 = vmatprep.subr.msk.bf16.mxu1 %vm300_vm1, %v4959_v9 }
 0x205   : > { %5858 = vmatmul.mubr.msk.bf16.vlgmr.msra.gmra.mrb[12].mxu0 %vm296_vm2, %v5853_v16 }
 0x206   : > { %4350 = vmatpush1.bf16.msra.mxu0 %v4344_v17  ;;  %4381 = vmatprep.mubr.bf16.mxu0 %v6497_v0 }
 0x207   : > { %5869 = vmatprep.subr.msk.bf16.mxu0 %vm300_vm1, %v5868_v30 }
 0x209   : > { %5918 = vmatmul.mubr.msk.bf16.vlgmr.msra.gmra.mrb[12].mxu1 %vm296_vm2, %v5913_v39 }
 0x20a   : > { %4970 = vmatpush1.bf16.msra.mxu1 %v4964_v51  ;;  %5001 = vmatprep.mubr.bf16.mxu1 %v6497_v0 }
 0x20b   : > { %5929 = vmatprep.subr.msk.bf16.mxu1 %vm300_vm1, %v5928_v22 }
 0x211   : > { %5861 = vmatmul.mubr.msk.bf16.vlgmr.msra.gmra.mrb[12].mxu0 %vm296_vm2, %v5859_v26 }
 0x212   : > { %4417 = vmatpush1.bf16.msra.mxu0 %v4411_v41  ;;  %4448 = vmatprep.mubr.bf16.mxu0 %v6497_v0 }
 0x213   : > { %5879 = vmatprep.subr.msk.bf16.mxu0 %vm300_vm1, %v4484_v38 }
 0x215   : > { %5921 = vmatmul.mubr.msk.bf16.vlgmr.msra.gmra.mrb[12].mxu1 %vm296_vm2, %v5919_v3 }
 0x216   : > { %5037 = vmatpush1.bf16.msra.mxu1 %v5031_v32  ;;  %5068 = vmatprep.mubr.bf16.mxu1 %v6497_v0 }
 0x217   : > { %5939 = vmatprep.subr.msk.bf16.mxu1 %vm300_vm1, %v5104_v35 }
 0x21d   : > { %5870 = vmatmul.mubr.msk.bf16.vlgmr.msra.gmra.mrb[12].mxu0 %vm296_vm2, %v5866_v49 }
 0x21e   : > { %4495 = vmatpush1.bf16.msra.mxu0 %v4489_v36  ;;  %4526 = vmatprep.mubr.bf16.mxu0 %v6497_v0 }
 0x21f   : > { %5882 = vmatprep.subr.msk.bf16.mxu0 %vm300_vm1, %v4545_v2 }
 0x221   : > { %5930 = vmatmul.mubr.msk.bf16.vlgmr.msra.gmra.mrb[12].mxu1 %vm296_vm2, %v5926_v45 }
 0x222   : > { %5115 = vmatpush1.bf16.msra.mxu1 %v5109_v10  ;;  %5146 = vmatprep.mubr.bf16.mxu1 %v6497_v0 }
 0x223   : > { %5942 = vmatprep.subr.msk.bf16.mxu1 %vm300_vm1, %v5165_v46 }
 0x229   : > { %5880 = vmatmul.mubr.msk.bf16.vlgmr.msra.gmra.mrb[12].mxu0 %vm296_vm2, %v5875_v48 }
 0x22a   : > { %4556 = vmatpush1.bf16.msra.mxu0 %v4550_v50  ;;  %4587 = vmatprep.mubr.bf16.mxu0 %v6497_v0 }
 0x22d   : > { %5940 = vmatmul.mubr.msk.bf16.vlgmr.msra.gmra.mrb[12].mxu1 %vm296_vm2, %v5935_v53 }
 0x22e   : > { %5176 = vmatpush1.bf16.msra.mxu1 %v5170_v56  ;;  %5207 = vmatprep.mubr.bf16.mxu1 %v6497_v0 }
 0x235   : > { %5883 = vmatmul.mubr.msk.bf16.vlgmr.msra.gmra.mrb[12].mxu0 %vm296_vm2, %v5881_v57 }
 0x238   : > { %v2109_v34 = vpop.f32.mrb[4].mxu0 }
 0x239   : > { %v2111_v58 = vpop.f32.mrb[5].mxu0  ;;  %5943 = vmatmul.mubr.msk.bf16.vlgmr.msra.gmra.mrb[12].mxu1 %vm296_vm2, %v5941_v29 }
 0x23a   : > { %v5956_v59 = vpack.c.bf16 %v2111_v58, %v2109_v34  ;;  %v2127_v60 = vadd.f32 %v2111_v58, %v2109_v34  ;;  %v2113_v0 = vpop.f32.mrb[6].mxu0 }
 0x23b   : > { %v2114_v61 = vpop.f32.mrb[7].mxu0 }
 0x23c   : > { %2126 = vst [vmem:[%s7492_s7 + $0x10] sm:$0xff] %v5956_v59  ;;  %v2729_v31 = vpop.f32.mrb[4].mxu1  ;;  %2128 = vadd.xlane.f32.xlu1 %v2127_v60 }
 0x23d   : > { %v2731_v62 = vpop.f32.mrb[5].mxu1 }
 0x23e   : > { %v5957_v63 = vpack.c.bf16 %v2731_v62, %v2729_v31  ;;  %v2747_v1 = vadd.f32 %v2731_v62, %v2729_v31  ;;  %v2733_v4 = vpop.f32.mrb[6].mxu1 }
 0x23f   : > { %v2734_v6 = vpop.f32.mrb[7].mxu1 }
 0x240   : > { %2746 = vst [vmem:[%s7492_s7 + $0x18] sm:$0xff] %v5957_v63  ;;  %2748 = vadd.xlane.f32.xlu1 %v2747_v1 }
 0x261   : > { %v890_v7 = vpop.xlane.xlu0 %889 }
 0x262   : > { %v891_v9 = vmul.f32 0.00390625, %v890_v7  ;;  %895 = vst.msk [vmem:[%s7665_s26] sm:$0xff] %vm894_vm4, %v890_v7 }
 0x264   : > { %v892_v11 = vsub.f32 %v7475_v13, %v891_v9  ;;  %v893_v12 = vsub.f32 %v7477_v5, %v891_v9 }
 0x265   : > { %v1509_v14 = vpop.xlane.xlu0 %1508 }
 0x266   : > { %v896_v15 = vmul.f32 %v892_v11, %v892_v11  ;;  %v897_v16 = vmul.f32 %v893_v12, %v893_v12  ;;  %v1510_v17 = vmul.f32 0.00390625, %v1509_v14  ;;  %5585 = vst.msk [vmem:[%s7665_s26 + $0x8] sm:$0xff] %vm894_vm4, %v1509_v14 }
 0x268   : > { %v1511_v30 = vsub.f32 %v7495_v33, %v1510_v17  ;;  %v1512_v18 = vsub.f32 %v7498_v55, %v1510_v17  ;;  %v898_v19 = vadd.f32 %v897_v16, %v896_v15 }
 0x26a   : > { %v1515_v40 = vmul.f32 %v1511_v30, %v1511_v30  ;;  %v1516_v20 = vmul.f32 %v1512_v18, %v1512_v18  ;;  %899 = vadd.xlane.f32.xlu1 %v898_v19 }
 0x26c   : > { %v1517_v39 = vadd.f32 %v1516_v20, %v1515_v40 }
 0x26e   : > { %1518 = vadd.xlane.f32.xlu0 %v1517_v39 }
 0x2a0   : > { %v3349_v13 = vpop.f32.mrb[8].mxu0 }
 0x2a1   : > { %v3351_v5 = vpop.f32.mrb[9].mxu0 }
 0x2a2   : > { %v5958_v51 = vpack.c.bf16 %v3351_v5, %v3349_v13  ;;  %v3367_v22 = vadd.f32 %v3351_v5, %v3349_v13  ;;  %v3353_v23 = vpop.f32.mrb[10].mxu0 }
 0x2a3   : > { %v3354_v24 = vpop.f32.mrb[11].mxu0 }
 0x2a4   : > { %3366 = vst [vmem:[%s7492_s7 + $0x20] sm:$0xff] %v5958_v51  ;;  %v3969_v25 = vpop.f32.mrb[8].mxu1  ;;  %3368 = vadd.xlane.f32.xlu1 %v3367_v22 }
 0x2a5   : > { %v3971_v33 = vpop.f32.mrb[9].mxu1 }
 0x2a6   : > { %v5959_v55 = vpack.c.bf16 %v3971_v33, %v3969_v25  ;;  %v3987_v26 = vadd.f32 %v3971_v33, %v3969_v25  ;;  %v3973_v41 = vpop.f32.mrb[10].mxu1 }
 0x2a7   : > { %v3974_v27 = vpop.f32.mrb[11].mxu1 }
 0x2a8   : > { %3986 = vst [vmem:[%s7492_s7 + $0x28] sm:$0xff] %v5959_v55  ;;  %3988 = vadd.xlane.f32.xlu1 %v3987_v26 }
 0x2c9   : > { %v2129_v38 = vpop.xlane.xlu1 %2128 }
 0x2ca   : > { %v2130_v8 = vmul.f32 0.00390625, %v2129_v38  ;;  %5645 = vst.msk [vmem:[%s7665_s26 + $0x10] sm:$0xff] %vm894_vm4, %v2129_v38 }
 0x2cc   : > { %v2131_v42 = vsub.f32 %v2109_v34, %v2130_v8  ;;  %v2132_v3 = vsub.f32 %v2111_v58, %v2130_v8 }
 0x2cd   : > { %v2749_v32 = vpop.xlane.xlu1 %2748 }
 0x2ce   : > { %v2135_v35 = vmul.f32 %v2131_v42, %v2131_v42  ;;  %v2136_v28 = vmul.f32 %v2132_v3, %v2132_v3  ;;  %v2750_v54 = vmul.f32 0.00390625, %v2749_v32  ;;  %5705 = vst.msk [vmem:[%s7665_s26 + $0x18] sm:$0xff] %vm894_vm4, %v2749_v32 }
 0x2d0   : > { %v2751_v21 = vsub.f32 %v2729_v31, %v2750_v54  ;;  %v2752_v49 = vsub.f32 %v2731_v62, %v2750_v54  ;;  %v2137_v36 = vadd.f32 %v2136_v28, %v2135_v35 }
 0x2d2   : > { %v2755_v37 = vmul.f32 %v2751_v21, %v2751_v21  ;;  %v2756_v2 = vmul.f32 %v2752_v49, %v2752_v49  ;;  %2138 = vadd.xlane.f32.xlu0 %v2137_v36 }
 0x2d4   : > { %v2757_v43 = vadd.f32 %v2756_v2, %v2755_v37 }
 0x2d6   : > { %2758 = vadd.xlane.f32.xlu0 %v2757_v43 }
 0x2f7   : > { %v900_v44 = vpop.xlane.xlu1 %899 }
 0x2f8   : > { %901 = vst.msk [vmem:[%s7686_s5] sm:$0xff] %vm894_vm4, %v900_v44 }
 0x2fb   : > { %v1519_v45 = vpop.xlane.xlu0 %1518 }
 0x2fc   : > { %5586 = vst.msk [vmem:[%s7686_s5 + $0x8] sm:$0xff] %vm894_vm4, %v1519_v45 }
 0x308   : > { %v4589_v10 = vpop.f32.mrb[12].mxu0 }
 0x309   : > { %v4591_v46 = vpop.f32.mrb[13].mxu0 }
 0x30a   : > { %v5960_v47 = vpack.c.bf16 %v4591_v46, %v4589_v10  ;;  %v4607_v48 = vadd.f32 %v4591_v46, %v4589_v10  ;;  %v4593_v50 = vpop.f32.mrb[14].mxu0 }
 0x30b   : > { %v4594_v52 = vpop.f32.mrb[15].mxu0 }
 0x30c   : > { %4606 = vst [vmem:[%s7492_s7 + $0x30] sm:$0xff] %v5960_v47  ;;  %v5209_v53 = vpop.f32.mrb[12].mxu1  ;;  %4608 = vadd.xlane.f32.xlu1 %v4607_v48 }
 0x30d   : > { %v5211_v56 = vpop.f32.mrb[13].mxu1 }
 0x30e   : > { %v5961_v57 = vpack.c.bf16 %v5211_v56, %v5209_v53  ;;  %v5227_v29 = vadd.f32 %v5211_v56, %v5209_v53  ;;  %v5213_v34 = vpop.f32.mrb[14].mxu1 }
 0x30f   : > { %v5214_v58 = vpop.f32.mrb[15].mxu1 }
 0x310   : > { %5226 = vst [vmem:[%s7492_s7 + $0x38] sm:$0xff] %v5961_v57  ;;  %5228 = vadd.xlane.f32.xlu1 %v5227_v29 }
 0x331   : > { %v3369_v59 = vpop.xlane.xlu1 %3368 }
 0x332   : > { %v3370_v60 = vmul.f32 0.00390625, %v3369_v59  ;;  %5765 = vst.msk [vmem:[%s7665_s26 + $0x20] sm:$0xff] %vm894_vm4, %v3369_v59 }
 0x334   : > { %v3371_v0 = vsub.f32 %v3349_v13, %v3370_v60  ;;  %v3372_v61 = vsub.f32 %v3351_v5, %v3370_v60 }
 0x335   : > { %v3989_v31 = vpop.xlane.xlu1 %3988 }
 0x336   : > { %v3375_v62 = vmul.f32 %v3371_v0, %v3371_v0  ;;  %v3376_v63 = vmul.f32 %v3372_v61, %v3372_v61  ;;  %v3990_v1 = vmul.f32 0.00390625, %v3989_v31  ;;  %5825 = vst.msk [vmem:[%s7665_s26 + $0x28] sm:$0xff] %vm894_vm4, %v3989_v31 }
 0x338   : > { %v3991_v4 = vsub.f32 %v3969_v25, %v3990_v1  ;;  %v3992_v6 = vsub.f32 %v3971_v33, %v3990_v1  ;;  %v3377_v7 = vadd.f32 %v3376_v63, %v3375_v62 }
 0x33a   : > { %v3995_v9 = vmul.f32 %v3991_v4, %v3991_v4  ;;  %v3996_v11 = vmul.f32 %v3992_v6, %v3992_v6  ;;  %3378 = vadd.xlane.f32.xlu0 %v3377_v7 }
 0x33c   : > { %v3997_v12 = vadd.f32 %v3996_v11, %v3995_v9 }
 0x33e   : > { %3998 = vadd.xlane.f32.xlu0 %v3997_v12 }
 0x35f   : > { %v2139_v14 = vpop.xlane.xlu0 %2138 }
 0x360   : > { %5646 = vst.msk [vmem:[%s7686_s5 + $0x10] sm:$0xff] %vm894_vm4, %v2139_v14 }
 0x363   : > { %v2759_v15 = vpop.xlane.xlu0 %2758 }
 0x364   : > { %5706 = vst.msk [vmem:[%s7686_s5 + $0x18] sm:$0xff] %vm894_vm4, %v2759_v15 }
 0x399   : > { %v4609_v16 = vpop.xlane.xlu1 %4608 }
 0x39a   : > { %v4610_v17 = vmul.f32 0.00390625, %v4609_v16  ;;  %5885 = vst.msk [vmem:[%s7665_s26 + $0x30] sm:$0xff] %vm894_vm4, %v4609_v16 }
 0x39c   : > { %v4611_v30 = vsub.f32 %v4589_v10, %v4610_v17  ;;  %v4612_v18 = vsub.f32 %v4591_v46, %v4610_v17 }
 0x39d   : > { %v5229_v19 = vpop.xlane.xlu1 %5228 }
 0x39e   : > { %v4615_v40 = vmul.f32 %v4611_v30, %v4611_v30  ;;  %v4616_v20 = vmul.f32 %v4612_v18, %v4612_v18  ;;  %v5230_v39 = vmul.f32 0.00390625, %v5229_v19  ;;  %5945 = vst.msk [vmem:[%s7665_s26 + $0x38] sm:$0xff] %vm894_vm4, %v5229_v19  ;;  %s6405_s26 = sshll.u32 %s6500_s23, 4  ;;  %s6406_s26 = int_to_ptr.vmem [resolvable:$false] %s6405_s26 }
 0x39f   : > { %s6407_s18 = scalar_lea.vmem %s6406_s26, 2048  ;;  %p6408_p3 = scmp.lt.s32.totalorder %s5274_s12, %s6406_s26 }
 0x3a0   : > { %v5231_v13 = vsub.f32 %v5209_v53, %v5230_v39  ;;  %v5232_v5 = vsub.f32 %v5211_v56, %v5230_v39  ;;  %v4617_v51 = vadd.f32 %v4616_v20, %v4615_v40  ;;  %p6409_p4 = scmp.lt.s32.totalorder %s6407_s18, %s6401_s28 }
 0x3a2   : > { %v5235_v22 = vmul.f32 %v5231_v13, %v5231_v13  ;;  %v5236_v23 = vmul.f32 %v5232_v5, %v5232_v5  ;;  %4618 = vadd.xlane.f32.xlu0 %v4617_v51  ;;  %p6410_p6 = por %p6409_p4, %p6408_p3 }
 0x3a4   : > { %v5237_v24 = vadd.f32 %v5236_v23, %v5235_v22  ;;  %p6411_p8 = pnand %p6410_p6, %p6404_p2 }
 0x3a6   : > { %5238 = vadd.xlane.f32.xlu0 %v5237_v24 }
 0x3a7   : > { %6414 = shalt.err (!%p6411_p8)
}
 0x3a8   : > { %s6415_s13 = scalar_lea.hbm %s7710_s11, 1024  ;;  %s6419_s19 = scalar_lea.hbm %s7770_s2, 4096 }
 0x3a9   : > { %p6416_p9 = scmp.ne.s32.totalorder %s7710_s11, %s6415_s13  ;;  %p6420_p12 = scmp.lt.u32.totalorder %s7710_s11, %s7770_s2 }
 0x3aa   : > { %p6421_p13 = scmp.lt.u32.totalorder %s6419_s19, %s6415_s13  ;;  %p6423_p1 = scmp.lt.u32.totalorder %s6415_s13, %s7710_s11 }
 0x3ab   : > { %p6417_p10 = pnand %p6416_p9, %p6579_p5 }
 0x3ac   : > { %p6422_p0 = por %p6421_p13, %p6420_p12 }
 0x3ad   : > { %p6418_p11 = pneg %p6417_p10 }
 0x3ae   : > { %p6424_p2 = por %p6423_p1, %p6422_p0 }
 0x3b0   : > { %p6425_p3 = pnand %p6424_p2, %p6418_p11 }
 0x3b2   : > { %6428 = shalt.err (!%p6425_p3)
}
 0x3b3   : > { %6220 = dma.vmem_to_hbm [thread:$0]  (%p6579_p5), %s5274_s12, 1024, %s7710_s11, %s5243_s14  }
 0x3c7   : > { %v3379_v25 = vpop.xlane.xlu0 %3378 }
 0x3c8   : > { %5766 = vst.msk [vmem:[%s7686_s5 + $0x20] sm:$0xff] %vm894_vm4, %v3379_v25 }
 0x3cb   : > { %v3999_v33 = vpop.xlane.xlu0 %3998 }
 0x3cc   : > { %5826 = vst.msk [vmem:[%s7686_s5 + $0x28] sm:$0xff] %vm894_vm4, %v3999_v33 }
 0x42f   : > { %v4619_v55 = vpop.xlane.xlu0 %4618 }
 0x430   : > { %5886 = vst.msk [vmem:[%s7686_s5 + $0x30] sm:$0xff] %vm894_vm4, %v4619_v55 }
 0x433   : > { %v5239_v26 = vpop.xlane.xlu0 %5238 }
 0x434   : > { %5946 = vst.msk [vmem:[%s7686_s5 + $0x38] sm:$0xff] %vm894_vm4, %v5239_v26 }
 0x435 PF: > { %p6226_p4 = scmp.ge.s32.totalorder %s6495_s22, 2  ;;  %s5297_s29 = sand.u32 1, %s6467_s15  }
 0x436   : > { %s5298_s10 = scalar_lea.sflag [#allocation3], %s5297_s29 }
 0x437   : > { %p6223_p5 = pnand %p6226_p4, %p6585_p7 }
 0x439   : > { %6462 = dma.done.wait (!%p6223_p5), %s5298_s10, 1024  }
 0x43a   : > { %6464 = vsyncadd (!%p6223_p5), %s5298_s10, 4294966272  ;;  %s18_s22 = sadd.s32 1, %s6495_s22   ;;  %s7775_s15 = smov %s6471_s16 }
 0x43b   : > { %p15_p6 = scmp.ge.s32.totalorder %s18_s22, 6   ;;  %s7776_s16 = smov %s6475_s17 }
 0x43c   : > { %s7777_s17 = smov %s6595_s9  ;;  %s7778_s18 = smov %s6487_s20 }
 0x43d   : > { %s7779_s19 = smov %s6491_s21  ;;  %s7780_s20 = smov %s7783_s24 }
 0x43e   : > { %s7781_s21 = smov %s7787_s25  ;;  %17 = sbr.rel (!%p15_p6) target bundleno = 5 (0x5), region = 119 }
 0x445   :  { %5323 = vsyncpa [#allocation3], 1 }
 0x446   :  { %5325 = vsyncpa [#allocation3 + $0x1], 1 }

</bundles_post_ra>
